<compile_context>
chip_gen: v5e
topology: v5e:2x2
jax: 0.10.0
libtpu: 0.0.40
codegen_flags: <defaults>
</compile_context>

<pallas_src>
import functools

import jax
import jax.numpy as jnp
from jax import lax
from jax.experimental import pallas as pl
from jax.experimental.pallas import tpu as pltpu


# --------------------------------------------------------------------------
# Kernels
# --------------------------------------------------------------------------
def _depthwise_tile(xp_ref, wdw, hb, *, TH, Wo, Cin, KH, KW, S):
    """Depthwise conv for one (sample, TH-row) tile.  Returns f32 (TH, Wo, Cin).

    xp_ref: (1, Hp, Wp, Cin) padded NHWC input block (full sample).
    wdw:    (KH*KW, 1, Cin) per-tap per-channel weights, already f32.
    hb:     row-block index (pl.program_id(1)).
    """
    row_base = pl.multiple_of(hb * (TH * S), TH * S)
    acc = jnp.zeros((TH, Wo, Cin), jnp.float32)
    for kh in range(KH):
        for kw in range(KW):
            if S == 1:
                win = xp_ref[0, pl.ds(row_base + kh, TH), kw:kw + Wo, :]
            else:  # stride handled at the load via strided pl.ds
                win = xp_ref[0, pl.ds(row_base + kh, TH, stride=S),
                             pl.ds(kw, Wo, stride=S), :]
            # per-tap cast only (no wholesale f32 copy of the input block)
            acc = acc + win.astype(jnp.float32) * wdw[kh * KW + kw]
    return acc


def _stats_kernel(xp_ref, wdw_ref, sum_ref, sq_ref, *, TH, Wo, Cin, KH, KW, S):
    """Pass 1: partial per-channel moments of the depthwise output."""
    hb = pl.program_id(1)
    wdw = wdw_ref[...].astype(jnp.float32)            # (KH*KW, 1, Cin), tiny
    acc = _depthwise_tile(xp_ref, wdw, hb,
                          TH=TH, Wo=Wo, Cin=Cin, KH=KH, KW=KW, S=S)
    acc2 = acc.reshape(TH * Wo, Cin)                  # leading-dim merge: free
    sum_ref[0, 0] = jnp.sum(acc2, axis=0, keepdims=True)          # (1, Cin)
    sq_ref[0, 0] = jnp.sum(acc2 * acc2, axis=0, keepdims=True)    # (1, Cin)


def _fused_kernel(xp_ref, wdw_ref, shift_ref, wpw_ref, out_ref,
                  *, TH, Wo, Cin, Cout, KH, KW, S):
    """Pass 2: (BN-scaled) depthwise + shift + ReLU + pointwise 1x1 conv."""
    hb = pl.program_id(1)
    wdw = wdw_ref[...]                                # f32, BN scale folded in
    acc = _depthwise_tile(xp_ref, wdw, hb,
                          TH=TH, Wo=Wo, Cin=Cin, KH=KH, KW=KW, S=S)
    # BN scale already folded into the taps; only the shift + ReLU remain.
    y = jnp.maximum(acc + shift_ref[...], 0.0)
    # Pointwise 1x1 conv: contract the channel (lane) dim of both operands so
    # the MXU result is (Cout, TH*Wo) -> lane-dense store, already NCHW-major.
    flat = y.reshape(TH * Wo, Cin).astype(wpw_ref.dtype)   # leading-dim merge
    out_t = lax.dot_general(
        wpw_ref[...], flat,
        dimension_numbers=(((1,), (1,)), ((), ())),         # A . B^T
        preferred_element_type=jnp.float32)                 # (Cout, TH*Wo)
    out_ref[0] = out_t.astype(out_ref.dtype)


# --------------------------------------------------------------------------
# Wrapper
# --------------------------------------------------------------------------
def _pick_row_tile(Ho, Wo, Cin, Cout):
    """Largest divisor of Ho whose flattened output (TH*Wo) is lane-dense
    (multiple of 128, or the full output) and whose f32 working tiles stay
    within a few MiB.  Fewer, bigger grid steps amortize per-step overhead."""
    budget = 6 << 20  # bytes for the f32 depthwise + pointwise tiles
    lane_dense = [d for d in range(1, Ho + 1)
                  if Ho % d == 0 and ((d * Wo) % 128 == 0 or d == Ho)]
    fitting = [d for d in lane_dense if 4 * d * Wo * (Cin + Cout) <= budget]
    if fitting:
        return max(fitting)
    return min(lane_dense)   # Ho is always lane_dense-eligible -> non-empty


@functools.partial(jax.jit, static_argnames=("stride", "padding", "eps"))
def mobile_conv_drop_activate(x_nchw, w_dw, gamma, beta, w_pw,
                              *, stride, padding, eps=1e-5):
    """x_nchw: (N, Cin, H, W); w_dw: (Cin, 1, KH, KW) (PyTorch depthwise,
    groups=Cin); w_pw: (Cout, Cin, 1, 1).  Returns NCHW output with
    training-mode BatchNorm semantics (batch statistics)."""
    N, Cin, H, W = map(int, x_nchw.shape)
    KH, KW = int(w_dw.shape[2]), int(w_dw.shape[3])
    Cout = int(w_pw.shape[0])
    S, P = int(stride), int(padding)
    Ho = (H + 2 * P - KH) // S + 1
    Wo = (W + 2 * P - KW) // S + 1
    Hp, Wp = H + 2 * P, W + 2 * P

    # Single prep pass over the input: NCHW->NHWC transpose fused (under jit)
    # with the zero padding; channels land on the TPU lane dimension.
    xp = jnp.pad(jnp.transpose(x_nchw, (0, 2, 3, 1)),
                 ((0, 0), (P, P), (P, P), (0, 0)))

    # Depthwise taps as (KH*KW, 1, Cin) f32; pointwise weight as (Cout, Cin).
    wdw = jnp.transpose(w_dw[:, 0], (1, 2, 0)).reshape(
        KH * KW, 1, Cin).astype(jnp.float32)
    wpw = w_pw[:, :, 0, 0]

    TH = _pick_row_tile(Ho, Wo, Cin, Cout)
    HB = Ho // TH

    cparams = pltpu.CompilerParams(
        dimension_semantics=("parallel", "parallel"),
        vmem_limit_bytes=28 * 1024 * 1024)   # fits v7x's smaller VMEM budget

    # ---------------- pass 1: partial depthwise moments -------------------
    sums, sqs = pl.pallas_call(
        functools.partial(_stats_kernel, TH=TH, Wo=Wo, Cin=Cin,
                          KH=KH, KW=KW, S=S),
        grid=(N, HB),
        in_specs=[
            pl.BlockSpec((1, Hp, Wp, Cin), lambda n, h: (n, 0, 0, 0)),
            pl.BlockSpec((KH * KW, 1, Cin), lambda n, h: (0, 0, 0)),
        ],
        out_specs=[
            pl.BlockSpec((1, 1, 1, Cin), lambda n, h: (n, h, 0, 0)),
            pl.BlockSpec((1, 1, 1, Cin), lambda n, h: (n, h, 0, 0)),
        ],
        out_shape=[
            jax.ShapeDtypeStruct((N, HB, 1, Cin), jnp.float32),
            jax.ShapeDtypeStruct((N, HB, 1, Cin), jnp.float32),
        ],
        compiler_params=cparams,
    )(xp, wdw)

    # Global batch statistics (training-mode BN), folded into scale / shift.
    cnt = float(N * Ho * Wo)
    mean = jnp.sum(sums, axis=(0, 1, 2)) / cnt
    var = jnp.maximum(jnp.sum(sqs, axis=(0, 1, 2)) / cnt - mean * mean, 0.0)
    scale = gamma.astype(jnp.float32) * lax.rsqrt(var + eps)
    shift = (beta.astype(jnp.float32) - mean * scale).reshape(1, 1, Cin)

    # Fold the BN scale into the depthwise taps (per-channel conv =>
    # scale * conv(x, w) == conv(x, scale * w)): saves one full-tile VPU
    # multiply per grid step in pass 2 and drops one kernel input.
    wdw_s = wdw * scale.reshape(1, 1, Cin)

    # ------- pass 2: depthwise(+scale) + shift + ReLU + pointwise (NCHW) ---
    out_flat = pl.pallas_call(
        functools.partial(_fused_kernel, TH=TH, Wo=Wo, Cin=Cin, Cout=Cout,
                          KH=KH, KW=KW, S=S),
        grid=(N, HB),
        in_specs=[
            pl.BlockSpec((1, Hp, Wp, Cin), lambda n, h: (n, 0, 0, 0)),
            pl.BlockSpec((KH * KW, 1, Cin), lambda n, h: (0, 0, 0)),
            pl.BlockSpec((1, 1, Cin), lambda n, h: (0, 0, 0)),
            pl.BlockSpec((Cout, Cin), lambda n, h: (0, 0)),
        ],
        out_specs=pl.BlockSpec((1, Cout, TH * Wo), lambda n, h: (n, 0, h)),
        out_shape=jax.ShapeDtypeStruct((N, Cout, Ho * Wo), x_nchw.dtype),
        compiler_params=cparams,
    )(xp, wdw_s, shift, wpw)

    # Free reshape (metadata only): (N, Cout, Ho*Wo) -> NCHW.
    return out_flat.reshape(N, Cout, Ho, Wo)


# --------------------------------------------------------------------------
# Pure-JAX reference mirroring the PyTorch forward (training-mode BN).
# --------------------------------------------------------------------------
def _reference(x_nchw, w_dw, gamma, beta, w_pw, *, stride, padding, eps=1e-5):
    dw = lax.conv_general_dilated(
        x_nchw, w_dw, (stride, stride),
        [(padding, padding), (padding, padding)],
        feature_group_count=x_nchw.shape[1],
        dimension_numbers=('NCHW', 'OIHW', 'NCHW'))
    mean = jnp.mean(dw, axis=(0, 2, 3), keepdims=True)
    var = jnp.mean((dw - mean) ** 2, axis=(0, 2, 3), keepdims=True)
    y = (dw - mean) / jnp.sqrt(var + eps) * gamma.reshape(1, -1, 1, 1) \
        + beta.reshape(1, -1, 1, 1)
    y = jnp.maximum(y, 0.0)
    return lax.conv_general_dilated(
        y, w_pw, (1, 1), [(0, 0), (0, 0)],
        dimension_numbers=('NCHW', 'OIHW', 'NCHW'))


if __name__ == "__main__":
    # Small shapes consistent with the module.
    N, Cin, H, W = 2, 4, 16, 16
    Cout, K, stride, padding = 8, 3, 1, 1

    key = jax.random.PRNGKey(0)
    k1, k2, k3, k4, k5 = jax.random.split(key, 5)

    x = jax.random.normal(k1, (N, Cin, H, W), jnp.float32)
    # nn.Conv2d(inp, inp, k, groups=inp, bias=False) -> weight (inp, 1, K, K)
    w_dw = jax.random.normal(k2, (Cin, 1, K, K), jnp.float32) * 0.3
    # nn.Conv2d(inp, oup, 1, bias=False) -> weight (oup, inp, 1, 1)
    w_pw = jax.random.normal(k3, (Cout, Cin, 1, 1), jnp.float32) * 0.3
    # BatchNorm2d affine params.
    gamma = 1.0 + 0.1 * jax.random.normal(k4, (Cin,), jnp.float32)
    beta = 0.1 * jax.random.normal(k5, (Cin,), jnp.float32)

    out = mobile_conv_drop_activate(x, w_dw, gamma, beta, w_pw,
                                    stride=stride, padding=padding)
    out = jax.block_until_ready(out)

    ref = _reference(x, w_dw, gamma, beta, w_pw, stride=stride, padding=padding)
    ref = jax.block_until_ready(ref)

    assert out.shape == (N, Cout, H, W), out.shape
    err = float(jnp.max(jnp.abs(out - ref)))
    assert jnp.allclose(out, ref, atol=2e-4, rtol=2e-4), err

    print("KERNEL_OK")
</pallas_src>

<mosaic_0001>
module attributes {stable_mosaic.version = 11 : i64} {
  func.func @_stats_kernel(%arg0: i32, %arg1: i32, %arg2: memref<1x18x18x4xf32, #tpu.memory_space<vmem>>, %arg3: memref<9x1x4xf32, #tpu.memory_space<vmem>>, %arg4: memref<1x1x1x4xf32, #tpu.memory_space<vmem>>, %arg5: memref<1x1x1x4xf32, #tpu.memory_space<vmem>>) attributes {dimension_semantics = [#tpu.dimension_semantics<parallel>, #tpu.dimension_semantics<parallel>], iteration_bounds = array<i64: 2, 1>, scalar_prefetch = 0 : i64, scratch_operands = 0 : i64, tpu.core_type = #tpu.core_type<tc>, window_params = [{transform_indices = @transform_0, window_bounds = array<i64: 1, 18, 18, 4>}, {pipeline_mode = #tpu.pipeline_mode<synchronous>, transform_indices = @transform_1, window_bounds = array<i64: 9, 1, 4>}, {transform_indices = @transform_2, window_bounds = array<i64: 1, 1, 1, 4>}, {transform_indices = @transform_3, window_bounds = array<i64: 1, 1, 1, 4>}]} {
    %c0 = arith.constant 0 : index
    %c0_0 = arith.constant 0 : index
    %c0_1 = arith.constant 0 : index
    %0 = vector.load %arg3[%c0, %c0_0, %c0_1] : memref<9x1x4xf32, #tpu.memory_space<vmem>>, vector<9x1x4xf32>
    %c16_i32 = arith.constant 16 : i32
    %1 = arith.muli %arg1, %c16_i32 : i32
    %2 = tpu.assume_multiple %1, 16 : i32
    %cst = arith.constant 0.000000e+00 : f32
    %3 = vector.broadcast %cst : f32 to vector<16x16x4xf32>
    %c0_i32 = arith.constant 0 : i32
    %4 = arith.addi %2, %c0_i32 : i32
    %c0_2 = arith.constant 0 : index
    %5 = arith.index_cast %4 : i32 to index
    %c0_3 = arith.constant 0 : index
    %c0_4 = arith.constant 0 : index
    %6 = vector.load %arg2[%c0_2, %5, %c0_3, %c0_4] : memref<1x18x18x4xf32, #tpu.memory_space<vmem>>, vector<1x16x16x4xf32>
    %7 = vector.shape_cast %6 : vector<1x16x16x4xf32> to vector<16x16x4xf32>
    %8 = vector.extract_strided_slice %0 {offsets = [0, 0, 0], sizes = [1, 1, 4], strides = [1, 1, 1]} : vector<9x1x4xf32> to vector<1x1x4xf32>
    %9 = vector.shape_cast %8 : vector<1x1x4xf32> to vector<1x4xf32>
    %10 = vector.shape_cast %9 : vector<1x4xf32> to vector<1x1x4xf32>
    %11 = vector.broadcast %10 : vector<1x1x4xf32> to vector<16x16x4xf32>
    %12 = arith.mulf %7, %11 : vector<16x16x4xf32>
    %13 = arith.addf %3, %12 : vector<16x16x4xf32>
    %c0_i32_5 = arith.constant 0 : i32
    %14 = arith.addi %2, %c0_i32_5 : i32
    %c0_6 = arith.constant 0 : index
    %15 = arith.index_cast %14 : i32 to index
    %c1 = arith.constant 1 : index
    %c0_7 = arith.constant 0 : index
    %16 = vector.load %arg2[%c0_6, %15, %c1, %c0_7] : memref<1x18x18x4xf32, #tpu.memory_space<vmem>>, vector<1x16x16x4xf32>
    %17 = vector.shape_cast %16 : vector<1x16x16x4xf32> to vector<16x16x4xf32>
    %18 = vector.extract_strided_slice %0 {offsets = [1, 0, 0], sizes = [1, 1, 4], strides = [1, 1, 1]} : vector<9x1x4xf32> to vector<1x1x4xf32>
    %19 = vector.shape_cast %18 : vector<1x1x4xf32> to vector<1x4xf32>
    %20 = vector.shape_cast %19 : vector<1x4xf32> to vector<1x1x4xf32>
    %21 = vector.broadcast %20 : vector<1x1x4xf32> to vector<16x16x4xf32>
    %22 = arith.mulf %17, %21 : vector<16x16x4xf32>
    %23 = arith.addf %13, %22 : vector<16x16x4xf32>
    %c0_i32_8 = arith.constant 0 : i32
    %24 = arith.addi %2, %c0_i32_8 : i32
    %c0_9 = arith.constant 0 : index
    %25 = arith.index_cast %24 : i32 to index
    %c2 = arith.constant 2 : index
    %c0_10 = arith.constant 0 : index
    %26 = vector.load %arg2[%c0_9, %25, %c2, %c0_10] : memref<1x18x18x4xf32, #tpu.memory_space<vmem>>, vector<1x16x16x4xf32>
    %27 = vector.shape_cast %26 : vector<1x16x16x4xf32> to vector<16x16x4xf32>
    %28 = vector.extract_strided_slice %0 {offsets = [2, 0, 0], sizes = [1, 1, 4], strides = [1, 1, 1]} : vector<9x1x4xf32> to vector<1x1x4xf32>
    %29 = vector.shape_cast %28 : vector<1x1x4xf32> to vector<1x4xf32>
    %30 = vector.shape_cast %29 : vector<1x4xf32> to vector<1x1x4xf32>
    %31 = vector.broadcast %30 : vector<1x1x4xf32> to vector<16x16x4xf32>
    %32 = arith.mulf %27, %31 : vector<16x16x4xf32>
    %33 = arith.addf %23, %32 : vector<16x16x4xf32>
    %c1_i32 = arith.constant 1 : i32
    %34 = arith.addi %2, %c1_i32 : i32
    %c0_11 = arith.constant 0 : index
    %35 = arith.index_cast %34 : i32 to index
    %c0_12 = arith.constant 0 : index
    %c0_13 = arith.constant 0 : index
    %36 = vector.load %arg2[%c0_11, %35, %c0_12, %c0_13] : memref<1x18x18x4xf32, #tpu.memory_space<vmem>>, vector<1x16x16x4xf32>
    %37 = vector.shape_cast %36 : vector<1x16x16x4xf32> to vector<16x16x4xf32>
    %38 = vector.extract_strided_slice %0 {offsets = [3, 0, 0], sizes = [1, 1, 4], strides = [1, 1, 1]} : vector<9x1x4xf32> to vector<1x1x4xf32>
    %39 = vector.shape_cast %38 : vector<1x1x4xf32> to vector<1x4xf32>
    %40 = vector.shape_cast %39 : vector<1x4xf32> to vector<1x1x4xf32>
    %41 = vector.broadcast %40 : vector<1x1x4xf32> to vector<16x16x4xf32>
    %42 = arith.mulf %37, %41 : vector<16x16x4xf32>
    %43 = arith.addf %33, %42 : vector<16x16x4xf32>
    %c1_i32_14 = arith.constant 1 : i32
    %44 = arith.addi %2, %c1_i32_14 : i32
    %c0_15 = arith.constant 0 : index
    %45 = arith.index_cast %44 : i32 to index
    %c1_16 = arith.constant 1 : index
    %c0_17 = arith.constant 0 : index
    %46 = vector.load %arg2[%c0_15, %45, %c1_16, %c0_17] : memref<1x18x18x4xf32, #tpu.memory_space<vmem>>, vector<1x16x16x4xf32>
    %47 = vector.shape_cast %46 : vector<1x16x16x4xf32> to vector<16x16x4xf32>
    %48 = vector.extract_strided_slice %0 {offsets = [4, 0, 0], sizes = [1, 1, 4], strides = [1, 1, 1]} : vector<9x1x4xf32> to vector<1x1x4xf32>
    %49 = vector.shape_cast %48 : vector<1x1x4xf32> to vector<1x4xf32>
    %50 = vector.shape_cast %49 : vector<1x4xf32> to vector<1x1x4xf32>
    %51 = vector.broadcast %50 : vector<1x1x4xf32> to vector<16x16x4xf32>
    %52 = arith.mulf %47, %51 : vector<16x16x4xf32>
    %53 = arith.addf %43, %52 : vector<16x16x4xf32>
    %c1_i32_18 = arith.constant 1 : i32
    %54 = arith.addi %2, %c1_i32_18 : i32
    %c0_19 = arith.constant 0 : index
    %55 = arith.index_cast %54 : i32 to index
    %c2_20 = arith.constant 2 : index
    %c0_21 = arith.constant 0 : index
    %56 = vector.load %arg2[%c0_19, %55, %c2_20, %c0_21] : memref<1x18x18x4xf32, #tpu.memory_space<vmem>>, vector<1x16x16x4xf32>
    %57 = vector.shape_cast %56 : vector<1x16x16x4xf32> to vector<16x16x4xf32>
    %58 = vector.extract_strided_slice %0 {offsets = [5, 0, 0], sizes = [1, 1, 4], strides = [1, 1, 1]} : vector<9x1x4xf32> to vector<1x1x4xf32>
    %59 = vector.shape_cast %58 : vector<1x1x4xf32> to vector<1x4xf32>
    %60 = vector.shape_cast %59 : vector<1x4xf32> to vector<1x1x4xf32>
    %61 = vector.broadcast %60 : vector<1x1x4xf32> to vector<16x16x4xf32>
    %62 = arith.mulf %57, %61 : vector<16x16x4xf32>
    %63 = arith.addf %53, %62 : vector<16x16x4xf32>
    %c2_i32 = arith.constant 2 : i32
    %64 = arith.addi %2, %c2_i32 : i32
    %c0_22 = arith.constant 0 : index
    %65 = arith.index_cast %64 : i32 to index
    %c0_23 = arith.constant 0 : index
    %c0_24 = arith.constant 0 : index
    %66 = vector.load %arg2[%c0_22, %65, %c0_23, %c0_24] : memref<1x18x18x4xf32, #tpu.memory_space<vmem>>, vector<1x16x16x4xf32>
    %67 = vector.shape_cast %66 : vector<1x16x16x4xf32> to vector<16x16x4xf32>
    %68 = vector.extract_strided_slice %0 {offsets = [6, 0, 0], sizes = [1, 1, 4], strides = [1, 1, 1]} : vector<9x1x4xf32> to vector<1x1x4xf32>
    %69 = vector.shape_cast %68 : vector<1x1x4xf32> to vector<1x4xf32>
    %70 = vector.shape_cast %69 : vector<1x4xf32> to vector<1x1x4xf32>
    %71 = vector.broadcast %70 : vector<1x1x4xf32> to vector<16x16x4xf32>
    %72 = arith.mulf %67, %71 : vector<16x16x4xf32>
    %73 = arith.addf %63, %72 : vector<16x16x4xf32>
    %c2_i32_25 = arith.constant 2 : i32
    %74 = arith.addi %2, %c2_i32_25 : i32
    %c0_26 = arith.constant 0 : index
    %75 = arith.index_cast %74 : i32 to index
    %c1_27 = arith.constant 1 : index
    %c0_28 = arith.constant 0 : index
    %76 = vector.load %arg2[%c0_26, %75, %c1_27, %c0_28] : memref<1x18x18x4xf32, #tpu.memory_space<vmem>>, vector<1x16x16x4xf32>
    %77 = vector.shape_cast %76 : vector<1x16x16x4xf32> to vector<16x16x4xf32>
    %78 = vector.extract_strided_slice %0 {offsets = [7, 0, 0], sizes = [1, 1, 4], strides = [1, 1, 1]} : vector<9x1x4xf32> to vector<1x1x4xf32>
    %79 = vector.shape_cast %78 : vector<1x1x4xf32> to vector<1x4xf32>
    %80 = vector.shape_cast %79 : vector<1x4xf32> to vector<1x1x4xf32>
    %81 = vector.broadcast %80 : vector<1x1x4xf32> to vector<16x16x4xf32>
    %82 = arith.mulf %77, %81 : vector<16x16x4xf32>
    %83 = arith.addf %73, %82 : vector<16x16x4xf32>
    %c2_i32_29 = arith.constant 2 : i32
    %84 = arith.addi %2, %c2_i32_29 : i32
    %c0_30 = arith.constant 0 : index
    %85 = arith.index_cast %84 : i32 to index
    %c2_31 = arith.constant 2 : index
    %c0_32 = arith.constant 0 : index
    %86 = vector.load %arg2[%c0_30, %85, %c2_31, %c0_32] : memref<1x18x18x4xf32, #tpu.memory_space<vmem>>, vector<1x16x16x4xf32>
    %87 = vector.shape_cast %86 : vector<1x16x16x4xf32> to vector<16x16x4xf32>
    %88 = vector.extract_strided_slice %0 {offsets = [8, 0, 0], sizes = [1, 1, 4], strides = [1, 1, 1]} : vector<9x1x4xf32> to vector<1x1x4xf32>
    %89 = vector.shape_cast %88 : vector<1x1x4xf32> to vector<1x4xf32>
    %90 = vector.shape_cast %89 : vector<1x4xf32> to vector<1x1x4xf32>
    %91 = vector.broadcast %90 : vector<1x1x4xf32> to vector<16x16x4xf32>
    %92 = arith.mulf %87, %91 : vector<16x16x4xf32>
    %93 = arith.addf %83, %92 : vector<16x16x4xf32>
    %94 = vector.shape_cast %93 : vector<16x16x4xf32> to vector<256x4xf32>
    %cst_33 = arith.constant dense<0.000000e+00> : vector<4xf32>
    %95 = vector.multi_reduction <add>, %94, %cst_33 [0] : vector<256x4xf32> to vector<4xf32>
    %96 = vector.shape_cast %95 : vector<4xf32> to vector<1x4xf32>
    %c0_34 = arith.constant 0 : index
    %c0_35 = arith.constant 0 : index
    %c0_36 = arith.constant 0 : index
    %c0_37 = arith.constant 0 : index
    %97 = vector.load %arg4[%c0_34, %c0_35, %c0_36, %c0_37] : memref<1x1x1x4xf32, #tpu.memory_space<vmem>>, vector<1x1x1x4xf32>
    %98 = vector.shape_cast %97 : vector<1x1x1x4xf32> to vector<1x4xf32>
    %99 = vector.shape_cast %96 : vector<1x4xf32> to vector<1x1x1x4xf32>
    tpu.vector_store %arg4[%c0_34, %c0_35, %c0_36, %c0_37], %99 {strides = array<i32>} : memref<1x1x1x4xf32, #tpu.memory_space<vmem>>, vector<1x1x1x4xf32>,
    %100 = arith.mulf %94, %94 : vector<256x4xf32>
    %cst_38 = arith.constant dense<0.000000e+00> : vector<4xf32>
    %101 = vector.multi_reduction <add>, %100, %cst_38 [0] : vector<256x4xf32> to vector<4xf32>
    %102 = vector.shape_cast %101 : vector<4xf32> to vector<1x4xf32>
    %c0_39 = arith.constant 0 : index
    %c0_40 = arith.constant 0 : index
    %c0_41 = arith.constant 0 : index
    %c0_42 = arith.constant 0 : index
    %103 = vector.load %arg5[%c0_39, %c0_40, %c0_41, %c0_42] : memref<1x1x1x4xf32, #tpu.memory_space<vmem>>, vector<1x1x1x4xf32>
    %104 = vector.shape_cast %103 : vector<1x1x1x4xf32> to vector<1x4xf32>
    %105 = vector.shape_cast %102 : vector<1x4xf32> to vector<1x1x1x4xf32>
    tpu.vector_store %arg5[%c0_39, %c0_40, %c0_41, %c0_42], %105 {strides = array<i32>} : memref<1x1x1x4xf32, #tpu.memory_space<vmem>>, vector<1x1x1x4xf32>,
    return
  }
  func.func @transform_0(%arg0: i32, %arg1: i32) -> (i32, i32, i32, i32) {
    %c0_i32 = arith.constant 0 : i32
    %c0_i32_0 = arith.constant 0 : i32
    %c0_i32_1 = arith.constant 0 : i32
    %c0_i32_2 = arith.constant 0 : i32
    return %arg0, %c0_i32, %c0_i32_0, %c0_i32_1 : i32, i32, i32, i32
  }
  func.func @transform_1(%arg0: i32, %arg1: i32) -> (i32, i32, i32) {
    %c0_i32 = arith.constant 0 : i32
    %c0_i32_0 = arith.constant 0 : i32
    %c0_i32_1 = arith.constant 0 : i32
    %c0_i32_2 = arith.constant 0 : i32
    return %c0_i32, %c0_i32_0, %c0_i32_1 : i32, i32, i32
  }
  func.func @transform_2(%arg0: i32, %arg1: i32) -> (i32, i32, i32, i32) {
    %c0_i32 = arith.constant 0 : i32
    %c0_i32_0 = arith.constant 0 : i32
    %c0_i32_1 = arith.constant 0 : i32
    return %arg0, %arg1, %c0_i32, %c0_i32_0 : i32, i32, i32, i32
  }
  func.func @transform_3(%arg0: i32, %arg1: i32) -> (i32, i32, i32, i32) {
    %c0_i32 = arith.constant 0 : i32
    %c0_i32_0 = arith.constant 0 : i32
    %c0_i32_1 = arith.constant 0 : i32
    return %arg0, %arg1, %c0_i32, %c0_i32_0 : i32, i32, i32, i32
  }
}

module attributes {stable_mosaic.version = 11 : i64} {
  func.func @_fused_kernel(%arg0: i32, %arg1: i32, %arg2: memref<1x18x18x4xf32, #tpu.memory_space<vmem>>, %arg3: memref<9x1x4xf32, #tpu.memory_space<vmem>>, %arg4: memref<1x1x4xf32, #tpu.memory_space<vmem>>, %arg5: memref<8x4xf32, #tpu.memory_space<vmem>>, %arg6: memref<1x8x256xf32, #tpu.memory_space<vmem>>) attributes {dimension_semantics = [#tpu.dimension_semantics<parallel>, #tpu.dimension_semantics<parallel>], iteration_bounds = array<i64: 2, 1>, scalar_prefetch = 0 : i64, scratch_operands = 0 : i64, tpu.core_type = #tpu.core_type<tc>, window_params = [{transform_indices = @transform_0, window_bounds = array<i64: 1, 18, 18, 4>}, {pipeline_mode = #tpu.pipeline_mode<synchronous>, transform_indices = @transform_1, window_bounds = array<i64: 9, 1, 4>}, {pipeline_mode = #tpu.pipeline_mode<synchronous>, transform_indices = @transform_2, window_bounds = array<i64: 1, 1, 4>}, {pipeline_mode = #tpu.pipeline_mode<synchronous>, transform_indices = @transform_3, window_bounds = array<i64: 8, 4>}, {transform_indices = @transform_4, window_bounds = array<i64: 1, 8, 256>}]} {
    %c0 = arith.constant 0 : index
    %c0_0 = arith.constant 0 : index
    %c0_1 = arith.constant 0 : index
    %0 = vector.load %arg3[%c0, %c0_0, %c0_1] : memref<9x1x4xf32, #tpu.memory_space<vmem>>, vector<9x1x4xf32>
    %c16_i32 = arith.constant 16 : i32
    %1 = arith.muli %arg1, %c16_i32 : i32
    %2 = tpu.assume_multiple %1, 16 : i32
    %cst = arith.constant 0.000000e+00 : f32
    %3 = vector.broadcast %cst : f32 to vector<16x16x4xf32>
    %c0_i32 = arith.constant 0 : i32
    %4 = arith.addi %2, %c0_i32 : i32
    %c0_2 = arith.constant 0 : index
    %5 = arith.index_cast %4 : i32 to index
    %c0_3 = arith.constant 0 : index
    %c0_4 = arith.constant 0 : index
    %6 = vector.load %arg2[%c0_2, %5, %c0_3, %c0_4] : memref<1x18x18x4xf32, #tpu.memory_space<vmem>>, vector<1x16x16x4xf32>
    %7 = vector.shape_cast %6 : vector<1x16x16x4xf32> to vector<16x16x4xf32>
    %8 = vector.extract_strided_slice %0 {offsets = [0, 0, 0], sizes = [1, 1, 4], strides = [1, 1, 1]} : vector<9x1x4xf32> to vector<1x1x4xf32>
    %9 = vector.shape_cast %8 : vector<1x1x4xf32> to vector<1x4xf32>
    %10 = vector.shape_cast %9 : vector<1x4xf32> to vector<1x1x4xf32>
    %11 = vector.broadcast %10 : vector<1x1x4xf32> to vector<16x16x4xf32>
    %12 = arith.mulf %7, %11 : vector<16x16x4xf32>
    %13 = arith.addf %3, %12 : vector<16x16x4xf32>
    %c0_i32_5 = arith.constant 0 : i32
    %14 = arith.addi %2, %c0_i32_5 : i32
    %c0_6 = arith.constant 0 : index
    %15 = arith.index_cast %14 : i32 to index
    %c1 = arith.constant 1 : index
    %c0_7 = arith.constant 0 : index
    %16 = vector.load %arg2[%c0_6, %15, %c1, %c0_7] : memref<1x18x18x4xf32, #tpu.memory_space<vmem>>, vector<1x16x16x4xf32>
    %17 = vector.shape_cast %16 : vector<1x16x16x4xf32> to vector<16x16x4xf32>
    %18 = vector.extract_strided_slice %0 {offsets = [1, 0, 0], sizes = [1, 1, 4], strides = [1, 1, 1]} : vector<9x1x4xf32> to vector<1x1x4xf32>
    %19 = vector.shape_cast %18 : vector<1x1x4xf32> to vector<1x4xf32>
    %20 = vector.shape_cast %19 : vector<1x4xf32> to vector<1x1x4xf32>
    %21 = vector.broadcast %20 : vector<1x1x4xf32> to vector<16x16x4xf32>
    %22 = arith.mulf %17, %21 : vector<16x16x4xf32>
    %23 = arith.addf %13, %22 : vector<16x16x4xf32>
    %c0_i32_8 = arith.constant 0 : i32
    %24 = arith.addi %2, %c0_i32_8 : i32
    %c0_9 = arith.constant 0 : index
    %25 = arith.index_cast %24 : i32 to index
    %c2 = arith.constant 2 : index
    %c0_10 = arith.constant 0 : index
    %26 = vector.load %arg2[%c0_9, %25, %c2, %c0_10] : memref<1x18x18x4xf32, #tpu.memory_space<vmem>>, vector<1x16x16x4xf32>
    %27 = vector.shape_cast %26 : vector<1x16x16x4xf32> to vector<16x16x4xf32>
    %28 = vector.extract_strided_slice %0 {offsets = [2, 0, 0], sizes = [1, 1, 4], strides = [1, 1, 1]} : vector<9x1x4xf32> to vector<1x1x4xf32>
    %29 = vector.shape_cast %28 : vector<1x1x4xf32> to vector<1x4xf32>
    %30 = vector.shape_cast %29 : vector<1x4xf32> to vector<1x1x4xf32>
    %31 = vector.broadcast %30 : vector<1x1x4xf32> to vector<16x16x4xf32>
    %32 = arith.mulf %27, %31 : vector<16x16x4xf32>
    %33 = arith.addf %23, %32 : vector<16x16x4xf32>
    %c1_i32 = arith.constant 1 : i32
    %34 = arith.addi %2, %c1_i32 : i32
    %c0_11 = arith.constant 0 : index
    %35 = arith.index_cast %34 : i32 to index
    %c0_12 = arith.constant 0 : index
    %c0_13 = arith.constant 0 : index
    %36 = vector.load %arg2[%c0_11, %35, %c0_12, %c0_13] : memref<1x18x18x4xf32, #tpu.memory_space<vmem>>, vector<1x16x16x4xf32>
    %37 = vector.shape_cast %36 : vector<1x16x16x4xf32> to vector<16x16x4xf32>
    %38 = vector.extract_strided_slice %0 {offsets = [3, 0, 0], sizes = [1, 1, 4], strides = [1, 1, 1]} : vector<9x1x4xf32> to vector<1x1x4xf32>
    %39 = vector.shape_cast %38 : vector<1x1x4xf32> to vector<1x4xf32>
    %40 = vector.shape_cast %39 : vector<1x4xf32> to vector<1x1x4xf32>
    %41 = vector.broadcast %40 : vector<1x1x4xf32> to vector<16x16x4xf32>
    %42 = arith.mulf %37, %41 : vector<16x16x4xf32>
    %43 = arith.addf %33, %42 : vector<16x16x4xf32>
    %c1_i32_14 = arith.constant 1 : i32
    %44 = arith.addi %2, %c1_i32_14 : i32
    %c0_15 = arith.constant 0 : index
    %45 = arith.index_cast %44 : i32 to index
    %c1_16 = arith.constant 1 : index
    %c0_17 = arith.constant 0 : index
    %46 = vector.load %arg2[%c0_15, %45, %c1_16, %c0_17] : memref<1x18x18x4xf32, #tpu.memory_space<vmem>>, vector<1x16x16x4xf32>
    %47 = vector.shape_cast %46 : vector<1x16x16x4xf32> to vector<16x16x4xf32>
    %48 = vector.extract_strided_slice %0 {offsets = [4, 0, 0], sizes = [1, 1, 4], strides = [1, 1, 1]} : vector<9x1x4xf32> to vector<1x1x4xf32>
    %49 = vector.shape_cast %48 : vector<1x1x4xf32> to vector<1x4xf32>
    %50 = vector.shape_cast %49 : vector<1x4xf32> to vector<1x1x4xf32>
    %51 = vector.broadcast %50 : vector<1x1x4xf32> to vector<16x16x4xf32>
    %52 = arith.mulf %47, %51 : vector<16x16x4xf32>
    %53 = arith.addf %43, %52 : vector<16x16x4xf32>
    %c1_i32_18 = arith.constant 1 : i32
    %54 = arith.addi %2, %c1_i32_18 : i32
    %c0_19 = arith.constant 0 : index
    %55 = arith.index_cast %54 : i32 to index
    %c2_20 = arith.constant 2 : index
    %c0_21 = arith.constant 0 : index
    %56 = vector.load %arg2[%c0_19, %55, %c2_20, %c0_21] : memref<1x18x18x4xf32, #tpu.memory_space<vmem>>, vector<1x16x16x4xf32>
    %57 = vector.shape_cast %56 : vector<1x16x16x4xf32> to vector<16x16x4xf32>
    %58 = vector.extract_strided_slice %0 {offsets = [5, 0, 0], sizes = [1, 1, 4], strides = [1, 1, 1]} : vector<9x1x4xf32> to vector<1x1x4xf32>
    %59 = vector.shape_cast %58 : vector<1x1x4xf32> to vector<1x4xf32>
    %60 = vector.shape_cast %59 : vector<1x4xf32> to vector<1x1x4xf32>
    %61 = vector.broadcast %60 : vector<1x1x4xf32> to vector<16x16x4xf32>
    %62 = arith.mulf %57, %61 : vector<16x16x4xf32>
    %63 = arith.addf %53, %62 : vector<16x16x4xf32>
    %c2_i32 = arith.constant 2 : i32
    %64 = arith.addi %2, %c2_i32 : i32
    %c0_22 = arith.constant 0 : index
    %65 = arith.index_cast %64 : i32 to index
    %c0_23 = arith.constant 0 : index
    %c0_24 = arith.constant 0 : index
    %66 = vector.load %arg2[%c0_22, %65, %c0_23, %c0_24] : memref<1x18x18x4xf32, #tpu.memory_space<vmem>>, vector<1x16x16x4xf32>
    %67 = vector.shape_cast %66 : vector<1x16x16x4xf32> to vector<16x16x4xf32>
    %68 = vector.extract_strided_slice %0 {offsets = [6, 0, 0], sizes = [1, 1, 4], strides = [1, 1, 1]} : vector<9x1x4xf32> to vector<1x1x4xf32>
    %69 = vector.shape_cast %68 : vector<1x1x4xf32> to vector<1x4xf32>
    %70 = vector.shape_cast %69 : vector<1x4xf32> to vector<1x1x4xf32>
    %71 = vector.broadcast %70 : vector<1x1x4xf32> to vector<16x16x4xf32>
    %72 = arith.mulf %67, %71 : vector<16x16x4xf32>
    %73 = arith.addf %63, %72 : vector<16x16x4xf32>
    %c2_i32_25 = arith.constant 2 : i32
    %74 = arith.addi %2, %c2_i32_25 : i32
    %c0_26 = arith.constant 0 : index
    %75 = arith.index_cast %74 : i32 to index
    %c1_27 = arith.constant 1 : index
    %c0_28 = arith.constant 0 : index
    %76 = vector.load %arg2[%c0_26, %75, %c1_27, %c0_28] : memref<1x18x18x4xf32, #tpu.memory_space<vmem>>, vector<1x16x16x4xf32>
    %77 = vector.shape_cast %76 : vector<1x16x16x4xf32> to vector<16x16x4xf32>
    %78 = vector.extract_strided_slice %0 {offsets = [7, 0, 0], sizes = [1, 1, 4], strides = [1, 1, 1]} : vector<9x1x4xf32> to vector<1x1x4xf32>
    %79 = vector.shape_cast %78 : vector<1x1x4xf32> to vector<1x4xf32>
    %80 = vector.shape_cast %79 : vector<1x4xf32> to vector<1x1x4xf32>
    %81 = vector.broadcast %80 : vector<1x1x4xf32> to vector<16x16x4xf32>
    %82 = arith.mulf %77, %81 : vector<16x16x4xf32>
    %83 = arith.addf %73, %82 : vector<16x16x4xf32>
    %c2_i32_29 = arith.constant 2 : i32
    %84 = arith.addi %2, %c2_i32_29 : i32
    %c0_30 = arith.constant 0 : index
    %85 = arith.index_cast %84 : i32 to index
    %c2_31 = arith.constant 2 : index
    %c0_32 = arith.constant 0 : index
    %86 = vector.load %arg2[%c0_30, %85, %c2_31, %c0_32] : memref<1x18x18x4xf32, #tpu.memory_space<vmem>>, vector<1x16x16x4xf32>
    %87 = vector.shape_cast %86 : vector<1x16x16x4xf32> to vector<16x16x4xf32>
    %88 = vector.extract_strided_slice %0 {offsets = [8, 0, 0], sizes = [1, 1, 4], strides = [1, 1, 1]} : vector<9x1x4xf32> to vector<1x1x4xf32>
    %89 = vector.shape_cast %88 : vector<1x1x4xf32> to vector<1x4xf32>
    %90 = vector.shape_cast %89 : vector<1x4xf32> to vector<1x1x4xf32>
    %91 = vector.broadcast %90 : vector<1x1x4xf32> to vector<16x16x4xf32>
    %92 = arith.mulf %87, %91 : vector<16x16x4xf32>
    %93 = arith.addf %83, %92 : vector<16x16x4xf32>
    %c0_33 = arith.constant 0 : index
    %c0_34 = arith.constant 0 : index
    %c0_35 = arith.constant 0 : index
    %94 = vector.load %arg4[%c0_33, %c0_34, %c0_35] : memref<1x1x4xf32, #tpu.memory_space<vmem>>, vector<1x1x4xf32>
    %95 = vector.broadcast %94 : vector<1x1x4xf32> to vector<16x16x4xf32>
    %96 = arith.addf %93, %95 : vector<16x16x4xf32>
    %cst_36 = arith.constant 0.000000e+00 : f32
    %97 = vector.broadcast %cst_36 : f32 to vector<16x16x4xf32>
    %98 = arith.maximumf %96, %97 : vector<16x16x4xf32>
    %99 = vector.shape_cast %98 : vector<16x16x4xf32> to vector<256x4xf32>
    %c0_37 = arith.constant 0 : index
    %c0_38 = arith.constant 0 : index
    %100 = vector.load %arg5[%c0_37, %c0_38] : memref<8x4xf32, #tpu.memory_space<vmem>>, vector<8x4xf32>
    %cst_39 = arith.constant dense<0.000000e+00> : vector<8x256xf32>
    %101 = tpu.matmul %100, %99, %cst_39 {dimension_numbers = #tpu.dot_dimension_numbers<[1], [1], [0], [0], [0, 0, 1, 0], [], []>} : vector<8x4xf32>, vector<256x4xf32>, vector<8x256xf32> -> vector<8x256xf32>
    %c0_40 = arith.constant 0 : index
    %c0_41 = arith.constant 0 : index
    %c0_42 = arith.constant 0 : index
    %102 = vector.load %arg6[%c0_40, %c0_41, %c0_42] : memref<1x8x256xf32, #tpu.memory_space<vmem>>, vector<1x8x256xf32>
    %103 = vector.shape_cast %102 : vector<1x8x256xf32> to vector<8x256xf32>
    %104 = vector.shape_cast %101 : vector<8x256xf32> to vector<1x8x256xf32>
    tpu.vector_store %arg6[%c0_40, %c0_41, %c0_42], %104 {strides = array<i32>} : memref<1x8x256xf32, #tpu.memory_space<vmem>>, vector<1x8x256xf32>,
    return
  }
  func.func @transform_0(%arg0: i32, %arg1: i32) -> (i32, i32, i32, i32) {
    %c0_i32 = arith.constant 0 : i32
    %c0_i32_0 = arith.constant 0 : i32
    %c0_i32_1 = arith.constant 0 : i32
    %c0_i32_2 = arith.constant 0 : i32
    return %arg0, %c0_i32, %c0_i32_0, %c0_i32_1 : i32, i32, i32, i32
  }
  func.func @transform_1(%arg0: i32, %arg1: i32) -> (i32, i32, i32) {
    %c0_i32 = arith.constant 0 : i32
    %c0_i32_0 = arith.constant 0 : i32
    %c0_i32_1 = arith.constant 0 : i32
    %c0_i32_2 = arith.constant 0 : i32
    return %c0_i32, %c0_i32_0, %c0_i32_1 : i32, i32, i32
  }
  func.func @transform_2(%arg0: i32, %arg1: i32) -> (i32, i32, i32) {
    %c0_i32 = arith.constant 0 : i32
    %c0_i32_0 = arith.constant 0 : i32
    %c0_i32_1 = arith.constant 0 : i32
    %c0_i32_2 = arith.constant 0 : i32
    return %c0_i32, %c0_i32_0, %c0_i32_1 : i32, i32, i32
  }
  func.func @transform_3(%arg0: i32, %arg1: i32) -> (i32, i32) {
    %c0_i32 = arith.constant 0 : i32
    %c0_i32_0 = arith.constant 0 : i32
    %c0_i32_1 = arith.constant 0 : i32
    return %c0_i32, %c0_i32_0 : i32, i32
  }
  func.func @transform_4(%arg0: i32, %arg1: i32) -> (i32, i32, i32) {
    %c0_i32 = arith.constant 0 : i32
    %c0_i32_0 = arith.constant 0 : i32
    return %arg0, %c0_i32, %arg1 : i32, i32, i32
  }
}

</mosaic_0001>

<bundles_post_ra>
// kernel: mobile_conv_drop_activate.2
= control target key start
LH: loop header
LB: loop body
LE: loop exit
PB: predicated region body
PF: predicated region fallthrough
CT: control target
= control target key end

     0   :  { %s1675_s12 = smov 0   ;;  %s1677_s13 = smov 0   ;;  %s3336_s0 = inlined_call_operand.vmem [shape: f32[2,18,18,4], index: 0, kind: input, shape index: {}]   ;;  %s3337_s1 = inlined_call_operand.vmem [shape: f32[9,1,4], index: 1, kind: input, shape index: {}]   ;;  %s3338_s2 = inlined_call_operand.vmem [shape: f32[2,1,1,4], index: 2, kind: output, shape index: {0}]   ;;  %s3339_s3 = inlined_call_operand.vmem [shape: f32[2,1,1,4], index: 3, kind: output, shape index: {1}]  }
   0x1   :  { %s1679_s14 = smov 0  }
   0x2 LB: > { %s26_s15 = sadd.s32 1, %s1649_s13  ;;  %p1401_p0 = scmp.ge.s32.totalorder %s1653_s14, 1  ;;  %s1653_s14 = sphi %s1679_s14, %s14_s14   ;;  %s1649_s13 = sphi %s1677_s13, %s3759_s13   ;;  %s1645_s12 = sphi %s1675_s12, %s3758_s12  }
   0x3   : > { %p28_p1 = scmp.ge.s32.totalorder %s26_s15, 2  ;;  %p156_p2 = scmp.lt.s32.totalorder %s1653_s14, 3 }
   0x5   : > { %s3761_s15 = smov (%p28_p1, %s26_s15), 0  ;;  %p157_p3 = pnand %p1401_p0, %p156_p2 }
   0x7   : > { %160 = sbr.rel (%p157_p3) target bundleno = 284 (0x11c), region = 28 }
   0xc   : > { %p187_p4 = scmp.lt.s32.totalorder %s1645_s12, 1  ;;  %v1706_v2 = vld [vmem:[%s3337_s1] ss:$0 sm:$0xff]  ;;  %v1771_v23 = vld [vmem:[%s3337_s1 + $0x1] ss:$0 sm:$0xff]  ;;  %vm1113_vm0 = vcmask 31744  }
   0xd   : > { %vm1183_vm1 = vcmask 24576  }
   0xe   : > { %s3763_s12 = smov (!%p187_p4, %s1645_s12), 1 }
   0xf   : > { %s1597_s16 = smul.u32 432, %s3763_s12  ;;  %s197_s17 = scalar_lea.vmem %s3338_s2, %s3763_s12 }
  0x10   : > { %s203_s20 = scalar_lea.vmem %s3339_s3, %s3763_s12 }
  0x11   : > { %s1699_s19 = scalar_lea.vmem %s3336_s0, %s1597_s16 }
  0x12   : > { %v216_v0 = vld [vmem:[%s1699_s19] sm:$0xff]  ;;  %v217_v1 = vld [vmem:[%s1699_s19 + $0x8] sm:$0xff]  ;;  %v1709_v3 = vld [vmem:[%s1699_s19 + $0x18] sm:$0xff] }
  0x13   : > { %3436 = vst [vmem:[#allocation2_spill] sm:$0xff] %v1709_v3  ;;  %v1712_v4 = vld [vmem:[%s1699_s19 + $0x20] sm:$0xff]  ;;  %v1715_v5 = vld [vmem:[%s1699_s19 + $0x30] sm:$0xff]  ;;  %v1718_v6 = vld [vmem:[%s1699_s19 + $0x38] sm:$0xff]  ;;  %v1763_v21 = vmul.f32 %v1706_v2, %v216_v0  ;;  %v1766_v22 = vmul.f32 %v1706_v2, %v217_v1  ;;  %v1784_v27 = vmul.f32 %v1706_v2, %v1709_v3 }
  0x14   : > { %3437 = vst [vmem:[#allocation3_spill] sm:$0xff] %v1712_v4  ;;  %v1721_v7 = vld [vmem:[%s1699_s19 + $0x48] sm:$0xff]  ;;  %v1724_v8 = vld [vmem:[%s1699_s19 + $0x50] sm:$0xff]  ;;  %v1727_v9 = vld [vmem:[%s1699_s19 + $0x60] sm:$0xff]  ;;  %v1788_v28 = vmul.f32 %v1706_v2, %v1712_v4  ;;  %v1792_v29 = vmul.f32 %v1706_v2, %v1715_v5  ;;  %v1796_v30 = vmul.f32 %v1706_v2, %v1718_v6 }
  0x15   : > { %3438 = vst [vmem:[#allocation4_spill] sm:$0xff] %v1715_v5  ;;  %v1730_v10 = vld [vmem:[%s1699_s19 + $0x68] sm:$0xff]  ;;  %v1733_v11 = vld [vmem:[%s1699_s19 + $0x78] sm:$0xff]  ;;  %v1736_v12 = vld [vmem:[%s1699_s19 + $0x80] sm:$0xff]  ;;  %v1809_v34 = vmul.f32 %v1706_v2, %v1721_v7  ;;  %v1813_v35 = vmul.f32 %v1706_v2, %v1724_v8  ;;  %v1817_v36 = vmul.f32 %v1706_v2, %v1727_v9 }
  0x16   : > { %3439 = vst [vmem:[#allocation5_spill] sm:$0xff] %v1718_v6  ;;  %v1739_v13 = vld [vmem:[%s1699_s19 + $0x90] sm:$0xff]  ;;  %v1742_v14 = vld [vmem:[%s1699_s19 + $0x98] sm:$0xff]  ;;  %v1745_v15 = vld [vmem:[%s1699_s19 + $0xa8] sm:$0xff]  ;;  %v1821_v37 = vmul.f32 %v1706_v2, %v1730_v10  ;;  %v1831_v40 = vmul.f32 %v1706_v2, %v1733_v11  ;;  %v1835_v41 = vmul.f32 %v1706_v2, %v1736_v12 }
  0x17   : > { %3440 = vst [vmem:[#allocation6_spill] sm:$0xff] %v1721_v7  ;;  %v1748_v16 = vld [vmem:[%s1699_s19 + $0xb0] sm:$0xff]  ;;  %v1751_v17 = vld [vmem:[%s1699_s19 + $0xc0] sm:$0xff]  ;;  %v1754_v18 = vld [vmem:[%s1699_s19 + $0xc8] sm:$0xff]  ;;  %v1839_v42 = vmul.f32 %v1706_v2, %v1739_v13  ;;  %v1843_v43 = vmul.f32 %v1706_v2, %v1742_v14  ;;  %v1854_v47 = vmul.f32 %v1706_v2, %v1745_v15 }
  0x18   : > { %3441 = vst [vmem:[#allocation7_spill] sm:$0xff] %v1724_v8  ;;  %v1757_v19 = vld [vmem:[%s1699_s19 + $0xd8] sm:$0xff]  ;;  %v1760_v20 = vld [vmem:[%s1699_s19 + $0xe0] sm:$0xff]  ;;  %v1774_v24 = vld [vmem:[%s1699_s19 + $0xf0] sm:$0xff]  ;;  %v1858_v48 = vmul.f32 %v1706_v2, %v1748_v16  ;;  %v1862_v49 = vmul.f32 %v1706_v2, %v1751_v17  ;;  %v1866_v50 = vmul.f32 %v1706_v2, %v1754_v18 }
  0x19   : > { %3442 = vst [vmem:[#allocation8_spill] sm:$0xff] %v1727_v9  ;;  %v1777_v25 = vld [vmem:[%s1699_s19 + $0xf8] sm:$0xff]  ;;  %v1780_v26 = vld [vmem:[%s1699_s19 + $0x108] sm:$0xff]  ;;  %v1799_v31 = vld [vmem:[%s1699_s19 + $0x110] sm:$0xff]  ;;  %v1877_v54 = vmul.f32 %v1706_v2, %v1757_v19  ;;  %v1881_v55 = vmul.f32 %v1706_v2, %v1760_v20  ;;  %v1885_v56 = vmul.f32 %v1706_v2, %v1774_v24 }
  0x1a   : > { %3443 = vst [vmem:[#allocation9_spill] sm:$0xff] %v1730_v10  ;;  %v1802_v32 = vld [vmem:[%s1699_s19 + $0x120] sm:$0xff]  ;;  %v1805_v33 = vld [vmem:[%s1699_s19 + $0x128] sm:$0xff]  ;;  %v1824_v38 = vld [vmem:[%s1699_s19 + $0x138] sm:$0xff]  ;;  %v1889_v57 = vmul.f32 %v1706_v2, %v1777_v25  ;;  %v1896_v59 = vmul.f32 %v1706_v2, %v1780_v26  ;;  %v1900_v60 = vmul.f32 %v1706_v2, %v1799_v31 }
  0x1b   : > { %3444 = vst [vmem:[#allocation10_spill] sm:$0xff] %v1733_v11  ;;  %v1827_v39 = vld [vmem:[%s1699_s19 + $0x140] sm:$0xff]  ;;  %v1847_v45 = vld [vmem:[%s1699_s19 + $0x150] sm:$0xff]  ;;  %v1850_v46 = vld [vmem:[%s1699_s19 + $0x158] sm:$0xff]  ;;  %v1904_v61 = vmul.f32 %v1706_v2, %v1802_v32 }
  0x1c   : > { %3445 = vst [vmem:[#allocation11_spill] sm:$0xff] %v1736_v12  ;;  %v315_v44 = vld [vmem:[%s1699_s19 + $0x1] sm:$0xff]  ;;  %v316_v51 = vld [vmem:[%s1699_s19 + $0x9] sm:$0xff]  ;;  %v1892_v58 = vld [vmem:[%s1699_s19 + $0x19] sm:$0xff] }
  0x1d   : > { %3446 = vst [vmem:[#allocation12_spill] sm:$0xff] %v1739_v13  ;;  %v1870_v52 = vld [vmem:[%s1699_s19 + $0x168] sm:$0xff]  ;;  %v1873_v53 = vld [vmem:[%s1699_s19 + $0x170] sm:$0xff]  ;;  %v1913_v0 = vld [vmem:[%s1699_s19 + $0x39] sm:$0xff]  ;;  %v350_v1 = vmul.f32 %v1771_v23, %v315_v44 }
  0x1e   : > { %3447 = vst [vmem:[#allocation13_spill] sm:$0xff] %v1742_v14  ;;  %v1907_v62 = vld [vmem:[%s1699_s19 + $0x21] sm:$0xff]  ;;  %v1910_v63 = vld [vmem:[%s1699_s19 + $0x31] sm:$0xff]  ;;  %v1987_v13 = vld [vmem:[%s1699_s19 + $0xc9] sm:$0xff] }
  0x1f   : > { %3448 = vst [vmem:[#allocation14_spill] sm:$0xff] %v1745_v15  ;;  %v1935_v44 = vld [vmem:[%s1699_s19 + $0x61] sm:$0xff]  ;;  %v353_v15 = vmul.f32 %v1771_v23, %v1907_v62  ;;  %v354_v14 = vmul.f32 %v1771_v23, %v1910_v63  ;;  %v1999_v11 = vld [vmem:[%s1699_s19 + $0xd9] sm:$0xff]  ;;  %v2005_v9 = vld [vmem:[%s1699_s19 + $0xf1] sm:$0xff] }
  0x20   : > { %3449 = vst [vmem:[#allocation15_spill] sm:$0xff] %v1748_v16  ;;  %v1972_v16 = vld [vmem:[%s1699_s19 + $0xa9] sm:$0xff]  ;;  %v2002_v10 = vld [vmem:[%s1699_s19 + $0xe1] sm:$0xff]  ;;  %v2023_v7 = vld [vmem:[%s1699_s19 + $0x111] sm:$0xff] }
  0x21   : > { %3450 = vst [vmem:[#allocation16_spill] sm:$0xff] %v1751_v17  ;;  %v1957_v17 = vld [vmem:[%s1699_s19 + $0x81] sm:$0xff]  ;;  %v2020_v8 = vld [vmem:[%s1699_s19 + $0x109] sm:$0xff]  ;;  %v2041_v5 = vld [vmem:[%s1699_s19 + $0x139] sm:$0xff]  ;;  %v2050_v4 = vadd.f32 %v353_v15, %v1788_v28 }
  0x22   : > { %3451 = vst [vmem:[#allocation17_spill] sm:$0xff] %v1754_v18  ;;  %v1954_v18 = vld [vmem:[%s1699_s19 + $0x79] sm:$0xff]  ;;  %v2038_v6 = vld [vmem:[%s1699_s19 + $0x129] sm:$0xff]  ;;  %v2074_v28 = vld [vmem:[%s1699_s19 + $0x171] sm:$0xff] }
  0x23   : > { %3452 = vst [vmem:[#allocation18_spill] sm:$0xff] %v1757_v19  ;;  %v1951_v19 = vld [vmem:[%s1699_s19 + $0x69] sm:$0xff]  ;;  %v2059_v3 = vld [vmem:[%s1699_s19 + $0x159] sm:$0xff] }
  0x24   : > { %3453 = vst [vmem:[#allocation19_spill] sm:$0xff] %v1760_v20  ;;  %v1940_v20 = vmul.f32 %v1706_v2, %v1847_v45  ;;  %v2071_v15 = vld [vmem:[%s1699_s19 + $0x169] sm:$0xff] }
  0x25   : > { %3454 = vst [vmem:[#allocation20_spill] sm:$0xff] %v1774_v24  ;;  %v1932_v24 = vld [vmem:[%s1699_s19 + $0x51] sm:$0xff] }
  0x26   : > { %3455 = vst [vmem:[#allocation21_spill] sm:$0xff] %v1777_v25  ;;  %v1929_v25 = vld [vmem:[%s1699_s19 + $0x49] sm:$0xff] }
  0x27   : > { %3456 = vst [vmem:[#allocation22_spill] sm:$0xff] %v1780_v26  ;;  %v1926_v26 = vmul.f32 %v1706_v2, %v1827_v39  ;;  %v356_v12 = vmul.f32 %v1771_v23, %v1929_v25 }
  0x28   : > { %3457 = vst [vmem:[#allocation23_spill] sm:$0xff] %v1799_v31  ;;  %v1918_v31 = vmul.f32 %v1706_v2, %v1805_v33 }
  0x29   : > { %3458 = vst [vmem:[#allocation24_spill] sm:$0xff] %v1802_v32  ;;  %v1922_v32 = vmul.f32 %v1706_v2, %v1824_v38 }
  0x2a   : > { %3459 = vst [vmem:[#allocation25_spill] sm:$0xff] %v1805_v33  ;;  %v351_v33 = vmul.f32 %v1771_v23, %v316_v51  ;;  %v352_v51 = vmul.f32 %v1771_v23, %v1892_v58 }
  0x2b   : > { %3460 = vst [vmem:[#allocation26_spill] sm:$0xff] %v1824_v38  ;;  %v1944_v38 = vmul.f32 %v1706_v2, %v1850_v46 }
  0x2c   : > { %3461 = vst [vmem:[#allocation27_spill] sm:$0xff] %v1827_v39  ;;  %v1948_v39 = vmul.f32 %v1706_v2, %v1870_v52 }
  0x2d   : > { %3462 = vst [vmem:[#allocation28_spill] sm:$0xff] %v1847_v45  ;;  %v1963_v45 = vmul.f32 %v1706_v2, %v1873_v53  ;;  %v1981_v2 = vld [vmem:[%s1699_s19 + $0xb1] sm:$0xff] }
  0x2e   : > { %3463 = vst [vmem:[#allocation29_spill] sm:$0xff] %v1850_v46  ;;  %v1966_v46 = vld [vmem:[%s1699_s19 + $0x91] sm:$0xff] }
  0x2f   : > { %3464 = vst [vmem:[#allocation30_spill] sm:$0xff] %v1870_v52  ;;  %v1969_v52 = vld [vmem:[%s1699_s19 + $0x99] sm:$0xff] }
  0x30   : > { %3465 = vst [vmem:[#allocation31_spill] sm:$0xff] %v1873_v53  ;;  %v1984_v53 = vld [vmem:[%s1699_s19 + $0xc1] sm:$0xff] }
  0x31   : > { %3466 = vst [vmem:[#allocation32_spill] sm:$0xff] %v1892_v58  ;;  %v355_v58 = vmul.f32 %v1771_v23, %v1913_v0 }
  0x32   : > { %3467 = vst [vmem:[#allocation33_spill] sm:$0xff] %v1907_v62  ;;  %v357_v62 = vmul.f32 %v1771_v23, %v1932_v24 }
  0x33   : > { %3468 = vst [vmem:[#allocation34_spill] sm:$0xff] %v1910_v63  ;;  %v358_v63 = vmul.f32 %v1771_v23, %v1935_v44 }
  0x34   : > { %3469 = vst [vmem:[#allocation35_spill] sm:$0xff] %v1913_v0  ;;  %v1996_v0 = vadd.f32 %v350_v1, %v1763_v21  ;;  %v2014_v21 = vadd.f32 %v351_v33, %v1766_v22  ;;  %v2017_v1 = vld [vmem:[%s1699_s19 + $0xf9] sm:$0xff]  ;;  %v2032_v22 = vadd.f32 %v352_v51, %v1784_v27  ;;  %v2035_v33 = vld [vmem:[%s1699_s19 + $0x121] sm:$0xff]  ;;  %v2056_v51 = vld [vmem:[%s1699_s19 + $0x151] sm:$0xff] }
  0x35   : > { %3470 = vst [vmem:[#allocation36_spill] sm:$0xff] %v1929_v25  ;;  %v359_v25 = vmul.f32 %v1771_v23, %v1951_v19  ;;  %v2053_v27 = vld [vmem:[%s1699_s19 + $0x141] sm:$0xff] }
  0x36   : > { %3471 = vst [vmem:[#allocation37_spill] sm:$0xff] %v1932_v24  ;;  %v360_v24 = vmul.f32 %v1771_v23, %v1954_v18 }
  0x37   : > { %3472 = vst [vmem:[#allocation38_spill] sm:$0xff] %v1935_v44  ;;  %v361_v44 = vmul.f32 %v1771_v23, %v1957_v17 }
  0x38   : > { %3473 = vst [vmem:[#allocation39_spill] sm:$0xff] %v1951_v19  ;;  %v362_v19 = vmul.f32 %v1771_v23, %v1966_v46 }
  0x39   : > { %3474 = vst [vmem:[#allocation40_spill] sm:$0xff] %v1954_v18  ;;  %v363_v18 = vmul.f32 %v1771_v23, %v1969_v52 }
  0x3a   : > { %3475 = vst [vmem:[#allocation41_spill] sm:$0xff] %v1957_v17  ;;  %v364_v17 = vmul.f32 %v1771_v23, %v1972_v16 }
  0x3b   : > { %3476 = vst [vmem:[#allocation42_spill] sm:$0xff] %v1966_v46  ;;  %v365_v46 = vmul.f32 %v1771_v23, %v1981_v2 }
  0x3c   : > { %3477 = vst [vmem:[#allocation43_spill] sm:$0xff] %v1969_v52  ;;  %v366_v52 = vmul.f32 %v1771_v23, %v1984_v53 }
  0x3d   : > { %3478 = vst [vmem:[#allocation44_spill] sm:$0xff] %v1972_v16  ;;  %v367_v16 = vmul.f32 %v1771_v23, %v1987_v13 }
  0x3e   : > { %3479 = vst [vmem:[#allocation45_spill] sm:$0xff] %v1981_v2  ;;  %v369_v2 = vmul.f32 %v1771_v23, %v2002_v10 }
  0x3f   : > { %3480 = vst [vmem:[#allocation46_spill] sm:$0xff] %v1984_v53  ;;  %v370_v53 = vmul.f32 %v1771_v23, %v2005_v9 }
  0x40   : > { %3481 = vst [vmem:[#allocation47_spill] sm:$0xff] %v1987_v13  ;;  %v2068_v13 = vadd.f32 %v354_v14, %v1792_v29  ;;  %v374_v14 = vmul.f32 %v1771_v23, %v2035_v33  ;;  %v375_v29 = vmul.f32 %v1771_v23, %v2038_v6 }
  0x41   : > { %3482 = vst [vmem:[#allocation48_spill] sm:$0xff] %v1999_v11 }
  0x42   : > { %3483 = vst [vmem:[#allocation49_spill] sm:$0xff] %v2002_v10  ;;  %v2083_v10 = vadd.f32 %v355_v58, %v1796_v30  ;;  %v378_v30 = vmul.f32 %v1771_v23, %v2056_v51  ;;  %v379_v58 = vmul.f32 %v1771_v23, %v2059_v3 }
  0x43   : > { %3484 = vst [vmem:[#allocation50_spill] sm:$0xff] %v2005_v9  ;;  %v2092_v9 = vadd.f32 %v356_v12, %v1809_v34  ;;  %v381_v12 = vmul.f32 %v1771_v23, %v2074_v28  ;;  %v2108_v34 = vadd.f32 %v358_v63, %v1817_v36  ;;  %v415_v36 = vld [vmem:[%s1699_s19 + $0xa] sm:$0xff]  ;;  %v2214_v63 = vld [vmem:[%s1699_s19 + $0x9a] sm:$0xff] }
  0x44   : > { %3485 = vst [vmem:[#allocation51_spill] sm:$0xff] %v2014_v21  ;;  %v372_v21 = vmul.f32 %v1771_v23, %v2020_v8 }
  0x45   : > { %3486 = vst [vmem:[#allocation52_spill] sm:$0xff] %v2017_v1 }
  0x46   : > { %3487 = vst [vmem:[#allocation53_spill] sm:$0xff] %v2020_v8  ;;  %v2294_v8 = vld [vmem:[%s1699_s19 + $0x15a] sm:$0xff] }
  0x47   : > { %3488 = vst [vmem:[#allocation54_spill] sm:$0xff] %v2023_v7 }
  0x48   : > { %3489 = vst [vmem:[#allocation55_spill] sm:$0xff] %v2032_v22  ;;  %v368_v22 = vmul.f32 %v1771_v23, %v1999_v11  ;;  %v373_v11 = vmul.f32 %v1771_v23, %v2023_v7  ;;  %v377_v7 = vmul.f32 %v1771_v23, %v2053_v27 }
  0x49   : > { %3490 = vst [vmem:[#allocation56_spill] sm:$0xff] %v2035_v33  ;;  %v2101_v33 = vadd.f32 %v357_v62, %v1813_v35  ;;  %v2117_v35 = vadd.f32 %v361_v44, %v1835_v41  ;;  %v2120_v62 = vadd.f32 %v362_v19, %v1839_v42  ;;  %v2139_v19 = vadd.f32 %v366_v52, %v1862_v49  ;;  %v2148_v41 = vld [vmem:[%s1699_s19 + $0x22] sm:$0xff]  ;;  %v2151_v42 = vld [vmem:[%s1699_s19 + $0x32] sm:$0xff]  ;;  %v2217_v44 = vld [vmem:[%s1699_s19 + $0xaa] sm:$0xff] }
  0x4a   : > { %3491 = vst [vmem:[#allocation57_spill] sm:$0xff] %v2038_v6  ;;  %v380_v6 = vmul.f32 %v1771_v23, %v2071_v15  ;;  %v2172_v49 = vld [vmem:[%s1699_s19 + $0x52] sm:$0xff]  ;;  %v2178_v52 = vadd.f32 %v372_v21, %v1896_v59 }
  0x4b   : > { %3492 = vst [vmem:[#allocation58_spill] sm:$0xff] %v2041_v5 }
  0x4c   : > { %3493 = vst [vmem:[#allocation59_spill] sm:$0xff] %v2050_v4  ;;  %v371_v4 = vmul.f32 %v1771_v23, %v2017_v1  ;;  %v376_v1 = vmul.f32 %v1771_v23, %v2041_v5  ;;  %v414_v23 = vld [vmem:[%s1699_s19 + $0x2] sm:$0xff]  ;;  %v2291_v5 = vld [vmem:[%s1699_s19 + $0x152] sm:$0xff] }
  0x4d   : > { %3494 = vst [vmem:[#allocation60_spill] sm:$0xff] %v2053_v27 }
  0x4e   : > { %3495 = vst [vmem:[#allocation61_spill] sm:$0xff] %v2056_v51  ;;  %v2111_v51 = vadd.f32 %v359_v25, %v1821_v37  ;;  %v2130_v25 = vld [vmem:[%s3337_s1 + $0x2] ss:$0 sm:$0xff]  ;;  %v2136_v37 = vadd.f32 %v365_v46, %v1858_v48  ;;  %v2160_v46 = vadd.f32 %v369_v2, %v1881_v55  ;;  %v2169_v48 = vld [vmem:[%s1699_s19 + $0x4a] sm:$0xff]  ;;  %v2199_v59 = vadd.f32 %v376_v1, %v1922_v32  ;;  %v2237_v1 = vld [vmem:[%s1699_s19 + $0xda] sm:$0xff] }
  0x4f   : > { %3496 = vst [vmem:[#allocation62_spill] sm:$0xff] %v2059_v3  ;;  %v2114_v3 = vadd.f32 %v360_v24, %v1831_v40  ;;  %v2133_v24 = vadd.f32 %v364_v17, %v1854_v47  ;;  %v2145_v40 = vld [vmem:[%s1699_s19 + $0x1a] sm:$0xff]  ;;  %v2166_v47 = vadd.f32 %v371_v4, %v1889_v57  ;;  %v2187_v4 = vadd.f32 %v375_v29, %v1918_v31  ;;  %v2190_v55 = vld [vmem:[%s1699_s19 + $0x6a] sm:$0xff]  ;;  %v2196_v57 = vld [vmem:[%s1699_s19 + $0x82] sm:$0xff] }
  0x50   : > { %3497 = vst [vmem:[#allocation63_spill] sm:$0xff] %v2071_v15  ;;  %v2123_v15 = vadd.f32 %v363_v18, %v1843_v43  ;;  %v2142_v18 = vadd.f32 %v367_v16, %v1866_v50  ;;  %v2154_v17 = vld [vmem:[%s1699_s19 + $0x3a] sm:$0xff]  ;;  %v2157_v43 = vadd.f32 %v368_v22, %v1877_v54  ;;  %v2163_v16 = vadd.f32 %v370_v53, %v1885_v56  ;;  %v2175_v50 = vld [vmem:[%s1699_s19 + $0x62] sm:$0xff] }
  0x51   : > { %3498 = vst [vmem:[#allocation64_spill] sm:$0xff] %v2074_v28  ;;  %v2181_v54 = vadd.f32 %v373_v11, %v1900_v60  ;;  %v2184_v53 = vadd.f32 %v374_v14, %v1904_v61  ;;  %v2193_v56 = vld [vmem:[%s1699_s19 + $0x7a] sm:$0xff]  ;;  %v2202_v11 = vadd.f32 %v377_v7, %v1926_v26  ;;  %v2205_v60 = vadd.f32 %v378_v30, %v1940_v20  ;;  %v2211_v61 = vld [vmem:[%s1699_s19 + $0x92] sm:$0xff]  ;;  %v2229_v26 = vld [vmem:[%s1699_s19 + $0xc2] sm:$0xff] }
  0x52   : > { %3499 = vst [vmem:[#allocation65_spill] sm:$0xff] %v2145_v40  ;;  %v2208_v31 = vadd.f32 %v379_v58, %v1944_v38  ;;  %v2220_v32 = vadd.f32 %v380_v6, %v1948_v39  ;;  %v2223_v7 = vadd.f32 %v381_v12, %v1963_v45  ;;  %v2226_v20 = vld [vmem:[%s1699_s19 + $0xb2] sm:$0xff]  ;;  %v2232_v38 = vld [vmem:[%s1699_s19 + $0xca] sm:$0xff]  ;;  %v449_v2 = vmul.f32 %v2130_v25, %v414_v23  ;;  %v2240_v6 = vld [vmem:[%s1699_s19 + $0xe2] sm:$0xff] }
  0x53   : > { %3500 = vst [vmem:[#allocation66_spill] sm:$0xff] %v2148_v41  ;;  %v450_v21 = vmul.f32 %v2130_v25, %v415_v36  ;;  %v2243_v39 = vld [vmem:[%s1699_s19 + $0xf2] sm:$0xff]  ;;  %v451_v45 = vmul.f32 %v2130_v25, %v2145_v40  ;;  %v452_v22 = vmul.f32 %v2130_v25, %v2148_v41  ;;  %v453_v14 = vmul.f32 %v2130_v25, %v2151_v42  ;;  %v2254_v30 = vld [vmem:[%s1699_s19 + $0xfa] sm:$0xff]  ;;  %v2257_v58 = vld [vmem:[%s1699_s19 + $0x10a] sm:$0xff] }
  0x54   : > { %3501 = vst [vmem:[#allocation67_spill] sm:$0xff] %v2151_v42  ;;  %v454_v29 = vmul.f32 %v2130_v25, %v2154_v17  ;;  %v2260_v12 = vld [vmem:[%s1699_s19 + $0x112] sm:$0xff]  ;;  %v455_v23 = vmul.f32 %v2130_v25, %v2169_v48  ;;  %v456_v36 = vmul.f32 %v2130_v25, %v2172_v49  ;;  %v457_v42 = vmul.f32 %v2130_v25, %v2175_v50  ;;  %v2271_v41 = vld [vmem:[%s1699_s19 + $0x122] sm:$0xff]  ;;  %v2274_v40 = vld [vmem:[%s1699_s19 + $0x12a] sm:$0xff] }
  0x55   : > { %3502 = vst [vmem:[#allocation68_spill] sm:$0xff] %v2154_v17  ;;  %v458_v17 = vmul.f32 %v2130_v25, %v2190_v55  ;;  %v2277_v28 = vld [vmem:[%s1699_s19 + $0x13a] sm:$0xff]  ;;  %v462_v27 = vmul.f32 %v2130_v25, %v2214_v63 }
  0x56   : > { %3503 = vst [vmem:[#allocation69_spill] sm:$0xff] %v2169_v48  ;;  %v459_v48 = vmul.f32 %v2130_v25, %v2193_v56 }
  0x57   : > { %3504 = vst [vmem:[#allocation70_spill] sm:$0xff] %v2172_v49  ;;  %v460_v49 = vmul.f32 %v2130_v25, %v2196_v57 }
  0x58   : > { %3505 = vst [vmem:[#allocation71_spill] sm:$0xff] %v2175_v50  ;;  %v461_v50 = vmul.f32 %v2130_v25, %v2211_v61 }
  0x59   : > { %3506 = vst [vmem:[#allocation72_spill] sm:$0xff] %v2184_v53  ;;  %v3539_v53 = vld [vmem:[#allocation59_spill] sm:$0xff] }
  0x5a   : > { %3507 = vst [vmem:[#allocation73_spill] sm:$0xff] %v2187_v4  ;;  %v3538_v4 = vld [vmem:[#allocation55_spill] sm:$0xff] }
  0x5b   : > { %3508 = vst [vmem:[#allocation74_spill] sm:$0xff] %v2190_v55  ;;  %v2288_v55 = vld [vmem:[%s1699_s19 + $0x142] sm:$0xff] }
  0x5c   : > { %3509 = vst [vmem:[#allocation75_spill] sm:$0xff] %v2193_v56  ;;  %v464_v56 = vmul.f32 %v2130_v25, %v2226_v20 }
  0x5d   : > { %3510 = vst [vmem:[#allocation76_spill] sm:$0xff] %v2196_v57  ;;  %v465_v57 = vmul.f32 %v2130_v25, %v2229_v26 }
  0x5e   : > { %3511 = vst [vmem:[#allocation77_spill] sm:$0xff] %v2199_v59  ;;  %v3537_v59 = vld [vmem:[#allocation51_spill] sm:$0xff] }
  0x5f   : > { %3512 = vst [vmem:[#allocation78_spill] sm:$0xff] %v2202_v11  ;;  %v473_v11 = vmul.f32 %v2130_v25, %v2271_v41 }
  0x60   : > { %3513 = vst [vmem:[#allocation79_spill] sm:$0xff] %v2205_v60  ;;  %v468_v60 = vmul.f32 %v2130_v25, %v2240_v6 }
  0x61   : > { %3514 = vst [vmem:[#allocation80_spill] sm:$0xff] %v2208_v31  ;;  %v467_v31 = vmul.f32 %v2130_v25, %v2237_v1 }
  0x62   : > { %3515 = vst [vmem:[#allocation81_spill] sm:$0xff] %v2211_v61  ;;  %v466_v61 = vmul.f32 %v2130_v25, %v2232_v38 }
  0x63   : > { %3516 = vst [vmem:[#allocation82_spill] sm:$0xff] %v2214_v63  ;;  %v2308_v63 = vld [vmem:[%s1699_s19 + $0x172] sm:$0xff] }
  0x64   : > { %3517 = vst [vmem:[#allocation83_spill] sm:$0xff] %v2217_v44 }
  0x65   : > { %3518 = vst [vmem:[#allocation84_spill] sm:$0xff] %v2220_v32  ;;  %v2305_v32 = vld [vmem:[%s1699_s19 + $0x16a] sm:$0xff] }
  0x66   : > { %3519 = vst [vmem:[#allocation85_spill] sm:$0xff] %v2223_v7  ;;  %v463_v7 = vmul.f32 %v2130_v25, %v2217_v44  ;;  %v469_v44 = vmul.f32 %v2130_v25, %v2243_v39 }
  0x67   : > { %3520 = vst [vmem:[#allocation86_spill] sm:$0xff] %v2226_v20  ;;  %v470_v20 = vmul.f32 %v2130_v25, %v2254_v30 }
  0x68   : > { %3521 = vst [vmem:[#allocation87_spill] sm:$0xff] %v2229_v26  ;;  %v471_v26 = vmul.f32 %v2130_v25, %v2257_v58 }
  0x69   : > { %3522 = vst [vmem:[#allocation88_spill] sm:$0xff] %v2232_v38  ;;  %v472_v38 = vmul.f32 %v2130_v25, %v2260_v12 }
  0x6a   : > { %3523 = vst [vmem:[#allocation89_spill] sm:$0xff] %v2237_v1  ;;  %v474_v1 = vmul.f32 %v2130_v25, %v2274_v40 }
  0x6b   : > { %3524 = vst [vmem:[#allocation90_spill] sm:$0xff] %v2240_v6  ;;  %v475_v6 = vmul.f32 %v2130_v25, %v2277_v28 }
  0x6c   : > { %3525 = vst [vmem:[#allocation91_spill] sm:$0xff] %v2243_v39  ;;  %v476_v39 = vmul.f32 %v2130_v25, %v2288_v55 }
  0x6d   : > { %3526 = vst [vmem:[#allocation92_spill] sm:$0xff] %v2254_v30  ;;  %v477_v30 = vmul.f32 %v2130_v25, %v2291_v5 }
  0x6e   : > { %3527 = vst [vmem:[#allocation93_spill] sm:$0xff] %v2257_v58  ;;  %v478_v58 = vmul.f32 %v2130_v25, %v2294_v8 }
  0x6f   : > { %3528 = vst [vmem:[#allocation94_spill] sm:$0xff] %v2260_v12  ;;  %v479_v12 = vmul.f32 %v2130_v25, %v2305_v32 }
  0x70   : > { %3529 = vst [vmem:[#allocation95_spill] sm:$0xff] %v2271_v41  ;;  %v480_v41 = vmul.f32 %v2130_v25, %v2308_v63  ;;  %v2357_v25 = vadd.f32 %v455_v23, %v2092_v9  ;;  %v2378_v9 = vadd.f32 %v462_v27, %v2123_v15  ;;  %v2399_v27 = vadd.f32 %v468_v60, %v2160_v46  ;;  %v3547_v46 = vld [vmem:[#allocation77_spill] sm:$0xff]  ;;  %v3569_v23 = vld [vmem:[#allocation12_spill] sm:$0xff] }
  0x71   : > { %3530 = vst [vmem:[#allocation96_spill] sm:$0xff] %v2274_v40  ;;  %v2339_v40 = vadd.f32 %v449_v2, %v1996_v0  ;;  %v2360_v0 = vadd.f32 %v456_v36, %v2101_v33  ;;  %v2381_v33 = vadd.f32 %v463_v7, %v2133_v24  ;;  %v2402_v15 = vadd.f32 %v469_v44, %v2163_v16  ;;  %v3549_v16 = vld [vmem:[#allocation78_spill] sm:$0xff]  ;;  %v3560_v44 = vld [vmem:[#allocation3_spill] sm:$0xff] }
  0x72   : > { %3531 = vst [vmem:[#allocation97_spill] sm:$0xff] %v2277_v28  ;;  %v2342_v28 = vadd.f32 %v450_v21, %v3537_v59  ;;  %v2363_v59 = vadd.f32 %v457_v42, %v2108_v34  ;;  %v2384_v34 = vadd.f32 %v464_v56, %v2136_v37  ;;  %v2405_v24 = vadd.f32 %v470_v20, %v2166_v47  ;;  %v3551_v47 = vld [vmem:[#allocation79_spill] sm:$0xff]  ;;  %v3561_v20 = vld [vmem:[#allocation4_spill] sm:$0xff]  ;;  %v3563_v21 = vld [vmem:[#allocation6_spill] sm:$0xff] }
  0x73   : > { %3532 = vst [vmem:[#allocation98_spill] sm:$0xff] %v2288_v55  ;;  %v2345_v55 = vadd.f32 %v451_v45, %v3538_v4  ;;  %v2366_v4 = vadd.f32 %v458_v17, %v2111_v51  ;;  %v2387_v51 = vadd.f32 %v465_v57, %v2139_v19  ;;  %v2408_v37 = vadd.f32 %v471_v26, %v2178_v52  ;;  %v3545_v17 = vld [vmem:[#allocation73_spill] sm:$0xff]  ;;  %v3553_v52 = vld [vmem:[#allocation80_spill] sm:$0xff] }
  0x74   : > { %3533 = vst [vmem:[#allocation99_spill] sm:$0xff] %v2291_v5  ;;  %v2348_v5 = vadd.f32 %v452_v22, %v3539_v53  ;;  %v2369_v53 = vadd.f32 %v459_v48, %v2114_v3  ;;  %v2390_v3 = vadd.f32 %v466_v61, %v2142_v18  ;;  %v2411_v19 = vadd.f32 %v472_v38, %v2181_v54  ;;  %v3543_v18 = vld [vmem:[#allocation72_spill] sm:$0xff]  ;;  %v3562_v38 = vld [vmem:[#allocation5_spill] sm:$0xff] }
  0x75   : > { %3534 = vst [vmem:[#allocation100_spill] sm:$0xff] %v2294_v8  ;;  %v2351_v8 = vadd.f32 %v453_v14, %v2068_v13  ;;  %v2372_v13 = vadd.f32 %v460_v49, %v2117_v35  ;;  %v1625_v35 = vld [vmem:[%s3337_s1 + $0x3] ss:$0 sm:$0xff]  ;;  %v2414_v42 = vadd.f32 %v473_v11, %v3543_v18  ;;  %v2420_v48 = vadd.f32 %v475_v6, %v3547_v46  ;;  %v3555_v54 = vld [vmem:[#allocation84_spill] sm:$0xff]  ;;  %v3557_v11 = vld [vmem:[#allocation85_spill] sm:$0xff] }
  0x76   : > { %3535 = vst [vmem:[#allocation101_spill] sm:$0xff] %v2305_v32  ;;  %v2354_v32 = vadd.f32 %v454_v29, %v2083_v10  ;;  %v2375_v10 = vadd.f32 %v461_v50, %v2120_v62  ;;  %v2396_v62 = vadd.f32 %v467_v31, %v2157_v43  ;;  %v2417_v43 = vadd.f32 %v474_v1, %v3545_v17  ;;  %v3559_v31 = vld [vmem:[#allocation2_spill] sm:$0xff]  ;;  %v3564_v6 = vld [vmem:[#allocation7_spill] sm:$0xff]  ;;  %v3565_v45 = vld [vmem:[#allocation8_spill] sm:$0xff] }
  0x77   : > { %3536 = vst [vmem:[#allocation102_spill] sm:$0xff] %v2308_v63  ;;  %v2423_v49 = vadd.f32 %v476_v39, %v3549_v16  ;;  %v2426_v50 = vadd.f32 %v477_v30, %v3551_v47  ;;  %v2429_v56 = vadd.f32 %v478_v58, %v3553_v52  ;;  %v2432_v57 = vadd.f32 %v479_v12, %v3555_v54  ;;  %v3566_v14 = vld [vmem:[#allocation9_spill] sm:$0xff]  ;;  %v3568_v58 = vld [vmem:[#allocation11_spill] sm:$0xff]  ;;  %v3571_v46 = vld [vmem:[#allocation14_spill] sm:$0xff] }
  0x78   : > { %3540 = vst [vmem:[#allocation51_spill] sm:$0xff] %v2405_v24  ;;  %v2435_v60 = vadd.f32 %v480_v41, %v3557_v11  ;;  %v551_v61 = vmul.f32 %v1625_v35, %v3559_v31  ;;  %v552_v7 = vmul.f32 %v1625_v35, %v3560_v44  ;;  %v553_v26 = vmul.f32 %v1625_v35, %v3561_v20  ;;  %v3567_v41 = vld [vmem:[#allocation10_spill] sm:$0xff]  ;;  %v3570_v18 = vld [vmem:[#allocation13_spill] sm:$0xff]  ;;  %v3572_v47 = vld [vmem:[#allocation15_spill] sm:$0xff] }
  0x79   : > { %3541 = vst [vmem:[#allocation55_spill] sm:$0xff] %v2408_v37  ;;  %v554_v2 = vmul.f32 %v1625_v35, %v3562_v38  ;;  %v555_v1 = vmul.f32 %v1625_v35, %v3563_v21  ;;  %v556_v39 = vmul.f32 %v1625_v35, %v3564_v6  ;;  %v557_v22 = vmul.f32 %v1625_v35, %v3565_v45  ;;  %v3573_v54 = vld [vmem:[#allocation16_spill] sm:$0xff]  ;;  %v3574_v31 = vld [vmem:[#allocation17_spill] sm:$0xff]  ;;  %v3575_v20 = vld [vmem:[#allocation18_spill] sm:$0xff] }
  0x7a   : > { %3542 = vst [vmem:[#allocation59_spill] sm:$0xff] %v2411_v19  ;;  %v558_v29 = vmul.f32 %v1625_v35, %v3566_v14  ;;  %v559_v30 = vmul.f32 %v1625_v35, %v3567_v41  ;;  %v560_v12 = vmul.f32 %v1625_v35, %v3568_v58  ;;  %v561_v36 = vmul.f32 %v1625_v35, %v3569_v23  ;;  %v3576_v21 = vld [vmem:[#allocation19_spill] sm:$0xff]  ;;  %v2456_v45 = vld [vmem:[%s1699_s19 + $0x180] sm:$0xff]  ;;  %v3579_v41 = vld [vmem:[#allocation20_spill] sm:$0xff] }
  0x7b   : > { %3544 = vst [vmem:[#allocation72_spill] sm:$0xff] %v2414_v42  ;;  %v562_v17 = vmul.f32 %v1625_v35, %v3570_v18  ;;  %v563_v16 = vmul.f32 %v1625_v35, %v3571_v46  ;;  %v564_v52 = vmul.f32 %v1625_v35, %v3572_v47  ;;  %v565_v11 = vmul.f32 %v1625_v35, %v3573_v54  ;;  %v2459_v14 = vld [vmem:[%s1699_s19 + $0x188] sm:$0xff]  ;;  %v3580_v23 = vld [vmem:[#allocation21_spill] sm:$0xff]  ;;  %v3581_v63 = vld [vmem:[#allocation22_spill] sm:$0xff] }
  0x7c   : > { %3546 = vst [vmem:[#allocation73_spill] sm:$0xff] %v2417_v43  ;;  %v566_v44 = vmul.f32 %v1625_v35, %v3574_v31  ;;  %v567_v38 = vmul.f32 %v1625_v35, %v3575_v20  ;;  %v568_v6 = vmul.f32 %v1625_v35, %v3576_v21  ;;  %v569_v58 = vmul.f32 %v1625_v35, %v3579_v41  ;;  %v3588_v42 = vld [vmem:[#allocation29_spill] sm:$0xff]  ;;  %v3589_v37 = vld [vmem:[#allocation30_spill] sm:$0xff]  ;;  %v3590_v24 = vld [vmem:[#allocation31_spill] sm:$0xff] }
  0x7d   : > { %3548 = vst [vmem:[#allocation77_spill] sm:$0xff] %v2420_v48  ;;  %v570_v18 = vmul.f32 %v1625_v35, %v3580_v23  ;;  %v571_v46 = vmul.f32 %v1625_v35, %v3581_v63  ;;  %v3587_v48 = vld [vmem:[#allocation28_spill] sm:$0xff]  ;;  %v578_v19 = vmul.f32 %v1625_v35, %v3588_v42  ;;  %v579_v41 = vmul.f32 %v1625_v35, %v3589_v37 }
  0x7e   : > { %3550 = vst [vmem:[#allocation78_spill] sm:$0xff] %v2423_v49  ;;  %v3586_v49 = vld [vmem:[#allocation27_spill] sm:$0xff]  ;;  %v577_v43 = vmul.f32 %v1625_v35, %v3587_v48  ;;  %v580_v23 = vmul.f32 %v1625_v35, %v3590_v24  ;;  %v581_v63 = vmul.f32 %v1625_v35, %v2456_v45  ;;  %v2485_v48 = vadd.f32 %v554_v2, %v2348_v5 }
  0x7f   : > { %3552 = vst [vmem:[#allocation79_spill] sm:$0xff] %v2426_v50  ;;  %v3585_v50 = vld [vmem:[#allocation26_spill] sm:$0xff]  ;;  %v576_v21 = vmul.f32 %v1625_v35, %v3586_v49  ;;  %v2482_v49 = vadd.f32 %v553_v26, %v2345_v55  ;;  %v2488_v37 = vadd.f32 %v555_v1, %v2351_v8  ;;  %v2491_v24 = vadd.f32 %v556_v39, %v2354_v32 }
  0x80   : > { %3554 = vst [vmem:[#allocation80_spill] sm:$0xff] %v2429_v56  ;;  %v3584_v56 = vld [vmem:[#allocation25_spill] sm:$0xff]  ;;  %v575_v20 = vmul.f32 %v1625_v35, %v3585_v50  ;;  %v2503_v55 = vadd.f32 %v560_v12, %v2366_v4  ;;  %v2506_v5 = vadd.f32 %v561_v36, %v2369_v53  ;;  %v2509_v8 = vadd.f32 %v562_v17, %v2372_v13  ;;  %v1626_v13 = vld [vmem:[%s3337_s1 + $0x4] ss:$0 sm:$0xff] }
  0x81   : > { %3556 = vst [vmem:[#allocation84_spill] sm:$0xff] %v2432_v57  ;;  %v3583_v57 = vld [vmem:[#allocation24_spill] sm:$0xff]  ;;  %v574_v31 = vmul.f32 %v1625_v35, %v3584_v56  ;;  %v2479_v56 = vadd.f32 %v552_v7, %v2342_v28  ;;  %v2500_v28 = vadd.f32 %v559_v30, %v2363_v59  ;;  %v2512_v32 = vadd.f32 %v563_v16, %v2375_v10 }
  0x82   : > { %3558 = vst [vmem:[#allocation85_spill] sm:$0xff] %v2435_v60  ;;  %v3582_v60 = vld [vmem:[#allocation23_spill] sm:$0xff]  ;;  %v573_v54 = vmul.f32 %v1625_v35, %v3583_v57  ;;  %v2476_v57 = vadd.f32 %v551_v61, %v2339_v40  ;;  %v2497_v40 = vadd.f32 %v558_v29, %v2360_v0  ;;  %v2518_v0 = vadd.f32 %v565_v11, %v2381_v33  ;;  %v3597_v7 = vld [vmem:[#allocation72_spill] sm:$0xff] }
  0x83   : > { %3577 = vst [vmem:[#allocation2_spill] sm:$0xff] %v2456_v45  ;;  %v572_v47 = vmul.f32 %v1625_v35, %v3582_v60  ;;  %v582_v60 = vmul.f32 %v1625_v35, %v2459_v14  ;;  %v2494_v35 = vadd.f32 %v557_v22, %v2357_v25  ;;  %v2515_v25 = vadd.f32 %v564_v52, %v2378_v9  ;;  %v3613_v11 = vld [vmem:[#allocation32_spill] sm:$0xff]  ;;  %v3635_v45 = vld [vmem:[#allocation53_spill] sm:$0xff] }
  0x84   : > { %3578 = vst [vmem:[#allocation3_spill] sm:$0xff] %v2459_v14  ;;  %v2521_v59 = vadd.f32 %v566_v44, %v2384_v34  ;;  %v2524_v4 = vadd.f32 %v567_v38, %v2387_v51  ;;  %v2527_v53 = vadd.f32 %v568_v6, %v2390_v3  ;;  %v2533_v10 = vadd.f32 %v569_v58, %v2396_v62  ;;  %v3591_v34 = vld [vmem:[#allocation51_spill] sm:$0xff]  ;;  %v3599_v62 = vld [vmem:[#allocation73_spill] sm:$0xff]  ;;  %v3615_v6 = vld [vmem:[#allocation34_spill] sm:$0xff] }
  0x85   : > { %v2536_v9 = vadd.f32 %v570_v18, %v2399_v27  ;;  %v2539_v33 = vadd.f32 %v571_v46, %v2402_v15  ;;  %v2542_v42 = vadd.f32 %v572_v47, %v3591_v34  ;;  %v3593_v51 = vld [vmem:[#allocation55_spill] sm:$0xff]  ;;  %v2551_v26 = vadd.f32 %v575_v20, %v3597_v7  ;;  %v3601_v27 = vld [vmem:[#allocation77_spill] sm:$0xff]  ;;  %v3603_v15 = vld [vmem:[#allocation78_spill] sm:$0xff] }
  0x86   : > { %v2545_v50 = vadd.f32 %v573_v54, %v3593_v51  ;;  %v3595_v3 = vld [vmem:[#allocation59_spill] sm:$0xff]  ;;  %v2554_v2 = vadd.f32 %v576_v21, %v3599_v62  ;;  %v2557_v1 = vadd.f32 %v577_v43, %v3601_v27  ;;  %v2560_v39 = vadd.f32 %v578_v19, %v3603_v15  ;;  %v3614_v38 = vld [vmem:[#allocation33_spill] sm:$0xff]  ;;  %v3617_v46 = vld [vmem:[#allocation36_spill] sm:$0xff] }
  0x87   : > { %3592 = vst [vmem:[#allocation4_spill] sm:$0xff] %v2542_v42  ;;  %v2548_v61 = vadd.f32 %v574_v31, %v3595_v3  ;;  %v3605_v22 = vld [vmem:[#allocation79_spill] sm:$0xff]  ;;  %v3607_v30 = vld [vmem:[#allocation80_spill] sm:$0xff]  ;;  %v650_v44 = vmul.f32 %v1626_v13, %v3613_v11  ;;  %v651_v43 = vmul.f32 %v1626_v13, %v3614_v38  ;;  %v652_v58 = vmul.f32 %v1626_v13, %v3615_v6  ;;  %v3618_v54 = vld [vmem:[#allocation37_spill] sm:$0xff] }
  0x88   : > { %3594 = vst [vmem:[#allocation5_spill] sm:$0xff] %v2545_v50  ;;  %v2563_v29 = vadd.f32 %v579_v41, %v3605_v22  ;;  %v2566_v12 = vadd.f32 %v580_v23, %v3607_v30  ;;  %v3609_v36 = vld [vmem:[#allocation84_spill] sm:$0xff]  ;;  %v3616_v19 = vld [vmem:[#allocation35_spill] sm:$0xff]  ;;  %v654_v47 = vmul.f32 %v1626_v13, %v3617_v46  ;;  %v655_v31 = vmul.f32 %v1626_v13, %v3618_v54  ;;  %v3619_v20 = vld [vmem:[#allocation38_spill] sm:$0xff] }
  0x89   : > { %3596 = vst [vmem:[#allocation6_spill] sm:$0xff] %v2548_v61  ;;  %v2569_v17 = vadd.f32 %v581_v63, %v3609_v36  ;;  %v3611_v16 = vld [vmem:[#allocation85_spill] sm:$0xff]  ;;  %v653_v18 = vmul.f32 %v1626_v13, %v3616_v19  ;;  %v656_v21 = vmul.f32 %v1626_v13, %v3619_v20  ;;  %v3620_v41 = vld [vmem:[#allocation39_spill] sm:$0xff]  ;;  %v3621_v63 = vld [vmem:[#allocation40_spill] sm:$0xff] }
  0x8a   : > { %3598 = vst [vmem:[#allocation7_spill] sm:$0xff] %v2551_v26  ;;  %v2572_v52 = vadd.f32 %v582_v60, %v3611_v16  ;;  %v657_v23 = vmul.f32 %v1626_v13, %v3620_v41  ;;  %v658_v60 = vmul.f32 %v1626_v13, %v3621_v63  ;;  %v3622_v34 = vld [vmem:[#allocation41_spill] sm:$0xff]  ;;  %v3623_v3 = vld [vmem:[#allocation42_spill] sm:$0xff]  ;;  %v3624_v62 = vld [vmem:[#allocation43_spill] sm:$0xff] }
  0x8b   : > { %3600 = vst [vmem:[#allocation8_spill] sm:$0xff] %v2554_v2  ;;  %v659_v51 = vmul.f32 %v1626_v13, %v3622_v34  ;;  %v660_v7 = vmul.f32 %v1626_v13, %v3623_v3  ;;  %v661_v27 = vmul.f32 %v1626_v13, %v3624_v62  ;;  %v3625_v15 = vld [vmem:[#allocation44_spill] sm:$0xff]  ;;  %v3626_v30 = vld [vmem:[#allocation45_spill] sm:$0xff]  ;;  %v3627_v16 = vld [vmem:[#allocation46_spill] sm:$0xff] }
  0x8c   : > { %3602 = vst [vmem:[#allocation9_spill] sm:$0xff] %v2557_v1  ;;  %v662_v22 = vmul.f32 %v1626_v13, %v3625_v15  ;;  %v663_v36 = vmul.f32 %v1626_v13, %v3626_v30  ;;  %v664_v11 = vmul.f32 %v1626_v13, %v3627_v16  ;;  %v3628_v38 = vld [vmem:[#allocation47_spill] sm:$0xff]  ;;  %v3629_v19 = vld [vmem:[#allocation48_spill] sm:$0xff]  ;;  %v3630_v54 = vld [vmem:[#allocation49_spill] sm:$0xff]  ;;  %v670_v15 = vmul.f32 %v1626_v13, %v3635_v45 }
  0x8d   : > { %3604 = vst [vmem:[#allocation10_spill] sm:$0xff] %v2560_v39  ;;  %v665_v6 = vmul.f32 %v1626_v13, %v3628_v38  ;;  %v666_v46 = vmul.f32 %v1626_v13, %v3629_v19  ;;  %v667_v20 = vmul.f32 %v1626_v13, %v3630_v54  ;;  %v2593_v41 = vld [vmem:[%s1699_s19 + $0x181] sm:$0xff]  ;;  %v2596_v63 = vld [vmem:[%s1699_s19 + $0x189] sm:$0xff]  ;;  %v3641_v1 = vld [vmem:[#allocation61_spill] sm:$0xff] }
  0x8e   : > { %3606 = vst [vmem:[#allocation11_spill] sm:$0xff] %v2563_v29  ;;  %v3633_v34 = vld [vmem:[#allocation50_spill] sm:$0xff]  ;;  %v3634_v14 = vld [vmem:[#allocation52_spill] sm:$0xff]  ;;  %v676_v2 = vmul.f32 %v1626_v13, %v3641_v1  ;;  %v3643_v50 = vld [vmem:[#allocation63_spill] sm:$0xff]  ;;  %v680_v45 = vmul.f32 %v1626_v13, %v2593_v41  ;;  %v2622_v1 = vadd.f32 %v653_v18, %v2485_v48  ;;  %v2643_v48 = vadd.f32 %v660_v7, %v2506_v5 }
  0x8f   : > { %3608 = vst [vmem:[#allocation12_spill] sm:$0xff] %v2566_v12  ;;  %v668_v3 = vmul.f32 %v1626_v13, %v3633_v34  ;;  %v669_v62 = vmul.f32 %v1626_v13, %v3634_v14  ;;  %v3638_v12 = vld [vmem:[#allocation57_spill] sm:$0xff]  ;;  %v3639_v29 = vld [vmem:[#allocation58_spill] sm:$0xff]  ;;  %v3640_v39 = vld [vmem:[#allocation60_spill] sm:$0xff]  ;;  %v678_v34 = vmul.f32 %v1626_v13, %v3643_v50  ;;  %v2625_v50 = vadd.f32 %v654_v47, %v2488_v37 }
  0x90   : > { %3610 = vst [vmem:[#allocation13_spill] sm:$0xff] %v2569_v17  ;;  %v3637_v17 = vld [vmem:[#allocation56_spill] sm:$0xff]  ;;  %v673_v38 = vmul.f32 %v1626_v13, %v3638_v12  ;;  %v674_v19 = vmul.f32 %v1626_v13, %v3639_v29  ;;  %v675_v54 = vmul.f32 %v1626_v13, %v3640_v39  ;;  %v3642_v26 = vld [vmem:[#allocation62_spill] sm:$0xff]  ;;  %v2616_v12 = vadd.f32 %v651_v43, %v2479_v56 }
  0x91   : > { %3612 = vst [vmem:[#allocation14_spill] sm:$0xff] %v2572_v52  ;;  %v3636_v52 = vld [vmem:[#allocation54_spill] sm:$0xff]  ;;  %v672_v16 = vmul.f32 %v1626_v13, %v3637_v17  ;;  %v677_v61 = vmul.f32 %v1626_v13, %v3642_v26  ;;  %v3644_v42 = vld [vmem:[#allocation64_spill] sm:$0xff]  ;;  %v2613_v17 = vadd.f32 %v650_v44, %v2476_v57  ;;  %v2619_v39 = vadd.f32 %v652_v58, %v2482_v49  ;;  %v3651_v43 = vld [vmem:[#allocation7_spill] sm:$0xff] }
  0x92   : > { %3631 = vst [vmem:[#allocation15_spill] sm:$0xff] %v2593_v41  ;;  %v671_v30 = vmul.f32 %v1626_v13, %v3636_v52  ;;  %v679_v14 = vmul.f32 %v1626_v13, %v3644_v42  ;;  %v681_v52 = vmul.f32 %v1626_v13, %v2596_v63  ;;  %v2628_v42 = vadd.f32 %v655_v31, %v2491_v24  ;;  %v3689_v41 = vld [vmem:[#allocation93_spill] sm:$0xff] }
  0x93   : > { %3632 = vst [vmem:[#allocation16_spill] sm:$0xff] %v2596_v63  ;;  %v2631_v13 = vadd.f32 %v656_v21, %v2494_v35  ;;  %v2634_v57 = vadd.f32 %v657_v23, %v2497_v40  ;;  %v2637_v56 = vadd.f32 %v658_v60, %v2500_v28  ;;  %v2640_v49 = vadd.f32 %v659_v51, %v2503_v55  ;;  %v3688_v63 = vld [vmem:[#allocation92_spill] sm:$0xff] }
  0x94   : > { %v2646_v37 = vadd.f32 %v661_v27, %v2509_v8  ;;  %v2649_v24 = vadd.f32 %v662_v22, %v2512_v32  ;;  %v2652_v35 = vadd.f32 %v663_v36, %v2515_v25  ;;  %v2655_v40 = vadd.f32 %v664_v11, %v2518_v0  ;;  %v1627_v8 = vld [vmem:[%s3337_s1 + $0x5] ss:$0 sm:$0xff]  ;;  %v3667_v11 = vld [vmem:[#allocation65_spill] sm:$0xff] }
  0x95   : > { %v2658_v28 = vadd.f32 %v665_v6, %v2521_v59  ;;  %v2661_v55 = vadd.f32 %v666_v46, %v2524_v4  ;;  %v2664_v5 = vadd.f32 %v667_v20, %v2527_v53  ;;  %v2670_v32 = vadd.f32 %v668_v3, %v2533_v10  ;;  %v3645_v59 = vld [vmem:[#allocation4_spill] sm:$0xff]  ;;  %v3647_v4 = vld [vmem:[#allocation5_spill] sm:$0xff]  ;;  %v3649_v53 = vld [vmem:[#allocation6_spill] sm:$0xff] }
  0x96   : > { %v2673_v25 = vadd.f32 %v669_v62, %v2536_v9  ;;  %v2676_v0 = vadd.f32 %v670_v15, %v2539_v33  ;;  %v2679_v26 = vadd.f32 %v671_v30, %v3645_v59  ;;  %v2682_v29 = vadd.f32 %v672_v16, %v3647_v4  ;;  %v3653_v10 = vld [vmem:[#allocation8_spill] sm:$0xff]  ;;  %v3655_v9 = vld [vmem:[#allocation9_spill] sm:$0xff]  ;;  %v3657_v33 = vld [vmem:[#allocation10_spill] sm:$0xff] }
  0x97   : > { %v2685_v44 = vadd.f32 %v673_v38, %v3649_v53  ;;  %v2688_v58 = vadd.f32 %v674_v19, %v3651_v43  ;;  %v2691_v18 = vadd.f32 %v675_v54, %v3653_v10  ;;  %v2694_v47 = vadd.f32 %v676_v2, %v3655_v9  ;;  %v3659_v21 = vld [vmem:[#allocation11_spill] sm:$0xff]  ;;  %v3661_v60 = vld [vmem:[#allocation12_spill] sm:$0xff]  ;;  %v3663_v7 = vld [vmem:[#allocation13_spill] sm:$0xff] }
  0x98   : > { %3646 = vst [vmem:[#allocation17_spill] sm:$0xff] %v2679_v26  ;;  %v2697_v31 = vadd.f32 %v677_v61, %v3657_v33  ;;  %v2700_v23 = vadd.f32 %v678_v34, %v3659_v21  ;;  %v2703_v51 = vadd.f32 %v679_v14, %v3661_v60  ;;  %v2706_v27 = vadd.f32 %v680_v45, %v3663_v7  ;;  %v3665_v22 = vld [vmem:[#allocation14_spill] sm:$0xff]  ;;  %v3669_v20 = vld [vmem:[#allocation67_spill] sm:$0xff]  ;;  %v3670_v61 = vld [vmem:[#allocation68_spill] sm:$0xff] }
  0x99   : > { %3648 = vst [vmem:[#allocation18_spill] sm:$0xff] %v2682_v29  ;;  %v2709_v36 = vadd.f32 %v681_v52, %v3665_v22  ;;  %v749_v6 = vmul.f32 %v1627_v8, %v3667_v11  ;;  %v3668_v46 = vld [vmem:[#allocation66_spill] sm:$0xff]  ;;  %v751_v3 = vmul.f32 %v1627_v8, %v3669_v20  ;;  %v752_v62 = vmul.f32 %v1627_v8, %v3670_v61  ;;  %v3671_v15 = vld [vmem:[#allocation69_spill] sm:$0xff]  ;;  %v3673_v19 = vld [vmem:[#allocation71_spill] sm:$0xff] }
  0x9a   : > { %3650 = vst [vmem:[#allocation19_spill] sm:$0xff] %v2685_v44  ;;  %v750_v2 = vmul.f32 %v1627_v8, %v3668_v46  ;;  %v753_v30 = vmul.f32 %v1627_v8, %v3671_v15  ;;  %v3672_v16 = vld [vmem:[#allocation70_spill] sm:$0xff]  ;;  %v755_v54 = vmul.f32 %v1627_v8, %v3673_v19  ;;  %v3675_v45 = vld [vmem:[#allocation75_spill] sm:$0xff]  ;;  %v3676_v59 = vld [vmem:[#allocation76_spill] sm:$0xff] }
  0x9b   : > { %3652 = vst [vmem:[#allocation20_spill] sm:$0xff] %v2688_v58  ;;  %v754_v38 = vmul.f32 %v1627_v8, %v3672_v16  ;;  %v3674_v34 = vld [vmem:[#allocation74_spill] sm:$0xff]  ;;  %v757_v52 = vmul.f32 %v1627_v8, %v3675_v45  ;;  %v758_v4 = vmul.f32 %v1627_v8, %v3676_v59  ;;  %v3677_v53 = vld [vmem:[#allocation81_spill] sm:$0xff]  ;;  %v3679_v33 = vld [vmem:[#allocation83_spill] sm:$0xff] }
  0x9c   : > { %3654 = vst [vmem:[#allocation21_spill] sm:$0xff] %v2691_v18  ;;  %v756_v14 = vmul.f32 %v1627_v8, %v3674_v34  ;;  %v759_v43 = vmul.f32 %v1627_v8, %v3677_v53  ;;  %v3678_v10 = vld [vmem:[#allocation82_spill] sm:$0xff]  ;;  %v761_v21 = vmul.f32 %v1627_v8, %v3679_v33  ;;  %v3681_v22 = vld [vmem:[#allocation87_spill] sm:$0xff]  ;;  %v3682_v46 = vld [vmem:[#allocation88_spill] sm:$0xff]  ;;  %v769_v33 = vmul.f32 %v1627_v8, %v3689_v41 }
  0x9d   : > { %3656 = vst [vmem:[#allocation22_spill] sm:$0xff] %v2694_v47  ;;  %v760_v9 = vmul.f32 %v1627_v8, %v3678_v10  ;;  %v3680_v60 = vld [vmem:[#allocation86_spill] sm:$0xff]  ;;  %v763_v11 = vmul.f32 %v1627_v8, %v3681_v22  ;;  %v764_v20 = vmul.f32 %v1627_v8, %v3682_v46  ;;  %v3683_v61 = vld [vmem:[#allocation89_spill] sm:$0xff]  ;;  %v2733_v45 = vld [vmem:[%s1699_s19 + $0x18a] sm:$0xff]  ;;  %v768_v10 = vmul.f32 %v1627_v8, %v3688_v63 }
  0x9e   : > { %3658 = vst [vmem:[#allocation23_spill] sm:$0xff] %v2697_v31  ;;  %v762_v7 = vmul.f32 %v1627_v8, %v3680_v60  ;;  %v765_v15 = vmul.f32 %v1627_v8, %v3683_v61  ;;  %v3684_v16 = vld [vmem:[#allocation90_spill] sm:$0xff]  ;;  %v3687_v59 = vld [vmem:[#allocation91_spill] sm:$0xff]  ;;  %v3696_v58 = vld [vmem:[#allocation100_spill] sm:$0xff] }
  0x9f   : > { %3660 = vst [vmem:[#allocation24_spill] sm:$0xff] %v2700_v23  ;;  %v766_v19 = vmul.f32 %v1627_v8, %v3684_v16  ;;  %v2730_v34 = vld [vmem:[%s1699_s19 + $0x182] sm:$0xff]  ;;  %v767_v53 = vmul.f32 %v1627_v8, %v3687_v59  ;;  %v3693_v23 = vld [vmem:[#allocation97_spill] sm:$0xff]  ;;  %v776_v44 = vmul.f32 %v1627_v8, %v3696_v58  ;;  %v2759_v58 = vadd.f32 %v752_v62, %v2622_v1 }
  0xa0   : > { %3662 = vst [vmem:[#allocation25_spill] sm:$0xff] %v2703_v51  ;;  %v3692_v51 = vld [vmem:[#allocation96_spill] sm:$0xff]  ;;  %v773_v61 = vmul.f32 %v1627_v8, %v3693_v23  ;;  %v3694_v31 = vld [vmem:[#allocation98_spill] sm:$0xff]  ;;  %v3695_v47 = vld [vmem:[#allocation99_spill] sm:$0xff]  ;;  %v779_v41 = vmul.f32 %v1627_v8, %v2730_v34  ;;  %v2753_v23 = vadd.f32 %v750_v2, %v2616_v12  ;;  %v2774_v12 = vadd.f32 %v757_v52, %v2637_v56 }
  0xa1   : > { %3664 = vst [vmem:[#allocation26_spill] sm:$0xff] %v2706_v27  ;;  %v3691_v27 = vld [vmem:[#allocation95_spill] sm:$0xff]  ;;  %v772_v46 = vmul.f32 %v1627_v8, %v3692_v51  ;;  %v774_v16 = vmul.f32 %v1627_v8, %v3694_v31  ;;  %v775_v18 = vmul.f32 %v1627_v8, %v3695_v47  ;;  %v3697_v29 = vld [vmem:[#allocation101_spill] sm:$0xff]  ;;  %v3698_v26 = vld [vmem:[#allocation102_spill] sm:$0xff]  ;;  %v2750_v51 = vadd.f32 %v749_v6, %v2613_v17 }
  0xa2   : > { %3666 = vst [vmem:[#allocation27_spill] sm:$0xff] %v2709_v36  ;;  %v3690_v36 = vld [vmem:[#allocation94_spill] sm:$0xff]  ;;  %v771_v22 = vmul.f32 %v1627_v8, %v3691_v27  ;;  %v777_v59 = vmul.f32 %v1627_v8, %v3697_v29  ;;  %v778_v63 = vmul.f32 %v1627_v8, %v3698_v26  ;;  %v2756_v47 = vadd.f32 %v751_v3, %v2619_v39  ;;  %v1500_v56 = vld [vmem:[%s1699_s19 + $0x38] sm:$0xff]  ;;  %v1501_v31 = vld [vmem:[%s1699_s19 + $0x48] sm:$0xff] }
  0xa3   : > { %3685 = vst [vmem:[#allocation28_spill] sm:$0xff] %v2730_v34  ;;  %v770_v60 = vmul.f32 %v1627_v8, %v3690_v36  ;;  %v780_v36 = vmul.f32 %v1627_v8, %v2733_v45  ;;  %v2762_v26 = vadd.f32 %v753_v30, %v2625_v50  ;;  %v2765_v29 = vadd.f32 %v754_v38, %v2628_v42  ;;  %v1502_v27 = vld [vmem:[%s1699_s19 + $0x50] sm:$0xff]  ;;  %v1503_v6 = vld [vmem:[%s1699_s19 + $0x60] sm:$0xff]  ;;  %v1505_v62 = vld [vmem:[%s1699_s19 + $0x78] sm:$0xff] }
  0xa4   : > { %3686 = vst [vmem:[#allocation29_spill] sm:$0xff] %v2733_v45  ;;  %v2768_v8 = vadd.f32 %v755_v54, %v2631_v13  ;;  %v2771_v17 = vadd.f32 %v756_v14, %v2634_v57  ;;  %v2777_v39 = vadd.f32 %v758_v4, %v2640_v49  ;;  %v2780_v1 = vadd.f32 %v759_v43, %v2643_v48  ;;  %v1499_v57 = vld [vmem:[%s1699_s19 + $0x30] sm:$0xff]  ;;  %v2796_v49 = vld [vmem:[%s3337_s1 + $0x6] ss:$0 sm:$0xff]  ;;  %v3706_v52 = vld [vmem:[#allocation21_spill] sm:$0xff] }
  0xa5   : > { %v2783_v50 = vadd.f32 %v760_v9, %v2646_v37  ;;  %v2786_v42 = vadd.f32 %v761_v21, %v2649_v24  ;;  %v2789_v13 = vadd.f32 %v762_v7, %v2652_v35  ;;  %v2799_v48 = vadd.f32 %v763_v11, %v2655_v40  ;;  %v1506_v30 = vld [vmem:[%s1699_s19 + $0x80] sm:$0xff]  ;;  %v1507_v43 = vld [vmem:[%s1699_s19 + $0x90] sm:$0xff]  ;;  %v1508_v9 = vld [vmem:[%s1699_s19 + $0x98] sm:$0xff] }
  0xa6   : > { %v2802_v37 = vadd.f32 %v764_v20, %v2658_v28  ;;  %v2805_v24 = vadd.f32 %v765_v15, %v2661_v55  ;;  %v2808_v35 = vadd.f32 %v766_v19, %v2664_v5  ;;  %v2814_v2 = vadd.f32 %v767_v53, %v2670_v32  ;;  %v3699_v55 = vld [vmem:[#allocation17_spill] sm:$0xff]  ;;  %v1504_v5 = vld [vmem:[%s1699_s19 + $0x68] sm:$0xff]  ;;  %v3700_v38 = vld [vmem:[#allocation18_spill] sm:$0xff] }
  0xa7   : > { %v2817_v40 = vadd.f32 %v768_v10, %v2673_v25  ;;  %v2820_v28 = vadd.f32 %v769_v33, %v2676_v0  ;;  %v2823_v3 = vadd.f32 %v770_v60, %v3699_v55  ;;  %v2829_v54 = vadd.f32 %v771_v22, %v3700_v38  ;;  %v3702_v32 = vld [vmem:[#allocation19_spill] sm:$0xff]  ;;  %v3704_v25 = vld [vmem:[#allocation20_spill] sm:$0xff]  ;;  %v3708_v7 = vld [vmem:[#allocation22_spill] sm:$0xff] }
  0xa8   : > { %v2832_v14 = vadd.f32 %v772_v46, %v3702_v32  ;;  %v2835_v0 = vadd.f32 %v773_v61, %v3704_v25  ;;  %v2838_v4 = vadd.f32 %v774_v16, %v3706_v52  ;;  %v1509_v21 = vld [vmem:[%s1699_s19 + $0xa8] sm:$0xff]  ;;  %v2844_v11 = vadd.f32 %v775_v18, %v3708_v7  ;;  %v3712_v19 = vld [vmem:[#allocation24_spill] sm:$0xff]  ;;  %v3714_v10 = vld [vmem:[#allocation25_spill] sm:$0xff] }
  0xa9   : > { %3701 = vst [vmem:[#allocation30_spill] sm:$0xff] %v2829_v54  ;;  %v3710_v20 = vld [vmem:[#allocation23_spill] sm:$0xff]  ;;  %v2850_v53 = vadd.f32 %v777_v59, %v3712_v19  ;;  %v2853_v33 = vadd.f32 %v778_v63, %v3714_v10  ;;  %v1510_v60 = vld [vmem:[%s1699_s19 + $0xb0] sm:$0xff]  ;;  %v1511_v22 = vld [vmem:[%s1699_s19 + $0xc0] sm:$0xff]  ;;  %v851_v59 = vmul.f32 %v2796_v49, %v1499_v57  ;;  %v852_v63 = vmul.f32 %v2796_v49, %v1500_v56 }
  0xaa   : > { %3703 = vst [vmem:[#allocation31_spill] sm:$0xff] %v2832_v14  ;;  %v2847_v15 = vadd.f32 %v776_v44, %v3710_v20  ;;  %v1512_v46 = vld [vmem:[%s1699_s19 + $0xc8] sm:$0xff]  ;;  %v3716_v61 = vld [vmem:[#allocation26_spill] sm:$0xff]  ;;  %v1513_v44 = vld [vmem:[%s1699_s19 + $0xd8] sm:$0xff]  ;;  %v854_v20 = vmul.f32 %v2796_v49, %v1502_v27  ;;  %v856_v19 = vmul.f32 %v2796_v49, %v1504_v5  ;;  %v857_v56 = vmul.f32 %v2796_v49, %v1505_v62 }
  0xab   : > { %3705 = vst [vmem:[#allocation51_spill] sm:$0xff] %v2835_v0  ;;  %v2859_v16 = vadd.f32 %v779_v41, %v3716_v61  ;;  %v3718_v18 = vld [vmem:[#allocation27_spill] sm:$0xff]  ;;  %v1514_v38 = vld [vmem:[%s1699_s19 + $0xe0] sm:$0xff]  ;;  %v1515_v32 = vld [vmem:[%s1699_s19 + $0xf0] sm:$0xff]  ;;  %v853_v41 = vmul.f32 %v2796_v49, %v1501_v31  ;;  %v859_v45 = vmul.f32 %v2796_v49, %v1507_v43  ;;  %v860_v31 = vmul.f32 %v2796_v49, %v1508_v9 }
  0xac   : > { %3707 = vst [vmem:[#allocation55_spill] sm:$0xff] %v2838_v4  ;;  %v2862_v55 = vadd.f32 %v780_v36, %v3718_v18  ;;  %v1516_v25 = vld [vmem:[%s1699_s19 + $0xf8] sm:$0xff]  ;;  %v1517_v52 = vld [vmem:[%s1699_s19 + $0x108] sm:$0xff]  ;;  %v1518_v7 = vld [vmem:[%s1699_s19 + $0x110] sm:$0xff]  ;;  %v855_v36 = vmul.f32 %v2796_v49, %v1503_v6  ;;  %v858_v18 = vmul.f32 %v2796_v49, %v1506_v30  ;;  %v862_v5 = vmul.f32 %v2796_v49, %v1510_v60 }
  0xad   : > { %3709 = vst [vmem:[#allocation59_spill] sm:$0xff] %v2844_v11  ;;  %v1519_v10 = vld [vmem:[%s1699_s19 + $0x120] sm:$0xff]  ;;  %v1520_v57 = vld [vmem:[%s1699_s19 + $0x128] sm:$0xff]  ;;  %v1521_v61 = vld [vmem:[%s1699_s19 + $0x138] sm:$0xff]  ;;  %v865_v30 = vmul.f32 %v2796_v49, %v1513_v44  ;;  %v866_v43 = vmul.f32 %v2796_v49, %v1514_v38  ;;  %v868_v9 = vmul.f32 %v2796_v49, %v1516_v25  ;;  %v870_v60 = vmul.f32 %v2796_v49, %v1518_v7 }
  0xae   : > { %3711 = vst [vmem:[#allocation72_spill] sm:$0xff] %v2847_v15  ;;  %v1522_v27 = vld [vmem:[%s1699_s19 + $0x140] sm:$0xff]  ;;  %v1523_v34 = vld [vmem:[%s1699_s19 + $0x150] sm:$0xff]  ;;  %v1524_v6 = vld [vmem:[%s1699_s19 + $0x158] sm:$0xff]  ;;  %v867_v15 = vmul.f32 %v2796_v49, %v1515_v32  ;;  %v873_v0 = vmul.f32 %v2796_v49, %v1521_v61 }
  0xaf   : > { %3713 = vst [vmem:[#allocation73_spill] sm:$0xff] %v2850_v53  ;;  %v1525_v62 = vld [vmem:[%s1699_s19 + $0x168] sm:$0xff]  ;;  %v1526_v53 = vld [vmem:[%s1699_s19 + $0x170] sm:$0xff]  ;;  %v1529_v11 = vld [vmem:[%s1699_s19 + $0x198] sm:$0xff]  ;;  %v874_v44 = vmul.f32 %v2796_v49, %v1522_v27  ;;  %v875_v38 = vmul.f32 %v2796_v49, %v1523_v34  ;;  %v876_v32 = vmul.f32 %v2796_v49, %v1524_v6  ;;  %v2915_v27 = vadd.f32 %v851_v59, %v2750_v51 }
  0xb0   : > { %3715 = vst [vmem:[#allocation77_spill] sm:$0xff] %v2853_v33  ;;  %v864_v33 = vmul.f32 %v2796_v49, %v1512_v46  ;;  %v1530_v4 = vld [vmem:[%s1699_s19 + $0x1a0] sm:$0xff]  ;;  %v872_v46 = vmul.f32 %v2796_v49, %v1520_v57  ;;  %v877_v25 = vmul.f32 %v2796_v49, %v1525_v62  ;;  %v878_v14 = vmul.f32 %v2796_v49, %v1526_v53  ;;  %v3721_v7 = vld [vmem:[#allocation3_spill] sm:$0xff] }
  0xb1   : > { %3717 = vst [vmem:[#allocation78_spill] sm:$0xff] %v2859_v16  ;;  %v863_v16 = vmul.f32 %v2796_v49, %v1511_v22  ;;  %v871_v22 = vmul.f32 %v2796_v49, %v1519_v10  ;;  %v3720_v54 = vld [vmem:[#allocation2_spill] sm:$0xff]  ;;  %v880_v10 = vmul.f32 %v2796_v49, %v3721_v7  ;;  %v881_v57 = vmul.f32 %v2796_v49, %v1529_v11 }
  0xb2   : > { %3719 = vst [vmem:[#allocation79_spill] sm:$0xff] %v2862_v55  ;;  %v861_v55 = vmul.f32 %v2796_v49, %v1509_v21  ;;  %v869_v21 = vmul.f32 %v2796_v49, %v1517_v52  ;;  %v879_v52 = vmul.f32 %v2796_v49, %v3720_v54  ;;  %v882_v61 = vmul.f32 %v2796_v49, %v1530_v4  ;;  %v1534_v4 = vld [vmem:[%s1699_s19 + $0x51] sm:$0xff]  ;;  %v3724_v59 = vld [vmem:[#allocation51_spill] sm:$0xff] }
  0xb3   : > { %v2918_v34 = vadd.f32 %v852_v63, %v2753_v23  ;;  %v2921_v6 = vadd.f32 %v853_v41, %v2756_v47  ;;  %v2924_v53 = vadd.f32 %v854_v20, %v2759_v58  ;;  %v2927_v54 = vadd.f32 %v855_v36, %v2762_v26  ;;  %v3726_v63 = vld [vmem:[#allocation55_spill] sm:$0xff] }
  0xb4   : > { %v2930_v11 = vadd.f32 %v856_v19, %v2765_v29  ;;  %v2933_v51 = vadd.f32 %v857_v56, %v2768_v8  ;;  %v2936_v23 = vadd.f32 %v858_v18, %v2771_v17  ;;  %v2939_v47 = vadd.f32 %v859_v45, %v2774_v12  ;;  %v2959_v45 = vld [vmem:[%s3337_s1 + $0x7] ss:$0 sm:$0xff]  ;;  %v1536_v41 = vld [vmem:[%s1699_s19 + $0x69] sm:$0xff]  ;;  %v1539_v18 = vld [vmem:[%s1699_s19 + $0x91] sm:$0xff] }
  0xb5   : > { %v2942_v58 = vadd.f32 %v860_v31, %v2777_v39  ;;  %v2945_v26 = vadd.f32 %v861_v55, %v2780_v1  ;;  %v2948_v29 = vadd.f32 %v862_v5, %v2783_v50  ;;  %v2951_v8 = vadd.f32 %v863_v16, %v2786_v42  ;;  %v1531_v42 = vld [vmem:[%s1699_s19 + $0x31] sm:$0xff]  ;;  %v1538_v20 = vld [vmem:[%s1699_s19 + $0x81] sm:$0xff]  ;;  %v1540_v31 = vld [vmem:[%s1699_s19 + $0x99] sm:$0xff] }
  0xb6   : > { %v2954_v17 = vadd.f32 %v864_v33, %v2789_v13  ;;  %v2962_v12 = vadd.f32 %v865_v30, %v2799_v48  ;;  %v2965_v39 = vadd.f32 %v866_v43, %v2802_v37  ;;  %v2968_v1 = vadd.f32 %v867_v15, %v2805_v24  ;;  %v1532_v13 = vld [vmem:[%s1699_s19 + $0x39] sm:$0xff]  ;;  %v1535_v15 = vld [vmem:[%s1699_s19 + $0x61] sm:$0xff]  ;;  %v3730_v56 = vld [vmem:[#allocation72_spill] sm:$0xff] }
  0xb7   : > { %v2971_v50 = vadd.f32 %v868_v9, %v2808_v35  ;;  %v2976_v49 = vadd.f32 %v869_v21, %v2814_v2  ;;  %v2979_v48 = vadd.f32 %v870_v60, %v2817_v40  ;;  %v2982_v37 = vadd.f32 %v871_v22, %v2820_v28  ;;  %v1533_v35 = vld [vmem:[%s1699_s19 + $0x49] sm:$0xff]  ;;  %v3722_v33 = vld [vmem:[#allocation30_spill] sm:$0xff]  ;;  %v3732_v43 = vld [vmem:[#allocation73_spill] sm:$0xff] }
  0xb8   : > { %v2985_v24 = vadd.f32 %v872_v46, %v2823_v3  ;;  %v2991_v16 = vadd.f32 %v873_v0, %v3722_v33  ;;  %v3723_v2 = vld [vmem:[#allocation31_spill] sm:$0xff]  ;;  %v2997_v40 = vadd.f32 %v875_v38, %v3724_v59  ;;  %v3000_v28 = vadd.f32 %v876_v32, %v3726_v63  ;;  %v1537_v3 = vld [vmem:[%s1699_s19 + $0x79] sm:$0xff]  ;;  %v1542_v46 = vld [vmem:[%s1699_s19 + $0xb1] sm:$0xff] }
  0xb9   : > { %v2994_v55 = vadd.f32 %v874_v44, %v3723_v2  ;;  %v3728_v36 = vld [vmem:[#allocation59_spill] sm:$0xff]  ;;  %v3009_v0 = vadd.f32 %v878_v14, %v3730_v56  ;;  %v950_v62 = vmul.f32 %v2959_v45, %v1531_v42  ;;  %v951_v30 = vmul.f32 %v2959_v45, %v1532_v13  ;;  %v3734_v21 = vld [vmem:[#allocation77_spill] sm:$0xff]  ;;  %v3736_v14 = vld [vmem:[#allocation78_spill] sm:$0xff] }
  0xba   : > { %3725 = vst [vmem:[#allocation80_spill] sm:$0xff] %v2997_v40  ;;  %v3006_v19 = vadd.f32 %v877_v25, %v3728_v36  ;;  %v1541_v5 = vld [vmem:[%s1699_s19 + $0xa9] sm:$0xff]  ;;  %v3017_v9 = vadd.f32 %v879_v52, %v3732_v43  ;;  %v3020_v60 = vadd.f32 %v880_v10, %v3734_v21  ;;  %v3023_v22 = vadd.f32 %v881_v57, %v3736_v14  ;;  %v1543_v44 = vld [vmem:[%s1699_s19 + $0xc1] sm:$0xff]  ;;  %v1563_v42 = vld [vmem:[%s1699_s19 + $0x32] sm:$0xff] }
  0xbb   : > { %3727 = vst [vmem:[#allocation84_spill] sm:$0xff] %v3000_v28  ;;  %v952_v38 = vmul.f32 %v2959_v45, %v1533_v35  ;;  %v3031_v32 = vld [vmem:[%s3337_s1 + $0x8] ss:$0 sm:$0xff]  ;;  %v953_v7 = vmul.f32 %v2959_v45, %v1534_v4  ;;  %v954_v10 = vmul.f32 %v2959_v45, %v1535_v15  ;;  %v955_v57 = vmul.f32 %v2959_v45, %v1536_v41  ;;  %v1564_v13 = vld [vmem:[%s1699_s19 + $0x3a] sm:$0xff]  ;;  %v1565_v35 = vld [vmem:[%s1699_s19 + $0x4a] sm:$0xff] }
  0xbc   : > { %3729 = vst [vmem:[#allocation85_spill] sm:$0xff] %v3006_v19  ;;  %v3738_v25 = vld [vmem:[#allocation79_spill] sm:$0xff]  ;;  %v1545_v2 = vld [vmem:[%s1699_s19 + $0xd9] sm:$0xff]  ;;  %v956_v63 = vmul.f32 %v2959_v45, %v1537_v3  ;;  %v3050_v4 = vmul.f32 %v2959_v45, %v1539_v18  ;;  %v3053_v15 = vmul.f32 %v2959_v45, %v1540_v31  ;;  %v1547_v41 = vld [vmem:[%s1699_s19 + $0xf1] sm:$0xff]  ;;  %v3058_v56 = vmul.f32 %v2959_v45, %v1541_v5 }
  0xbd   : > { %3731 = vst [vmem:[#allocation32_spill] sm:$0xff] %v3009_v0  ;;  %v3034_v52 = vadd.f32 %v882_v61, %v3738_v25  ;;  %v1544_v33 = vld [vmem:[%s1699_s19 + $0xc9] sm:$0xff]  ;;  %v1546_v59 = vld [vmem:[%s1699_s19 + $0xe1] sm:$0xff]  ;;  %v3047_v61 = vmul.f32 %v2959_v45, %v1538_v20  ;;  %v1548_v36 = vld [vmem:[%s1699_s19 + $0xf9] sm:$0xff]  ;;  %v3061_v43 = vmul.f32 %v2959_v45, %v1542_v46  ;;  %v982_v3 = vadd.f32 %v950_v62, %v2915_v27 }
  0xbe   : > { %3733 = vst [vmem:[#allocation33_spill] sm:$0xff] %v3017_v9  ;;  %v983_v20 = vadd.f32 %v951_v30, %v2918_v34  ;;  %v1566_v21 = vld [vmem:[%s1699_s19 + $0x52] sm:$0xff]  ;;  %v1549_v18 = vld [vmem:[%s1699_s19 + $0x109] sm:$0xff]  ;;  %v1551_v31 = vld [vmem:[%s1699_s19 + $0x121] sm:$0xff]  ;;  %v984_v25 = vadd.f32 %v952_v38, %v2921_v6  ;;  %v1050_v5 = vmul.f32 %v3031_v32, %v1564_v13  ;;  %v3074_v46 = vmul.f32 %v2959_v45, %v1543_v44 }
  0xbf   : > { %3735 = vst [vmem:[#allocation34_spill] sm:$0xff] %v3020_v60  ;;  %v1550_v14 = vld [vmem:[%s1699_s19 + $0x111] sm:$0xff]  ;;  %v3077_v27 = vmul.f32 %v2959_v45, %v1544_v33  ;;  %v3080_v34 = vmul.f32 %v2959_v45, %v1545_v2  ;;  %v3083_v6 = vmul.f32 %v2959_v45, %v1546_v59  ;;  %v1567_v62 = vld [vmem:[%s1699_s19 + $0x62] sm:$0xff]  ;;  %v3088_v38 = vmul.f32 %v2959_v45, %v1547_v41 }
  0xc0   : > { %3737 = vst [vmem:[#allocation35_spill] sm:$0xff] %v3023_v22  ;;  %v1051_v22 = vmul.f32 %v3031_v32, %v1565_v35  ;;  %v1552_v30 = vld [vmem:[%s1699_s19 + $0x129] sm:$0xff]  ;;  %v985_v44 = vadd.f32 %v953_v7, %v2924_v53  ;;  %v1052_v35 = vmul.f32 %v3031_v32, %v1566_v21  ;;  %v3097_v33 = vmul.f32 %v2959_v45, %v1549_v18  ;;  %v1554_v53 = vld [vmem:[%s1699_s19 + $0x141] sm:$0xff]  ;;  %v1555_v7 = vld [vmem:[%s1699_s19 + $0x151] sm:$0xff] }
  0xc1   : > { %3739 = vst [vmem:[#allocation36_spill] sm:$0xff] %v3034_v52  ;;  %v1049_v52 = vmul.f32 %v3031_v32, %v1563_v42  ;;  %v3091_v42 = vmul.f32 %v2959_v45, %v1548_v36  ;;  %v1568_v13 = vld [vmem:[%s1699_s19 + $0x6a] sm:$0xff]  ;;  %v3100_v2 = vmul.f32 %v2959_v45, %v1550_v14  ;;  %v3103_v59 = vmul.f32 %v2959_v45, %v1551_v31  ;;  %v1553_v36 = vld [vmem:[%s1699_s19 + $0x139] sm:$0xff] }
  0xc2   : > { %v986_v41 = vadd.f32 %v954_v10, %v2927_v54  ;;  %v1053_v60 = vmul.f32 %v3031_v32, %v1567_v62  ;;  %v1082_v9 = vadd.f32 %v1050_v5, %v983_v20  ;;  %v1083_v18 = vadd.f32 %v1051_v22, %v984_v25  ;;  %v1569_v31 = vld [vmem:[%s1699_s19 + $0x7a] sm:$0xff]  ;;  %v1557_v10 = vld [vmem:[%s1699_s19 + $0x169] sm:$0xff]  ;;  %v1558_v28 = vld [vmem:[%s1699_s19 + $0x171] sm:$0xff] }
  0xc3   : > { %v1081_v21 = vadd.f32 %v1049_v52, %v982_v3  ;;  %v3111_v0 = vmul.f32 %v2959_v45, %v1552_v30  ;;  %v987_v14 = vadd.f32 %v955_v57, %v2930_v11  ;;  %v1054_v19 = vmul.f32 %v3031_v32, %v1568_v13  ;;  %v1556_v54 = vld [vmem:[%s1699_s19 + $0x159] sm:$0xff]  ;;  %v1570_v20 = vld [vmem:[%s1699_s19 + $0x82] sm:$0xff] }
  0xc4   : > { %v1084_v40 = vadd.f32 %v1052_v35, %v985_v44  ;;  %v1115_v22 = vsel %vm1113_vm0, %v1082_v9, 0.0  ;;  %v1117_v52 = vsel %vm1113_vm0, %v1083_v18, 0.0  ;;  %v3123_v3 = vmul.f32 %v2959_v45, %v1553_v36  ;;  %v1561_v5 = vld [vmem:[%s1699_s19 + $0x199] sm:$0xff] }
  0xc5   : > { %v1114_v62 = vsel %vm1113_vm0, %v1081_v21, 0.0  ;;  %v3126_v11 = vmul.f32 %v2959_v45, %v1554_v53  ;;  %v3129_v57 = vmul.f32 %v2959_v45, %v1555_v7  ;;  %v988_v30 = vadd.f32 %v956_v63, %v2933_v51  ;;  %v1571_v7 = vld [vmem:[%s1699_s19 + $0x92] sm:$0xff]  ;;  %v1572_v63 = vld [vmem:[%s1699_s19 + $0x9a] sm:$0xff] }
  0xc6   : > { %v1116_v25 = vadd.f32 %v1115_v22, %v1114_v62  ;;  %v1055_v44 = vmul.f32 %v3031_v32, %v1569_v31  ;;  %v1085_v13 = vadd.f32 %v1053_v60, %v986_v41  ;;  %v1119_v35 = vsel %vm1113_vm0, %v1084_v40, 0.0  ;;  %v1562_v62 = vld [vmem:[%s1699_s19 + $0x1a1] sm:$0xff] }
  0xc7   : > { %3740 = vst [vmem:[#allocation37_spill] sm:$0xff] %v3126_v11  ;;  %v3137_v36 = vmul.f32 %v2959_v45, %v1556_v54  ;;  %v3140_v53 = vmul.f32 %v2959_v45, %v1557_v10  ;;  %v3143_v11 = vmul.f32 %v2959_v45, %v1558_v28  ;;  %v989_v51 = vadd.f32 %v3047_v61, %v2936_v23  ;;  %v3742_v54 = vld [vmem:[#allocation15_spill] sm:$0xff]  ;;  %v3743_v28 = vld [vmem:[#allocation16_spill] sm:$0xff] }
  0xc8   : > { %3741 = vst [vmem:[#allocation38_spill] sm:$0xff] %v3129_v57  ;;  %v1118_v57 = vadd.f32 %v1117_v52, %v1116_v25  ;;  %v1056_v60 = vmul.f32 %v3031_v32, %v1570_v20  ;;  %v1086_v41 = vadd.f32 %v1054_v19, %v987_v14  ;;  %v1121_v31 = vsel %vm1113_vm0, %v1085_v13, 0.0 }
  0xc9   : > { %v3154_v10 = vmul.f32 %v2959_v45, %v3742_v54  ;;  %v3158_v22 = vmul.f32 %v2959_v45, %v3743_v28  ;;  %v3161_v52 = vmul.f32 %v2959_v45, %v1561_v5  ;;  %v990_v23 = vadd.f32 %v3050_v4, %v2939_v47  ;;  %v1573_v28 = vld [vmem:[%s1699_s19 + $0xaa] sm:$0xff] }
  0xca   : > { %v1120_v25 = vadd.f32 %v1119_v35, %v1118_v57  ;;  %v1057_v61 = vmul.f32 %v3031_v32, %v1571_v7  ;;  %v1087_v19 = vadd.f32 %v1055_v44, %v988_v30  ;;  %v1123_v14 = vsel %vm1113_vm0, %v1086_v41, 0.0  ;;  %v1574_v57 = vld [vmem:[%s1699_s19 + $0xb2] sm:$0xff] }
  0xcb   : > { %3744 = vst [vmem:[#allocation39_spill] sm:$0xff] %v3161_v52  ;;  %v3168_v20 = vmul.f32 %v2959_v45, %v1562_v62  ;;  %v991_v54 = vadd.f32 %v3053_v15, %v2942_v58  ;;  %v1058_v5 = vmul.f32 %v3031_v32, %v1572_v63  ;;  %v1088_v35 = vadd.f32 %v1056_v60, %v989_v51  ;;  %v1575_v58 = vld [vmem:[%s1699_s19 + $0xc2] sm:$0xff] }
  0xcc   : > { %v1122_v52 = vadd.f32 %v1121_v31, %v1120_v25  ;;  %v1125_v47 = vsel %vm1113_vm0, %v1087_v19, 0.0  ;;  %v1185_v4 = vmul.f32 %v1081_v21, %v1081_v21  ;;  %v1186_v30 = vmul.f32 %v1082_v9, %v1082_v9 }
  0xcd   : > { %v992_v44 = vadd.f32 %v3058_v56, %v2945_v26  ;;  %v993_v45 = vadd.f32 %v3061_v43, %v2948_v29  ;;  %v1187_v62 = vmul.f32 %v1083_v18, %v1083_v18  ;;  %v1059_v15 = vmul.f32 %v3031_v32, %v1573_v28  ;;  %v1576_v56 = vld [vmem:[%s1699_s19 + $0xca] sm:$0xff] }
  0xce   : > { %v1124_v7 = vadd.f32 %v1123_v14, %v1122_v52  ;;  %v1089_v63 = vadd.f32 %v1057_v61, %v990_v23  ;;  %v1127_v51 = vsel %vm1113_vm0, %v1088_v35, 0.0  ;;  %v1188_v60 = vmul.f32 %v1084_v40, %v1084_v40 }
  0xcf   : > { %v994_v21 = vadd.f32 %v3074_v46, %v2951_v8  ;;  %v1060_v9 = vmul.f32 %v3031_v32, %v1574_v57  ;;  %v1090_v31 = vadd.f32 %v1058_v5, %v991_v54  ;;  %v1189_v43 = vmul.f32 %v1085_v13, %v1085_v13  ;;  %v1577_v8 = vld [vmem:[%s1699_s19 + $0xda] sm:$0xff] }
  0xd0   : > { %v1126_v26 = vadd.f32 %v1125_v47, %v1124_v7  ;;  %v1129_v29 = vsel %vm1113_vm0, %v1089_v63, 0.0  ;;  %v1217_v18 = vsel %vm1113_vm0, %v1185_v4, 0.0  ;;  %v1218_v52 = vsel %vm1113_vm0, %v1186_v30, 0.0  ;;  %v1578_v4 = vld [vmem:[%s1699_s19 + $0xe2] sm:$0xff] }
  0xd1   : > { %v1061_v25 = vmul.f32 %v3031_v32, %v1575_v58  ;;  %v1219_v40 = vadd.f32 %v1218_v52, %v1217_v18  ;;  %v1220_v61 = vsel %vm1113_vm0, %v1187_v62, 0.0  ;;  %v1091_v46 = vadd.f32 %v1059_v15, %v992_v44 }
  0xd2   : > { %v1128_v23 = vadd.f32 %v1127_v51, %v1126_v26  ;;  %v1131_v14 = vsel %vm1113_vm0, %v1090_v31, 0.0  ;;  %v1190_v54 = vmul.f32 %v1086_v41, %v1086_v41  ;;  %v1222_v28 = vsel %vm1113_vm0, %v1188_v60, 0.0 }
  0xd3   : > { %v995_v13 = vadd.f32 %v3077_v27, %v2954_v17  ;;  %v1062_v5 = vmul.f32 %v3031_v32, %v1576_v56  ;;  %v1221_v47 = vadd.f32 %v1220_v61, %v1219_v40  ;;  %v1092_v30 = vadd.f32 %v1060_v9, %v993_v45  ;;  %v1579_v17 = vld [vmem:[%s1699_s19 + $0xf2] sm:$0xff] }
  0xd4   : > { %v1130_v57 = vadd.f32 %v1129_v29, %v1128_v23  ;;  %v1133_v7 = vsel %vm1113_vm0, %v1091_v46, 0.0  ;;  %v1191_v62 = vmul.f32 %v1087_v19, %v1087_v19  ;;  %v1224_v44 = vsel %vm1113_vm0, %v1189_v43, 0.0 }
  0xd5   : > { %v996_v41 = vadd.f32 %v3080_v34, %v2962_v12  ;;  %v1063_v58 = vmul.f32 %v3031_v32, %v1577_v8  ;;  %v1223_v51 = vadd.f32 %v1222_v28, %v1221_v47  ;;  %v1093_v27 = vadd.f32 %v1061_v25, %v994_v21  ;;  %v1580_v12 = vld [vmem:[%s1699_s19 + $0xfa] sm:$0xff] }
  0xd6   : > { %v1132_v15 = vadd.f32 %v1131_v14, %v1130_v57  ;;  %v1135_v60 = vsel %vm1113_vm0, %v1092_v30, 0.0  ;;  %v1192_v26 = vmul.f32 %v1088_v35, %v1088_v35  ;;  %v1226_v45 = vsel %vm1113_vm0, %v1190_v54, 0.0 }
  0xd7   : > { %v997_v19 = vadd.f32 %v3083_v6, %v2965_v39  ;;  %v1064_v9 = vmul.f32 %v3031_v32, %v1578_v4  ;;  %v1225_v29 = vadd.f32 %v1224_v44, %v1223_v51  ;;  %v1094_v34 = vadd.f32 %v1062_v5, %v995_v13  ;;  %v1581_v39 = vld [vmem:[%s1699_s19 + $0x10a] sm:$0xff] }
  0xd8   : > { %v1134_v56 = vadd.f32 %v1133_v7, %v1132_v15  ;;  %v1137_v43 = vsel %vm1113_vm0, %v1093_v27, 0.0  ;;  %v1193_v18 = vmul.f32 %v1089_v63, %v1089_v63  ;;  %v1228_v21 = vsel %vm1113_vm0, %v1191_v62, 0.0 }
  0xd9   : > { %v998_v35 = vadd.f32 %v3088_v38, %v2968_v1  ;;  %v1065_v52 = vmul.f32 %v3031_v32, %v1579_v17  ;;  %v1227_v23 = vadd.f32 %v1226_v45, %v1225_v29  ;;  %v1095_v6 = vadd.f32 %v1063_v58, %v996_v41  ;;  %v1582_v1 = vld [vmem:[%s1699_s19 + $0x112] sm:$0xff] }
  0xda   : > { %v1136_v25 = vadd.f32 %v1135_v60, %v1134_v56  ;;  %v1139_v40 = vsel %vm1113_vm0, %v1094_v34, 0.0  ;;  %v1194_v61 = vmul.f32 %v1090_v31, %v1090_v31  ;;  %v1230_v8 = vsel %vm1113_vm0, %v1192_v26, 0.0 }
  0xdb   : > { %v999_v63 = vadd.f32 %v3091_v42, %v2971_v50  ;;  %v1066_v14 = vmul.f32 %v3031_v32, %v1580_v12  ;;  %v1229_v28 = vadd.f32 %v1228_v21, %v1227_v23  ;;  %v1096_v38 = vadd.f32 %v1064_v9, %v997_v19  ;;  %v1583_v50 = vld [vmem:[%s1699_s19 + $0x122] sm:$0xff] }
  0xdc   : > { %v1138_v54 = vadd.f32 %v1137_v43, %v1136_v25  ;;  %v1141_v13 = vsel %vm1113_vm0, %v1095_v6, 0.0  ;;  %v1195_v5 = vmul.f32 %v1091_v46, %v1091_v46  ;;  %v1232_v57 = vsel %vm1113_vm0, %v1193_v18, 0.0 }
  0xdd   : > { %v1000_v31 = vadd.f32 %v3097_v33, %v2976_v49  ;;  %v1067_v47 = vmul.f32 %v3031_v32, %v1581_v39  ;;  %v1231_v7 = vadd.f32 %v1230_v8, %v1229_v28  ;;  %v1097_v42 = vadd.f32 %v1065_v52, %v998_v35  ;;  %v1584_v49 = vld [vmem:[%s1699_s19 + $0x12a] sm:$0xff] }
  0xde   : > { %v1140_v4 = vadd.f32 %v1139_v40, %v1138_v54  ;;  %v1143_v62 = vsel %vm1113_vm0, %v1096_v38, 0.0  ;;  %v1196_v44 = vmul.f32 %v1092_v30, %v1092_v30  ;;  %v1234_v41 = vsel %vm1113_vm0, %v1194_v61, 0.0 }
  0xdf   : > { %v1001_v46 = vadd.f32 %v3100_v2, %v2979_v48  ;;  %v1068_v58 = vmul.f32 %v3031_v32, %v1582_v1  ;;  %v1233_v51 = vadd.f32 %v1232_v57, %v1231_v7  ;;  %v1098_v33 = vadd.f32 %v1066_v14, %v999_v63  ;;  %v1585_v48 = vld [vmem:[%s1699_s19 + $0x13a] sm:$0xff] }
  0xe0   : > { %v1142_v15 = vadd.f32 %v1141_v13, %v1140_v4  ;;  %v1145_v17 = vsel %vm1113_vm0, %v1097_v42, 0.0  ;;  %v1197_v60 = vmul.f32 %v1093_v27, %v1093_v27  ;;  %v1236_v26 = vsel %vm1113_vm0, %v1195_v5, 0.0  ;;  %v3745_v14 = vld [vmem:[#allocation37_spill] sm:$0xff] }
  0xe1   : > { %v1002_v30 = vadd.f32 %v3103_v59, %v2982_v37  ;;  %v1069_v45 = vmul.f32 %v3031_v32, %v1583_v50  ;;  %v1235_v9 = vadd.f32 %v1234_v41, %v1233_v51  ;;  %v1099_v2 = vadd.f32 %v1067_v47, %v1000_v31  ;;  %v1586_v37 = vld [vmem:[%s1699_s19 + $0x142] sm:$0xff]  ;;  %v3746_v31 = vld [vmem:[#allocation80_spill] sm:$0xff] }
  0xe2   : > { %v1144_v19 = vadd.f32 %v1143_v62, %v1142_v15  ;;  %v1147_v56 = vsel %vm1113_vm0, %v1098_v33, 0.0  ;;  %v1198_v29 = vmul.f32 %v1094_v34, %v1094_v34  ;;  %v1238_v12 = vsel %vm1113_vm0, %v1196_v44, 0.0  ;;  %v3747_v47 = vld [vmem:[#allocation38_spill] sm:$0xff] }
  0xe3   : > { %v1003_v27 = vadd.f32 %v3111_v0, %v2985_v24  ;;  %v1070_v43 = vmul.f32 %v3031_v32, %v1584_v49  ;;  %v1237_v21 = vadd.f32 %v1236_v26, %v1235_v9  ;;  %v1100_v59 = vadd.f32 %v1068_v58, %v1001_v46  ;;  %v1587_v24 = vld [vmem:[%s1699_s19 + $0x152] sm:$0xff] }
  0xe4   : > { %v1146_v18 = vadd.f32 %v1145_v17, %v1144_v19  ;;  %v1149_v35 = vsel %vm1113_vm0, %v1099_v2, 0.0  ;;  %v1199_v52 = vmul.f32 %v1095_v6, %v1095_v6  ;;  %v1240_v25 = vsel %vm1113_vm0, %v1197_v60, 0.0  ;;  %v3748_v58 = vld [vmem:[#allocation84_spill] sm:$0xff]  ;;  %v3749_v19 = vld [vmem:[#allocation85_spill] sm:$0xff] }
  0xe5   : > { %v1004_v34 = vadd.f32 %v3123_v3, %v2991_v16  ;;  %v1071_v23 = vmul.f32 %v3031_v32, %v1585_v48  ;;  %v1239_v40 = vadd.f32 %v1238_v12, %v1237_v21  ;;  %v1101_v0 = vadd.f32 %v1069_v45, %v1002_v30  ;;  %v1588_v16 = vld [vmem:[%s1699_s19 + $0x15a] sm:$0xff]  ;;  %v1590_v17 = vld [vmem:[%s1699_s19 + $0x172] sm:$0xff] }
  0xe6   : > { %v1148_v39 = vadd.f32 %v1147_v56, %v1146_v18  ;;  %v1151_v61 = vsel %vm1113_vm0, %v1100_v59, 0.0  ;;  %v1200_v8 = vmul.f32 %v1096_v38, %v1096_v38  ;;  %v1242_v63 = vsel %vm1113_vm0, %v1198_v29, 0.0 }
  0xe7   : > { %v1005_v6 = vadd.f32 %v3745_v14, %v2994_v55  ;;  %v1072_v54 = vmul.f32 %v3031_v32, %v1586_v37  ;;  %v1241_v1 = vadd.f32 %v1240_v25, %v1239_v40  ;;  %v1102_v3 = vadd.f32 %v1070_v43, %v1003_v27  ;;  %v1589_v55 = vld [vmem:[%s1699_s19 + $0x16a] sm:$0xff] }
  0xe8   : > { %v1150_v28 = vadd.f32 %v1149_v35, %v1148_v39  ;;  %v1153_v13 = vsel %vm1113_vm0, %v1101_v0, 0.0  ;;  %v1201_v5 = vmul.f32 %v1097_v42, %v1097_v42  ;;  %v1244_v57 = vsel %vm1113_vm0, %v1199_v52, 0.0  ;;  %v3750_v43 = vld [vmem:[#allocation32_spill] sm:$0xff] }
  0xe9   : > { %v1006_v38 = vadd.f32 %v3747_v47, %v3746_v31  ;;  %v1073_v4 = vmul.f32 %v3031_v32, %v1587_v24  ;;  %v1243_v50 = vadd.f32 %v1242_v63, %v1241_v1  ;;  %v1103_v62 = vadd.f32 %v1071_v23, %v1004_v34  ;;  %v3751_v34 = vld [vmem:[#allocation33_spill] sm:$0xff]  ;;  %v3755_v47 = vld [vmem:[#allocation35_spill] sm:$0xff] }
  0xea   : > { %v1152_v7 = vadd.f32 %v1151_v61, %v1150_v28  ;;  %v1155_v44 = vsel %vm1113_vm0, %v1102_v3, 0.0  ;;  %v1202_v41 = vmul.f32 %v1098_v33, %v1098_v33  ;;  %v1246_v46 = vsel %vm1113_vm0, %v1200_v8, 0.0 }
  0xeb   : > { %v1007_v15 = vadd.f32 %v3137_v36, %v3748_v58  ;;  %v1074_v42 = vmul.f32 %v3031_v32, %v1588_v16  ;;  %v1245_v49 = vadd.f32 %v1244_v57, %v1243_v50  ;;  %v1104_v60 = vadd.f32 %v1072_v54, %v1005_v6  ;;  %v3753_v6 = vld [vmem:[#allocation34_spill] sm:$0xff]  ;;  %v3754_v54 = vld [vmem:[#allocation29_spill] sm:$0xff] }
  0xec   : > { %v1154_v51 = vadd.f32 %v1153_v13, %v1152_v7  ;;  %v1157_v26 = vsel %vm1113_vm0, %v1103_v62, 0.0  ;;  %v1203_v30 = vmul.f32 %v1099_v2, %v1099_v2  ;;  %v1248_v45 = vsel %vm1113_vm0, %v1201_v5, 0.0  ;;  %v1594_v16 = vld [vmem:[%s1699_s19 + $0x1a2] sm:$0xff] }
  0xed   : > { %v1008_v9 = vadd.f32 %v3140_v53, %v3749_v19  ;;  %v1075_v33 = vmul.f32 %v3031_v32, %v1589_v55  ;;  %v1247_v56 = vadd.f32 %v1246_v46, %v1245_v49  ;;  %v1105_v29 = vadd.f32 %v1073_v4, %v1006_v38  ;;  %v3756_v38 = vld [vmem:[#allocation39_spill] sm:$0xff]  ;;  %v3757_v46 = vld [vmem:[#allocation36_spill] sm:$0xff] }
  0xee   : > { %v1156_v48 = vadd.f32 %v1155_v44, %v1154_v51  ;;  %v1159_v36 = vsel %vm1113_vm0, %v1104_v60, 0.0  ;;  %v1204_v12 = vmul.f32 %v1100_v59, %v1100_v59  ;;  %v1250_v27 = vsel %vm1113_vm0, %v1202_v41, 0.0  ;;  %v3752_v59 = vld [vmem:[#allocation28_spill] sm:$0xff] }
  0xef   : > { %v1009_v18 = vadd.f32 %v3143_v11, %v3750_v43  ;;  %v1076_v2 = vmul.f32 %v3031_v32, %v1590_v17  ;;  %v1249_v37 = vadd.f32 %v1248_v45, %v1247_v56  ;;  %v1106_v35 = vadd.f32 %v1074_v42, %v1007_v15  ;;  %v1593_v11 = vld [vmem:[%s1699_s19 + $0x19a] sm:$0xff] }
  0xf0   : > { %v1158_v21 = vadd.f32 %v1157_v26, %v1156_v48  ;;  %v1161_v53 = vsel %vm1113_vm0, %v1105_v29, 0.0  ;;  %v1205_v52 = vmul.f32 %v1101_v0, %v1101_v0  ;;  %v1252_v25 = vsel %vm1113_vm0, %v1203_v30, 0.0 }
  0xf1   : > { %v1010_v23 = vadd.f32 %v3154_v10, %v3751_v34  ;;  %v1077_v39 = vmul.f32 %v3031_v32, %v3752_v59  ;;  %v1251_v24 = vadd.f32 %v1250_v27, %v1249_v37  ;;  %v1107_v61 = vadd.f32 %v1075_v33, %v1008_v9 }
  0xf2   : > { %v1160_v40 = vadd.f32 %v1159_v36, %v1158_v21  ;;  %v1163_v8 = vsel %vm1113_vm0, %v1106_v35, 0.0  ;;  %v1206_v63 = vmul.f32 %v1102_v3, %v1102_v3  ;;  %v1254_v14 = vsel %vm1113_vm0, %v1204_v12, 0.0 }
  0xf3   : > { %v1011_v0 = vadd.f32 %v3158_v22, %v3753_v6  ;;  %v1078_v28 = vmul.f32 %v3031_v32, %v3754_v54  ;;  %v1253_v10 = vadd.f32 %v1252_v25, %v1251_v24  ;;  %v1108_v13 = vadd.f32 %v1076_v2, %v1009_v18 }
  0xf4   : > { %v1162_v1 = vadd.f32 %v1161_v53, %v1160_v40  ;;  %v1165_v5 = vsel %vm1113_vm0, %v1107_v61, 0.0  ;;  %v1207_v57 = vmul.f32 %v1103_v62, %v1103_v62  ;;  %v1256_v31 = vsel %vm1113_vm0, %v1205_v52, 0.0 }
  0xf5   : > { %v1012_v3 = vadd.f32 %v3756_v38, %v3755_v47  ;;  %v1079_v4 = vmul.f32 %v3031_v32, %v1593_v11  ;;  %v1255_v50 = vadd.f32 %v1254_v14, %v1253_v10  ;;  %v1109_v22 = vadd.f32 %v1077_v39, %v1010_v23 }
  0xf6   : > { %v1164_v7 = vadd.f32 %v1163_v8, %v1162_v1  ;;  %v1167_v55 = vsel %vm1113_vm0, %v1108_v13, 0.0  ;;  %v1208_v44 = vmul.f32 %v1104_v60, %v1104_v60  ;;  %v1258_v41 = vsel %vm1113_vm0, %v1206_v63, 0.0 }
  0xf7   : > { %v1013_v58 = vadd.f32 %v3168_v20, %v3757_v46  ;;  %v1080_v62 = vmul.f32 %v3031_v32, %v1594_v16  ;;  %v1257_v42 = vadd.f32 %v1256_v31, %v1255_v50  ;;  %v1110_v51 = vadd.f32 %v1078_v28, %v1011_v0 }
  0xf8   : > { %v1166_v15 = vadd.f32 %v1165_v5, %v1164_v7  ;;  %v1169_v49 = vsel %vm1113_vm0, %v1109_v22, 0.0  ;;  %v1209_v17 = vmul.f32 %v1105_v29, %v1105_v29  ;;  %v1260_v26 = vsel %vm1113_vm0, %v1207_v57, 0.0 }
  0xf9   : > { %v1259_v45 = vadd.f32 %v1258_v41, %v1257_v42  ;;  %v1111_v19 = vadd.f32 %v1079_v4, %v1012_v3  ;;  %v1171_v60 = vsel %vm1113_vm0, %v1110_v51, 0.0  ;;  %v1210_v9 = vmul.f32 %v1106_v35, %v1106_v35 }
  0xfa   : > { %v1168_v30 = vadd.f32 %v1167_v55, %v1166_v15  ;;  %v1262_v33 = vsel %vm1113_vm0, %v1208_v44, 0.0  ;;  %v1112_v56 = vadd.f32 %v1080_v62, %v1013_v58  ;;  %v1211_v36 = vmul.f32 %v1107_v61, %v1107_v61 }
  0xfb   : > { %v1261_v20 = vadd.f32 %v1260_v26, %v1259_v45  ;;  %v1173_v32 = vsel %vm1113_vm0, %v1111_v19, 0.0  ;;  %v1264_v12 = vsel %vm1113_vm0, %v1209_v17, 0.0  ;;  %v1212_v18 = vmul.f32 %v1108_v13, %v1108_v13 }
  0xfc   : > { %v1170_v48 = vadd.f32 %v1169_v49, %v1168_v30  ;;  %v1175_v43 = vsel %vm1113_vm0, %v1112_v56, 0.0  ;;  %v1266_v2 = vsel %vm1113_vm0, %v1210_v9, 0.0  ;;  %v1213_v35 = vmul.f32 %v1109_v22, %v1109_v22 }
  0xfd   : > { %v1263_v29 = vadd.f32 %v1262_v33, %v1261_v20  ;;  %v1268_v53 = vsel %vm1113_vm0, %v1211_v36, 0.0  ;;  %v1214_v34 = vmul.f32 %v1110_v51, %v1110_v51  ;;  %v1270_v23 = vsel %vm1113_vm0, %v1212_v18, 0.0 }
  0xfe   : > { %v1172_v27 = vadd.f32 %v1171_v60, %v1170_v48  ;;  %v1215_v40 = vmul.f32 %v1111_v19, %v1111_v19  ;;  %v1272_v24 = vsel %vm1113_vm0, %v1213_v35, 0.0  ;;  %v1216_v8 = vmul.f32 %v1112_v56, %v1112_v56 }
  0xff   : > { %v1265_v37 = vadd.f32 %v1264_v12, %v1263_v29  ;;  %v1274_v63 = vsel %vm1113_vm0, %v1214_v34, 0.0 }
 0x100   : > { %v1174_v21 = vadd.f32 %v1173_v32, %v1172_v27  ;;  %v1276_v0 = vsel %vm1113_vm0, %v1215_v40, 0.0  ;;  %v1278_v1 = vsel %vm1113_vm0, %v1216_v8, 0.0 }
 0x101   : > { %v1267_v25 = vadd.f32 %v1266_v2, %v1265_v37 }
 0x102   : > { %v1176_v52 = vadd.f32 %v1175_v43, %v1174_v21 }
 0x103   : > { %v1269_v39 = vadd.f32 %v1268_v53, %v1267_v25 }
 0x104   : > { %v1177_v59 = vrot.slane %v1176_v52, 4 }
 0x105   : > { %v1271_v61 = vadd.f32 %v1270_v23, %v1269_v39 }
 0x106   : > { %v1178_v11 = vadd.f32 %v1177_v59, %v1176_v52 }
 0x107   : > { %v1273_v6 = vadd.f32 %v1272_v24, %v1271_v61 }
 0x108   : > { %v1179_v14 = vrot.slane %v1178_v11, 2 }
 0x109   : > { %v1275_v28 = vadd.f32 %v1274_v63, %v1273_v6 }
 0x10a   : > { %v1180_v54 = vadd.f32 %v1179_v14, %v1178_v11 }
 0x10b   : > { %v1277_v16 = vadd.f32 %v1276_v0, %v1275_v28 }
 0x10c   : > { %v1181_v10 = vrot.slane %v1180_v54, 1 }
 0x10d   : > { %v1279_v5 = vadd.f32 %v1278_v1, %v1277_v16 }
 0x10e   : > { %v1182_v13 = vadd.f32 %v1181_v10, %v1180_v54 }
 0x10f   : > { %v1280_v57 = vrot.slane %v1279_v5, 4 }
 0x110   : > { %1184 = vst.msk [vmem:[%s197_s17] sm:$0x1] %vm1183_vm1, %v1182_v13 }
 0x111   : > { %v1281_v31 = vadd.f32 %v1280_v57, %v1279_v5 }
 0x113   : > { %v1282_v47 = vrot.slane %v1281_v31, 2 }
 0x115   : > { %v1283_v38 = vadd.f32 %v1282_v47, %v1281_v31 }
 0x117   : > { %v1284_v3 = vrot.slane %v1283_v38, 1 }
 0x119   : > { %v1285_v4 = vadd.f32 %v1284_v3, %v1283_v38 }
 0x11b   : > { %1286 = vst.msk [vmem:[%s203_s20] sm:$0x1] %vm1183_vm1, %v1285_v4 }
 0x11c PF: > { %s14_s14 = sadd.s32 1, %s1653_s14   ;;  %s3758_s12 = smov %s1649_s13 }
 0x11d   : > { %p11_p5 = scmp.ge.s32.totalorder %s14_s14, 4   ;;  %s3759_s13 = smov %s3761_s15 }
 0x11f   :  { %13 = sbr.rel (!%p11_p5) target bundleno = 2 (0x2), region = 73 }

// kernel: mobile_conv_drop_activate.3
= control target key start
LH: loop header
LB: loop body
LE: loop exit
PB: predicated region body
PF: predicated region fallthrough
CT: control target
= control target key end

     0   :  { %s1763_s15 = smov 0   ;;  %s1765_s16 = smov 0   ;;  %s2854_s0 = inlined_call_operand.vmem [shape: f32[2,18,18,4], index: 0, kind: input, shape index: {}]   ;;  %s2855_s1 = inlined_call_operand.vmem [shape: f32[9,1,4], index: 1, kind: input, shape index: {}]   ;;  %s2856_s2 = inlined_call_operand.vmem [shape: f32[1,1,4], index: 2, kind: input, shape index: {}]   ;;  %s2857_s3 = inlined_call_operand.vmem [shape: f32[8,4], index: 3, kind: input, shape index: {}]   ;;  %s2858_s4 = inlined_call_operand.vmem [shape: f32[2,8,256], index: 4, kind: output, shape index: {}]  }
   0x1   :  { %s1767_s17 = smov 0  }
   0x2 LB: > { %s26_s18 = sadd.s32 1, %s1732_s16  ;;  %p1436_p0 = scmp.ge.s32.totalorder %s1736_s17, 1  ;;  %s1736_s17 = sphi %s1767_s17, %s14_s17   ;;  %s1732_s16 = sphi %s1765_s16, %s2919_s16   ;;  %s1728_s15 = sphi %s1763_s15, %s2918_s15  }
   0x3   : > { %p28_p1 = scmp.ge.s32.totalorder %s26_s18, 2  ;;  %p176_p2 = scmp.lt.s32.totalorder %s1736_s17, 3 }
   0x5   : > { %s2921_s18 = smov (%p28_p1, %s26_s18), 0  ;;  %p177_p3 = pnand %p1436_p0, %p176_p2 }
   0x7   : > { %180 = sbr.rel (%p177_p3) target bundleno = 313 (0x139), region = 36 }
   0xc   : > { %p206_p4 = scmp.lt.s32.totalorder %s1728_s15, 1  ;;  %v1786_v0 = vld [vmem:[%s2855_s1] ss:$0 sm:$0xff]  ;;  %v1792_v1 = vld [vmem:[%s2855_s1 + $0x1] ss:$0 sm:$0xff]  ;;  %vm1199_vm0 = vcmask 31744  }
   0xd   : > { %v1797_v2 = vld [vmem:[%s2855_s1 + $0x2] ss:$0 sm:$0xff]  ;;  %v1802_v3 = vld [vmem:[%s2855_s1 + $0x3] ss:$0 sm:$0xff]  ;;  %v1807_v4 = vld [vmem:[%s2855_s1 + $0x4] ss:$0 sm:$0xff] }
   0xe   : > { %s2923_s15 = smov (!%p206_p4, %s1728_s15), 1  ;;  %v1812_v5 = vld [vmem:[%s2855_s1 + $0x5] ss:$0 sm:$0xff]  ;;  %v1822_v6 = vld [vmem:[%s2855_s1 + $0x6] ss:$0 sm:$0xff] }
   0xf   : > { %s1669_s21 = smul.u32 432, %s2923_s15  ;;  %v1827_v7 = vld [vmem:[%s2855_s1 + $0x7] ss:$0 sm:$0xff]  ;;  %v1832_v8 = vld [vmem:[%s2855_s1 + $0x8] ss:$0 sm:$0xff] }
  0x11   : > { %s1817_s8 = scalar_lea.vmem %s2854_s0, %s1669_s21  ;;  %s1668_s21 = sshll.u32 %s2923_s15, 4 }
  0x12   : > { %v1835_v9 = vld [vmem:[%s1817_s8 + $0xb0] sm:$0xff]  ;;  %v1455_v15 = vld [vmem:[%s1817_s8 + $0xc8] sm:$0xff]  ;;  %v1551_v19 = vld [vmem:[%s1817_s8 + $0xe0] sm:$0xff]  ;;  %s219_s24 = scalar_lea.vmem %s2858_s4, %s1668_s21 }
  0x13   : > { %2884 = vst [vmem:[#allocation2_spill] sm:$0xff] %v1835_v9  ;;  %v1838_v10 = vld [vmem:[%s1817_s8 + $0xb1] sm:$0xff]  ;;  %v283_v12 = vmul.f32 %v1786_v0, %v1835_v9  ;;  %v1487_v16 = vld [vmem:[%s1817_s8 + $0xc9] sm:$0xff]  ;;  %v583_v18 = vmul.f32 %v1802_v3, %v1455_v15  ;;  %v1583_v20 = vld [vmem:[%s1817_s8 + $0xe1] sm:$0xff]  ;;  %v1860_v22 = vmul.f32 %v1802_v3, %v1835_v9  ;;  %v883_v28 = vmul.f32 %v1822_v6, %v1551_v19 }
  0x14   : > { %2885 = vst [vmem:[#allocation3_spill] sm:$0xff] %v1838_v10  ;;  %v1841_v11 = vld [vmem:[%s1817_s8 + $0xb2] sm:$0xff]  ;;  %v382_v13 = vmul.f32 %v1792_v1, %v1838_v10  ;;  %v1852_v17 = vld [vmem:[%s1817_s8 + $0xca] sm:$0xff]  ;;  %v1615_v21 = vld [vmem:[%s1817_s8 + $0xe2] sm:$0xff]  ;;  %v682_v24 = vmul.f32 %v1807_v4, %v1487_v16  ;;  %v1870_v27 = vmul.f32 %v1807_v4, %v1838_v10  ;;  %v1874_v29 = vmul.f32 %v1827_v7, %v1583_v20 }
  0x15   : > { %2886 = vst [vmem:[#allocation4_spill] sm:$0xff] %v1841_v11  ;;  %v481_v14 = vmul.f32 %v1797_v2, %v1841_v11  ;;  %v781_v25 = vmul.f32 %v1812_v5, %v1852_v17  ;;  %v1866_v26 = vld [vmem:[%s1817_s8 + $0x170] sm:$0xff]  ;;  %v1877_v30 = vmul.f32 %v1832_v8, %v1615_v21  ;;  %v1888_v34 = vld [vmem:[%s1817_s8 + $0x188] sm:$0xff]  ;;  %v1567_v40 = vld [vmem:[%s1817_s8 + $0x1a0] sm:$0xff]  ;;  %v1903_v41 = vmul.f32 %v1812_v5, %v1841_v11 }
  0x16   : > { %v414_v23 = vadd.f32 %v382_v13, %v283_v12  ;;  %2887 = vst [vmem:[#allocation5_spill] sm:$0xff] %v1866_v26  ;;  %v299_v31 = vmul.f32 %v1786_v0, %v1866_v26  ;;  %v1882_v32 = vld [vmem:[%s1817_s8 + $0x171] sm:$0xff]  ;;  %v1895_v38 = vld [vmem:[%s1817_s8 + $0x189] sm:$0xff]  ;;  %v599_v42 = vmul.f32 %v1802_v3, %v1888_v34  ;;  %v1599_v44 = vld [vmem:[%s1817_s8 + $0x1a1] sm:$0xff]  ;;  %v1915_v47 = vmul.f32 %v1822_v6, %v1455_v15 }
  0x17   : > { %v1885_v33 = vld [vmem:[%s1817_s8 + $0x172] sm:$0xff]  ;;  %v398_v36 = vmul.f32 %v1792_v1, %v1882_v32  ;;  %v1898_v39 = vld [vmem:[%s1817_s8 + $0x18a] sm:$0xff]  ;;  %v698_v43 = vmul.f32 %v1807_v4, %v1895_v38  ;;  %v1631_v45 = vld [vmem:[%s1817_s8 + $0x1a2] sm:$0xff]  ;;  %v1918_v48 = vmul.f32 %v1827_v7, %v1487_v16  ;;  %v899_v52 = vmul.f32 %v1822_v6, %v1567_v40 }
  0x18   : > { %v513_v35 = vadd.f32 %v481_v14, %v414_v23  ;;  %v497_v37 = vmul.f32 %v1797_v2, %v1885_v33  ;;  %v1912_v46 = vld [vmem:[%s1817_s8 + $0xa8] sm:$0xff]  ;;  %v797_v51 = vmul.f32 %v1812_v5, %v1898_v39  ;;  %v1930_v55 = vld [vmem:[%s1817_s8 + $0xc0] sm:$0xff]  ;;  %v1933_v56 = vmul.f32 %v1827_v7, %v1599_v44  ;;  %v1550_v62 = vld [vmem:[%s1817_s8 + $0xd8] sm:$0xff] }
  0x19   : > { %v430_v50 = vadd.f32 %v398_v36, %v299_v31  ;;  %v1924_v53 = vld [vmem:[%s1817_s8 + $0xa9] sm:$0xff]  ;;  %v282_v57 = vmul.f32 %v1786_v0, %v1912_v46  ;;  %v1942_v60 = vld [vmem:[%s1817_s8 + $0xc1] sm:$0xff]  ;;  %v1949_v13 = vmul.f32 %v1832_v8, %v1631_v45  ;;  %v582_v14 = vmul.f32 %v1802_v3, %v1930_v55  ;;  %v1582_v15 = vld [vmem:[%s1817_s8 + $0xd9] sm:$0xff] }
  0x1a   : > { %v615_v49 = vadd.f32 %v583_v18, %v513_v35  ;;  %v1927_v54 = vld [vmem:[%s1817_s8 + $0xaa] sm:$0xff]  ;;  %v381_v58 = vmul.f32 %v1792_v1, %v1924_v53  ;;  %v1945_v61 = vld [vmem:[%s1817_s8 + $0xc2] sm:$0xff]  ;;  %v1614_v16 = vld [vmem:[%s1817_s8 + $0xda] sm:$0xff]  ;;  %v681_v20 = vmul.f32 %v1807_v4, %v1942_v60  ;;  %v882_v23 = vmul.f32 %v1822_v6, %v1550_v62 }
  0x1b   : > { %v480_v59 = vmul.f32 %v1797_v2, %v1927_v54  ;;  %v529_v12 = vadd.f32 %v497_v37, %v430_v50  ;;  %v1956_v18 = vld [vmem:[%s1817_s8 + $0x168] sm:$0xff]  ;;  %v780_v21 = vmul.f32 %v1812_v5, %v1945_v61  ;;  %v1970_v35 = vld [vmem:[%s1817_s8 + $0x180] sm:$0xff]  ;;  %v1566_v50 = vld [vmem:[%s1817_s8 + $0x198] sm:$0xff] }
  0x1c   : > { %v714_v63 = vadd.f32 %v682_v24, %v615_v49  ;;  %v413_v19 = vadd.f32 %v381_v58, %v282_v57  ;;  %v1964_v24 = vld [vmem:[%s1817_s8 + $0x169] sm:$0xff]  ;;  %v298_v40 = vmul.f32 %v1786_v0, %v1956_v18  ;;  %v1977_v45 = vld [vmem:[%s1817_s8 + $0x181] sm:$0xff]  ;;  %v1988_v62 = vld [vmem:[%s1817_s8 + $0x98] sm:$0xff]  ;;  %v598_v10 = vmul.f32 %v1802_v3, %v1970_v35 }
  0x1d   : > { %v1967_v31 = vld [vmem:[%s1817_s8 + $0x16a] sm:$0xff]  ;;  %v631_v37 = vadd.f32 %v599_v42, %v529_v12  ;;  %v397_v44 = vmul.f32 %v1792_v1, %v1964_v24  ;;  %2889 = vst [vmem:[#allocation7_spill] sm:$0xff] %v1977_v45  ;;  %v1980_v49 = vld [vmem:[%s1817_s8 + $0x182] sm:$0xff]  ;;  %v1080_v42 = vmul.f32 %v1832_v8, %v1614_v16  ;;  %v1993_v9 = vld [vmem:[%s1817_s8 + $0x99] sm:$0xff]  ;;  %v697_v16 = vmul.f32 %v1807_v4, %v1977_v45 }
  0x1e   : > { %2888 = vst [vmem:[#allocation6_spill] sm:$0xff] %v1967_v31  ;;  %v813_v36 = vadd.f32 %v781_v25, %v714_v63  ;;  %v512_v57 = vadd.f32 %v480_v59, %v413_v19  ;;  %v981_v25 = vmul.f32 %v1827_v7, %v1582_v15  ;;  %v496_v58 = vmul.f32 %v1797_v2, %v1967_v31  ;;  %v1996_v59 = vld [vmem:[%s1817_s8 + $0x9a] sm:$0xff] }
  0x1f   : > { %2890 = vst [vmem:[#allocation8_spill] sm:$0xff] %v1980_v49  ;;  %v730_v12 = vadd.f32 %v698_v43, %v631_v37  ;;  %v429_v11 = vadd.f32 %v397_v44, %v298_v40  ;;  %v1999_v19 = vld [vmem:[%s1817_s8 + $0x158] sm:$0xff]  ;;  %v796_v31 = vmul.f32 %v1812_v5, %v1980_v49  ;;  %v2013_v37 = vld [vmem:[%s2856_s2] ss:$0 sm:$0xff]  ;;  %v281_v44 = vmul.f32 %v1786_v0, %v1988_v62 }
  0x20   : > { %2891 = vst [vmem:[#allocation9_spill] sm:$0xff] %v1988_v62  ;;  %v915_v63 = vadd.f32 %v883_v28, %v813_v36  ;;  %v614_v15 = vadd.f32 %v582_v14, %v512_v57  ;;  %v898_v28 = vmul.f32 %v1822_v6, %v1566_v50  ;;  %v2007_v43 = vld [vmem:[%s1817_s8 + $0x159] sm:$0xff]  ;;  %v380_v50 = vmul.f32 %v1792_v1, %v1993_v9 }
  0x21   : > { %2892 = vst [vmem:[#allocation10_spill] sm:$0xff] %v1996_v59  ;;  %v829_v40 = vadd.f32 %v797_v51, %v730_v12  ;;  %v528_v14 = vadd.f32 %v496_v58, %v429_v11  ;;  %v2018_v57 = vld [vmem:[%s1817_s8 + $0x15a] sm:$0xff]  ;;  %v396_v12 = vmul.f32 %v1792_v1, %v2007_v43 }
  0x22   : > { %2893 = vst [vmem:[#allocation11_spill] sm:$0xff] %v1999_v19  ;;  %v1014_v36 = vadd.f32 %v1874_v29, %v915_v63  ;;  %v713_v49 = vadd.f32 %v681_v20, %v614_v15  ;;  %v479_v29 = vmul.f32 %v1797_v2, %v1996_v59  ;;  %v297_v63 = vmul.f32 %v1786_v0, %v1999_v19  ;;  %v1598_v58 = vld [vmem:[%s1817_s8 + $0x199] sm:$0xff] }
  0x23   : > { %2894 = vst [vmem:[#allocation12_spill] sm:$0xff] %v2007_v43  ;;  %v931_v51 = vadd.f32 %v899_v52, %v829_v40  ;;  %v630_v11 = vadd.f32 %v598_v10, %v528_v14  ;;  %v412_v20 = vadd.f32 %v380_v50, %v281_v44  ;;  %v495_v15 = vmul.f32 %v1797_v2, %v2018_v57  ;;  %v1630_v10 = vld [vmem:[%s1817_s8 + $0x19a] sm:$0xff]  ;;  %v2042_v43 = vld [vmem:[%s1817_s8 + $0x90] sm:$0xff] }
  0x24   : > { %2895 = vst [vmem:[#allocation13_spill] sm:$0xff] %v2018_v57  ;;  %v1113_v45 = vadd.f32 %v1877_v30, %v1014_v36  ;;  %v812_v62 = vadd.f32 %v780_v21, %v713_v49  ;;  %v597_v59 = vmul.f32 %v1802_v3, %v1866_v26  ;;  %v428_v36 = vadd.f32 %v396_v12, %v297_v63 }
  0x25   : > { %v1030_v30 = vadd.f32 %v1933_v56, %v931_v51  ;;  %v729_v52 = vadd.f32 %v697_v16, %v630_v11  ;;  %v997_v21 = vmul.f32 %v1827_v7, %v1598_v58  ;;  %v511_v49 = vadd.f32 %v479_v29, %v412_v20  ;;  %v2052_v29 = vld [vmem:[%s1817_s8 + $0x92] sm:$0xff] }
  0x26   : > { %v1149_v19 = vadd.f32 %v2013_v37, %v1113_v45  ;;  %v914_v40 = vadd.f32 %v882_v23, %v812_v62  ;;  %v696_v14 = vmul.f32 %v1807_v4, %v1882_v32  ;;  %v527_v26 = vadd.f32 %v495_v15, %v428_v36  ;;  %v2045_v45 = vld [vmem:[%s1817_s8 + $0x91] sm:$0xff] }
  0x27   : > { %v1129_v50 = vadd.f32 %v1949_v13, %v1030_v30  ;;  %v828_v57 = vadd.f32 %v796_v31, %v729_v52  ;;  %2896 = vst [vmem:[#allocation14_spill] sm:$0xff] %v2045_v45  ;;  %v1096_v16 = vmul.f32 %v1832_v8, %v1630_v10  ;;  %v613_v23 = vadd.f32 %v1860_v22, %v511_v49  ;;  %v2075_v52 = vld [vmem:[%s1817_s8 + $0x150] sm:$0xff] }
  0x28   : > { %v1181_v44 = vmax.f32 %v1149_v19, 0.0  ;;  %v1013_v56 = vadd.f32 %v981_v25, %v914_v40  ;;  %v795_v62 = vmul.f32 %v1812_v5, %v1885_v33  ;;  %v629_v19 = vadd.f32 %v597_v59, %v527_v26  ;;  %v2078_v10 = vld [vmem:[%s1817_s8 + $0x151] sm:$0xff] }
  0x29   : > { %v1165_v13 = vadd.f32 %v2013_v37, %v1129_v50  ;;  %v930_v31 = vadd.f32 %v898_v28, %v828_v57  ;;  %v897_v63 = vmul.f32 %v1822_v6, %v1888_v34  ;;  %v712_v25 = vadd.f32 %v1870_v27, %v613_v23  ;;  %v2084_v49 = vld [vmem:[%s1817_s8 + $0x152] sm:$0xff] }
  0x2a   : > { %1632 = vmatpush.xpose.msk.msra.mxu0 %vm1199_vm0, %v1181_v44  ;;  %v1112_v51 = vadd.f32 %v1080_v42, %v1013_v56  ;;  %v280_v22 = vmul.f32 %v1786_v0, %v2042_v43  ;;  %v379_v11 = vmul.f32 %v1792_v1, %v2045_v45  ;;  %v728_v20 = vadd.f32 %v696_v14, %v629_v19 }
  0x2b   : > { %v1197_v58 = vmax.f32 %v1165_v13, 0.0  ;;  %v1029_v12 = vadd.f32 %v997_v21, %v930_v31  ;;  %v478_v26 = vmul.f32 %v1797_v2, %v2052_v29  ;;  %v811_v42 = vadd.f32 %v1903_v41, %v712_v25  ;;  %v2107_v25 = vld [vmem:[%s1817_s8 + $0x81] sm:$0xff] }
  0x2c   : > { %v1148_v34 = vadd.f32 %v2013_v37, %v1112_v51  ;;  %v411_v27 = vadd.f32 %v379_v11, %v280_v22  ;;  %v580_v59 = vmul.f32 %v1802_v3, %v1912_v46  ;;  %v1079_v57 = vmul.f32 %v1832_v8, %v1852_v17  ;;  %v2104_v51 = vld [vmem:[%s1817_s8 + $0x80] sm:$0xff] }
  0x2d   : > { %1649 = vmatpush.xpose.msk.msra.mxu1 %vm1199_vm0, %v1197_v58  ;;  %v1128_v28 = vadd.f32 %v1096_v16, %v1029_v12  ;;  %v827_v15 = vadd.f32 %v795_v62, %v728_v20  ;;  %v996_v30 = vmul.f32 %v1827_v7, %v1895_v38  ;;  %v913_v41 = vadd.f32 %v1915_v47, %v811_v42  ;;  %v2110_v22 = vld [vmem:[%s1817_s8 + $0x82] sm:$0xff] }
  0x2e   : > { %v1180_v36 = vmax.f32 %v1148_v34, 0.0  ;;  %v510_v40 = vadd.f32 %v478_v26, %v411_v27  ;;  %v679_v21 = vmul.f32 %v1807_v4, %v1924_v53  ;;  %v1095_v38 = vmul.f32 %v1832_v8, %v1898_v39 }
  0x2f   : > { %v1164_v14 = vadd.f32 %v2013_v37, %v1128_v28  ;;  %v929_v17 = vadd.f32 %v897_v63, %v827_v15  ;;  %v778_v44 = vmul.f32 %v1812_v5, %v1927_v54  ;;  %v1012_v47 = vadd.f32 %v1918_v48, %v913_v41  ;;  %v2897_v15 = vld [vmem:[#allocation6_spill] sm:$0xff] }
  0x30   : > { %1633 = vmatpush.xpose.msk.msra.mxu0 %vm1199_vm0, %v1180_v36  ;;  %v612_v50 = vadd.f32 %v580_v59, %v510_v40  ;;  %v296_v56 = vmul.f32 %v1786_v0, %v2075_v52  ;;  %v395_v16 = vmul.f32 %v1792_v1, %v2078_v10  ;;  %v880_v39 = vmul.f32 %v1822_v6, %v1930_v55  ;;  %v2130_v36 = vld [vmem:[%s1817_s8 + $0x140] sm:$0xff] }
  0x31   : > { %v1196_v23 = vmax.f32 %v1164_v14, 0.0  ;;  %v1028_v62 = vadd.f32 %v996_v30, %v929_v17  ;;  %v494_v13 = vmul.f32 %v1797_v2, %v2084_v49  ;;  %v1111_v31 = vadd.f32 %v1079_v57, %v1012_v47  ;;  %v2133_v41 = vld [vmem:[%s1817_s8 + $0x141] sm:$0xff]  ;;  %v2898_v17 = vld [vmem:[#allocation9_spill] sm:$0xff] }
  0x32   : > { %v711_v19 = vadd.f32 %v679_v21, %v612_v50  ;;  %v427_v63 = vadd.f32 %v395_v16, %v296_v56  ;;  %v596_v48 = vmul.f32 %v1802_v3, %v1956_v18  ;;  %v979_v55 = vmul.f32 %v1827_v7, %v1942_v60  ;;  %v2899_v56 = vld [vmem:[#allocation7_spill] sm:$0xff] }
  0x33   : > { %1650 = vmatpush.xpose.msk.msra.mxu1 %vm1199_vm0, %v1196_v23  ;;  %v1127_v11 = vadd.f32 %v1095_v38, %v1028_v62  ;;  %v1078_v58 = vmul.f32 %v1832_v8, %v1945_v61  ;;  %v1147_v12 = vadd.f32 %v2013_v37, %v1111_v31  ;;  %v695_v34 = vmul.f32 %v1807_v4, %v1964_v24  ;;  %v2900_v23 = vld [vmem:[#allocation8_spill] sm:$0xff] }
  0x34   : > { %v810_v20 = vadd.f32 %v778_v44, %v711_v19  ;;  %v526_v26 = vadd.f32 %v494_v13, %v427_v63  ;;  %v279_v27 = vmul.f32 %v1786_v0, %v2104_v51  ;;  %v378_v59 = vmul.f32 %v1792_v1, %v2107_v25  ;;  %v2140_v44 = vld [vmem:[%s1817_s8 + $0x142] sm:$0xff] }
  0x35   : > { %v1163_v42 = vadd.f32 %v2013_v37, %v1127_v11  ;;  %v477_v60 = vmul.f32 %v1797_v2, %v2110_v22  ;;  %v1179_v61 = vmax.f32 %v1147_v12, 0.0  ;;  %v794_v30 = vmul.f32 %v1812_v5, %v2897_v15  ;;  %v2159_v12 = vld [vmem:[%s1817_s8 + $0x78] sm:$0xff] }
  0x36   : > { %v912_v28 = vadd.f32 %v880_v39, %v810_v20  ;;  %v628_v57 = vadd.f32 %v596_v48, %v526_v26  ;;  %v896_v21 = vmul.f32 %v1822_v6, %v1970_v35  ;;  %v410_v14 = vadd.f32 %v378_v59, %v279_v27  ;;  %v2901_v48 = vld [vmem:[#allocation10_spill] sm:$0xff]  ;;  %v2903_v27 = vld [vmem:[#allocation11_spill] sm:$0xff] }
  0x37   : > { %v1195_v40 = vmax.f32 %v1163_v42, 0.0  ;;  %v579_v38 = vmul.f32 %v1802_v3, %v2898_v17  ;;  %1634 = vmatpush.xpose.msk.msra.mxu0 %vm1199_vm0, %v1179_v61  ;;  %v995_v16 = vmul.f32 %v1827_v7, %v2899_v56  ;;  %v1094_v62 = vmul.f32 %v1832_v8, %v2900_v23  ;;  %v2902_v26 = vld [vmem:[#allocation2_spill] sm:$0xff] }
  0x38   : > { %v1011_v47 = vadd.f32 %v979_v55, %v912_v28  ;;  %v727_v50 = vadd.f32 %v695_v34, %v628_v57  ;;  %v509_v35 = vadd.f32 %v477_v60, %v410_v14  ;;  %v678_v39 = vmul.f32 %v1807_v4, %v1993_v9  ;;  %v2166_v60 = vld [vmem:[%s1817_s8 + $0x79] sm:$0xff]  ;;  %v2904_v57 = vld [vmem:[#allocation3_spill] sm:$0xff] }
  0x39   : > { %1651 = vmatpush.xpose.msk.msra.mxu1 %vm1199_vm0, %v1195_v40  ;;  %v295_v13 = vmul.f32 %v1786_v0, %v2130_v36  ;;  %v394_v31 = vmul.f32 %v1792_v1, %v2133_v41  ;;  %v777_v11 = vmul.f32 %v1812_v5, %v2901_v48  ;;  %v493_v55 = vmul.f32 %v1797_v2, %v2140_v44  ;;  %v2905_v40 = vld [vmem:[#allocation4_spill] sm:$0xff] }
  0x3a   : > { %v1110_v19 = vadd.f32 %v1078_v58, %v1011_v47  ;;  %v826_v63 = vadd.f32 %v794_v30, %v727_v50  ;;  %v611_v20 = vadd.f32 %v579_v38, %v509_v35  ;;  %v879_v34 = vmul.f32 %v1822_v6, %v2902_v26  ;;  %v2169_v58 = vld [vmem:[%s1817_s8 + $0x7a] sm:$0xff]  ;;  %v2906_v50 = vld [vmem:[#allocation12_spill] sm:$0xff] }
  0x3b   : > { %v426_v42 = vadd.f32 %v394_v31, %v295_v13  ;;  %v595_v59 = vmul.f32 %v1802_v3, %v2903_v27  ;;  %v978_v30 = vmul.f32 %v1827_v7, %v2904_v57  ;;  %v1077_v14 = vmul.f32 %v1832_v8, %v2905_v40  ;;  %v2907_v26 = vld [vmem:[#allocation13_spill] sm:$0xff] }
  0x3c   : > { %v1146_v61 = vadd.f32 %v2013_v37, %v1110_v19  ;;  %v928_v28 = vadd.f32 %v896_v21, %v826_v63  ;;  %v710_v38 = vadd.f32 %v678_v39, %v611_v20  ;;  %v694_v56 = vmul.f32 %v1807_v4, %v2906_v50  ;;  %v2192_v57 = vld [vmem:[%s1817_s8 + $0x139] sm:$0xff] }
  0x3d   : > { %v525_v47 = vadd.f32 %v493_v55, %v426_v42  ;;  %v278_v23 = vmul.f32 %v1786_v0, %v2159_v12  ;;  %v377_v21 = vmul.f32 %v1792_v1, %v2166_v60  ;;  %v476_v31 = vmul.f32 %v1797_v2, %v2169_v58  ;;  %v2908_v55 = vld [vmem:[#allocation5_spill] sm:$0xff]  ;;  %2909 = vst [vmem:[#allocation6_spill] sm:$0xff] %v2192_v57 }
  0x3e   : > { %v1178_v35 = vmax.f32 %v1146_v61, 0.0  ;;  %v1027_v13 = vadd.f32 %v995_v16, %v928_v28  ;;  %v809_v19 = vadd.f32 %v777_v11, %v710_v38  ;;  %v793_v39 = vmul.f32 %v1812_v5, %v2907_v26  ;;  %v2189_v42 = vld [vmem:[%s1817_s8 + $0x138] sm:$0xff] }
  0x3f   : > { %v627_v63 = vadd.f32 %v595_v59, %v525_v47  ;;  %v895_v20 = vmul.f32 %v1822_v6, %v2908_v55  ;;  %v994_v61 = vmul.f32 %v1827_v7, %v1882_v32  ;;  %v409_v28 = vadd.f32 %v377_v21, %v278_v23  ;;  %v2200_v59 = vld [vmem:[%s1817_s8 + $0x13a] sm:$0xff] }
  0x40   : > { %1635 = vmatpush.xpose.msk.msra.mxu0 %vm1199_vm0, %v1178_v35  ;;  %v1126_v16 = vadd.f32 %v1094_v62, %v1027_v13  ;;  %v578_v11 = vmul.f32 %v1802_v3, %v2042_v43  ;;  %v911_v40 = vadd.f32 %v879_v34, %v809_v19  ;;  %v1093_v47 = vmul.f32 %v1832_v8, %v1885_v33 }
  0x41   : > { %v726_v38 = vadd.f32 %v694_v56, %v627_v63  ;;  %v677_v35 = vmul.f32 %v1807_v4, %v2045_v45  ;;  %v508_v13 = vadd.f32 %v476_v31, %v409_v28  ;;  %v294_v32 = vmul.f32 %v1786_v0, %v2189_v42  ;;  %v2221_v28 = vld [vmem:[%s1817_s8 + $0x69] sm:$0xff] }
  0x42   : > { %v1162_v62 = vadd.f32 %v2013_v37, %v1126_v16  ;;  %v393_v23 = vmul.f32 %v1792_v1, %v2192_v57  ;;  %v1010_v34 = vadd.f32 %v978_v30, %v911_v40  ;;  %v776_v56 = vmul.f32 %v1812_v5, %v2052_v29  ;;  %v2218_v16 = vld [vmem:[%s1817_s8 + $0x68] sm:$0xff] }
  0x43   : > { %v825_v21 = vadd.f32 %v793_v39, %v726_v38  ;;  %v492_v33 = vmul.f32 %v1797_v2, %v2200_v59  ;;  %v610_v63 = vadd.f32 %v578_v11, %v508_v13  ;;  %v594_v31 = vmul.f32 %v1802_v3, %v2075_v52  ;;  %v2228_v40 = vld [vmem:[%s1817_s8 + $0x6a] sm:$0xff] }
  0x44   : > { %v1194_v19 = vmax.f32 %v1162_v62, 0.0  ;;  %v425_v55 = vadd.f32 %v393_v23, %v294_v32  ;;  %v1109_v45 = vadd.f32 %v1077_v14, %v1010_v34  ;;  %v878_v30 = vmul.f32 %v1822_v6, %v1912_v46 }
  0x45   : > { %v927_v57 = vadd.f32 %v895_v20, %v825_v21  ;;  %v977_v39 = vmul.f32 %v1827_v7, %v1924_v53  ;;  %v709_v11 = vadd.f32 %v677_v35, %v610_v63  ;;  %v1076_v38 = vmul.f32 %v1832_v8, %v1927_v54 }
  0x46   : > { %1652 = vmatpush.xpose.msk.msra.mxu1 %vm1199_vm0, %v1194_v19  ;;  %v524_v62 = vadd.f32 %v492_v33, %v425_v55  ;;  %v693_v14 = vmul.f32 %v1807_v4, %v2078_v10  ;;  %v1145_v20 = vadd.f32 %v2013_v37, %v1109_v45  ;;  %v277_v53 = vmul.f32 %v1786_v0, %v2218_v16 }
  0x47   : > { %v1026_v46 = vadd.f32 %v994_v61, %v927_v57  ;;  %v376_v13 = vmul.f32 %v1792_v1, %v2221_v28  ;;  %v808_v35 = vadd.f32 %v776_v56, %v709_v11  ;;  %v792_v54 = vmul.f32 %v1812_v5, %v2084_v49  ;;  %v2247_v57 = vld [vmem:[%s1817_s8 + $0x128] sm:$0xff] }
  0x48   : > { %v626_v32 = vadd.f32 %v594_v31, %v524_v62  ;;  %v475_v23 = vmul.f32 %v1797_v2, %v2228_v40  ;;  %v1177_v34 = vmax.f32 %v1145_v20, 0.0  ;;  %v577_v45 = vmul.f32 %v1802_v3, %v2104_v51  ;;  %v2250_v61 = vld [vmem:[%s1817_s8 + $0x129] sm:$0xff] }
  0x49   : > { %v1125_v21 = vadd.f32 %v1093_v47, %v1026_v46  ;;  %v408_v33 = vadd.f32 %v376_v13, %v277_v53  ;;  %v910_v19 = vadd.f32 %v878_v30, %v808_v35  ;;  %v894_v56 = vmul.f32 %v1822_v6, %v1956_v18  ;;  %v2257_v31 = vld [vmem:[%s1817_s8 + $0x12a] sm:$0xff] }
  0x4a   : > { %v725_v63 = vadd.f32 %v693_v14, %v626_v32  ;;  %v993_v55 = vmul.f32 %v1827_v7, %v1964_v24  ;;  %1636 = vmatpush.xpose.msk.msra.mxu0 %vm1199_vm0, %v1177_v34  ;;  %v1092_v11 = vmul.f32 %v1832_v8, %v2897_v15  ;;  %v676_v30 = vmul.f32 %v1807_v4, %v2107_v25  ;;  %v2279_v34 = vld [vmem:[%s1817_s8 + $0x61] sm:$0xff] }
  0x4b   : > { %v1161_v47 = vadd.f32 %v2013_v37, %v1125_v21  ;;  %v507_v62 = vadd.f32 %v475_v23, %v408_v33  ;;  %v1009_v18 = vadd.f32 %v977_v39, %v910_v19  ;;  %v293_v24 = vmul.f32 %v1786_v0, %v2247_v57  ;;  %v2282_v21 = vld [vmem:[%s1817_s8 + $0x62] sm:$0xff] }
  0x4c   : > { %v824_v14 = vadd.f32 %v792_v54, %v725_v63  ;;  %v392_v20 = vmul.f32 %v1792_v1, %v2250_v61  ;;  %v775_v13 = vmul.f32 %v1812_v5, %v2110_v22  ;;  %v491_v15 = vmul.f32 %v1797_v2, %v2257_v31  ;;  %v2276_v54 = vld [vmem:[%s1817_s8 + $0x60] sm:$0xff] }
  0x4d   : > { %v1193_v46 = vmax.f32 %v1161_v47, 0.0  ;;  %v609_v53 = vadd.f32 %v577_v45, %v507_v62  ;;  %v1108_v35 = vadd.f32 %v1076_v38, %v1009_v18  ;;  %v593_v39 = vmul.f32 %v1802_v3, %v2130_v36 }
  0x4e   : > { %v926_v32 = vadd.f32 %v894_v56, %v824_v14  ;;  %v424_v23 = vadd.f32 %v392_v20, %v293_v24  ;;  %v877_v45 = vmul.f32 %v1822_v6, %v2898_v17  ;;  %v976_v38 = vmul.f32 %v1827_v7, %v1993_v9  ;;  %v2301_v20 = vld [vmem:[%s1817_s8 + $0x120] sm:$0xff] }
  0x4f   : > { %1653 = vmatpush.xpose.msk.msra.mxu1 %vm1199_vm0, %v1193_v46  ;;  %v708_v33 = vadd.f32 %v676_v30, %v609_v53  ;;  %v1144_v19 = vadd.f32 %v2013_v37, %v1108_v35  ;;  %v692_v47 = vmul.f32 %v1807_v4, %v2133_v41  ;;  %v276_v18 = vmul.f32 %v1786_v0, %v2276_v54  ;;  %v2308_v35 = vld [vmem:[%s1817_s8 + $0x121] sm:$0xff] }
  0x50   : > { %v1025_v63 = vadd.f32 %v993_v55, %v926_v32  ;;  %v523_v56 = vadd.f32 %v491_v15, %v424_v23  ;;  %v375_v30 = vmul.f32 %v1792_v1, %v2279_v34  ;;  %v474_v17 = vmul.f32 %v1797_v2, %v2282_v21  ;;  %v2311_v32 = vld [vmem:[%s1817_s8 + $0x122] sm:$0xff] }
  0x51   : > { %v807_v62 = vadd.f32 %v775_v13, %v708_v33  ;;  %v1176_v9 = vmax.f32 %v1144_v19, 0.0  ;;  %v791_v55 = vmul.f32 %v1812_v5, %v2140_v44  ;;  %v1075_v53 = vmul.f32 %v1832_v8, %v2901_v48 }
  0x52   : > { %v1124_v14 = vadd.f32 %v1092_v11, %v1025_v63  ;;  %v625_v24 = vadd.f32 %v593_v39, %v523_v56  ;;  %v407_v13 = vadd.f32 %v375_v30, %v276_v18  ;;  %v576_v15 = vmul.f32 %v1802_v3, %v2159_v12 }
  0x53   : > { %v909_v46 = vadd.f32 %v877_v45, %v807_v62  ;;  %1637 = vmatpush.xpose.msk.msra.mxu0 %vm1199_vm0, %v1176_v9  ;;  %v893_v39 = vmul.f32 %v1822_v6, %v2903_v27  ;;  %v992_v48 = vmul.f32 %v1827_v7, %v2906_v50  ;;  %v675_v19 = vmul.f32 %v1807_v4, %v2166_v60  ;;  %v2335_v9 = vld [vmem:[%s1817_s8 + $0x51] sm:$0xff] }
  0x54   : > { %v1160_v11 = vadd.f32 %v2013_v37, %v1124_v14  ;;  %v724_v23 = vadd.f32 %v692_v47, %v625_v24  ;;  %v506_v45 = vadd.f32 %v474_v17, %v407_v13  ;;  %v292_v63 = vmul.f32 %v1786_v0, %v2301_v20  ;;  %v2332_v17 = vld [vmem:[%s1817_s8 + $0x50] sm:$0xff] }
  0x55   : > { %v1008_v33 = vadd.f32 %v976_v38, %v909_v46  ;;  %v391_v47 = vmul.f32 %v1792_v1, %v2308_v35  ;;  %v490_v27 = vmul.f32 %v1797_v2, %v2311_v32  ;;  %v1091_v50 = vmul.f32 %v1832_v8, %v2907_v26 }
  0x56   : > { %v1192_v56 = vmax.f32 %v1160_v11, 0.0  ;;  %v823_v62 = vadd.f32 %v791_v55, %v724_v23  ;;  %v608_v38 = vadd.f32 %v576_v15, %v506_v45  ;;  %v774_v30 = vmul.f32 %v1812_v5, %v2169_v58  ;;  %v2910_v15 = vld [vmem:[#allocation14_spill] sm:$0xff] }
  0x57   : > { %v1107_v18 = vadd.f32 %v1075_v53, %v1008_v33  ;;  %v876_v24 = vmul.f32 %v1822_v6, %v2042_v43  ;;  %v423_v55 = vadd.f32 %v391_v47, %v292_v63  ;;  %v592_v46 = vmul.f32 %v1802_v3, %v2189_v42  ;;  %v2343_v53 = vld [vmem:[%s1817_s8 + $0x52] sm:$0xff]  ;;  %v2911_v23 = vld [vmem:[#allocation6_spill] sm:$0xff] }
  0x58   : > { %1654 = vmatpush.xpose.msk.msra.mxu1 %vm1199_vm0, %v1192_v56  ;;  %v925_v14 = vadd.f32 %v893_v39, %v823_v62  ;;  %v707_v13 = vadd.f32 %v675_v19, %v608_v38  ;;  %v975_v11 = vmul.f32 %v1827_v7, %v2910_v15  ;;  %v691_v39 = vmul.f32 %v1807_v4, %v2911_v23 }
  0x59   : > { %v1143_v26 = vadd.f32 %v2013_v37, %v1107_v18  ;;  %v522_v43 = vadd.f32 %v490_v27, %v423_v55  ;;  %v275_v45 = vmul.f32 %v1786_v0, %v2332_v17  ;;  %v374_v63 = vmul.f32 %v1792_v1, %v2335_v9  ;;  %v2361_v27 = vld [vmem:[%s1817_s8 + $0x110] sm:$0xff] }
  0x5a   : > { %v1024_v33 = vadd.f32 %v992_v48, %v925_v14  ;;  %v806_v62 = vadd.f32 %v774_v30, %v707_v13  ;;  %v790_v19 = vmul.f32 %v1812_v5, %v2200_v59  ;;  %v473_v47 = vmul.f32 %v1797_v2, %v2343_v53  ;;  %v2364_v14 = vld [vmem:[%s1817_s8 + $0x111] sm:$0xff] }
  0x5b   : > { %v1175_v56 = vmax.f32 %v1143_v26, 0.0  ;;  %v624_v38 = vadd.f32 %v592_v46, %v522_v43  ;;  %v406_v15 = vadd.f32 %v374_v63, %v275_v45  ;;  %v575_v48 = vmul.f32 %v1802_v3, %v2218_v16  ;;  %2912 = vst [vmem:[#allocation9_spill] sm:$0xff] %v2364_v14  ;;  %v2367_v55 = vld [vmem:[%s1817_s8 + $0x112] sm:$0xff] }
  0x5c   : > { %v1123_v18 = vadd.f32 %v1091_v50, %v1024_v33  ;;  %v908_v30 = vadd.f32 %v876_v24, %v806_v62  ;;  %v1074_v26 = vmul.f32 %v1832_v8, %v2052_v29  ;;  %v892_v50 = vmul.f32 %v1822_v6, %v2075_v52 }
  0x5d   : > { %1638 = vmatpush.xpose.msk.msra.mxu0 %vm1199_vm0, %v1175_v56  ;;  %v991_v46 = vmul.f32 %v1827_v7, %v2078_v10  ;;  %v723_v33 = vadd.f32 %v691_v39, %v624_v38  ;;  %v505_v43 = vadd.f32 %v473_v47, %v406_v15  ;;  %v674_v45 = vmul.f32 %v1807_v4, %v2221_v28  ;;  %v2388_v47 = vld [vmem:[%s1817_s8 + $0x48] sm:$0xff] }
  0x5e   : > { %v1159_v13 = vadd.f32 %v2013_v37, %v1123_v18  ;;  %v1007_v24 = vadd.f32 %v975_v11, %v908_v30  ;;  %v291_v63 = vmul.f32 %v1786_v0, %v2361_v27  ;;  %v390_v29 = vmul.f32 %v1792_v1, %v2364_v14  ;;  %v2395_v30 = vld [vmem:[%s1817_s8 + $0x49] sm:$0xff] }
  0x5f   : > { %v489_v52 = vmul.f32 %v1797_v2, %v2367_v55  ;;  %v822_v56 = vadd.f32 %v790_v19, %v723_v33  ;;  %v607_v62 = vadd.f32 %v575_v48, %v505_v43  ;;  %v773_v39 = vmul.f32 %v1812_v5, %v2228_v40  ;;  %v2398_v14 = vld [vmem:[%s1817_s8 + $0x4a] sm:$0xff] }
  0x60   : > { %v1191_v10 = vmax.f32 %v1159_v13, 0.0  ;;  %v1106_v18 = vadd.f32 %v1074_v26, %v1007_v24  ;;  %v1090_v11 = vmul.f32 %v1832_v8, %v2084_v49  ;;  %v422_v38 = vadd.f32 %v390_v29, %v291_v63 }
  0x61   : > { %v591_v15 = vmul.f32 %v1802_v3, %v2247_v57  ;;  %v924_v19 = vadd.f32 %v892_v50, %v822_v56  ;;  %v706_v48 = vadd.f32 %v674_v45, %v607_v62  ;;  %v875_v13 = vmul.f32 %v1822_v6, %v2104_v51  ;;  %v2419_v56 = vld [vmem:[%s1817_s8 + $0x108] sm:$0xff] }
  0x62   : > { %1655 = vmatpush.xpose.msk.msra.mxu1 %vm1199_vm0, %v1191_v10  ;;  %v974_v26 = vmul.f32 %v1827_v7, %v2107_v25  ;;  %v1142_v49 = vadd.f32 %v2013_v37, %v1106_v18  ;;  %v521_v33 = vadd.f32 %v489_v52, %v422_v38  ;;  %v690_v43 = vmul.f32 %v1807_v4, %v2250_v61  ;;  %v2424_v38 = vld [vmem:[%s1817_s8 + $0x109] sm:$0xff] }
  0x63   : > { %v274_v24 = vmul.f32 %v1786_v0, %v2388_v47  ;;  %v1023_v50 = vadd.f32 %v991_v46, %v924_v19  ;;  %v805_v63 = vadd.f32 %v773_v39, %v706_v48  ;;  %v373_v45 = vmul.f32 %v1792_v1, %v2395_v30  ;;  %v2427_v19 = vld [vmem:[%s1817_s8 + $0x10a] sm:$0xff] }
  0x64   : > { %v472_v51 = vmul.f32 %v1797_v2, %v2398_v14  ;;  %v1174_v25 = vmax.f32 %v1142_v49, 0.0  ;;  %v1073_v29 = vmul.f32 %v1832_v8, %v2110_v22  ;;  %v623_v52 = vadd.f32 %v591_v15, %v521_v33 }
  0x65   : > { %v789_v10 = vmul.f32 %v1812_v5, %v2257_v31  ;;  %v1122_v62 = vadd.f32 %v1090_v11, %v1023_v50  ;;  %v907_v18 = vadd.f32 %v875_v13, %v805_v63  ;;  %v405_v46 = vadd.f32 %v373_v45, %v274_v24 }
  0x66   : > { %v574_v39 = vmul.f32 %v1802_v3, %v2276_v54  ;;  %1639 = vmatpush.xpose.msk.msra.mxu0 %vm1199_vm0, %v1174_v25  ;;  %v722_v48 = vadd.f32 %v690_v43, %v623_v52  ;;  %v891_v22 = vmul.f32 %v1822_v6, %v2130_v36  ;;  %v990_v11 = vmul.f32 %v1827_v7, %v2133_v41  ;;  %v2451_v52 = vld [vmem:[%s1817_s8 + $0x39] sm:$0xff] }
  0x67   : > { %v673_v15 = vmul.f32 %v1807_v4, %v2279_v34  ;;  %v1158_v13 = vadd.f32 %v2013_v37, %v1122_v62  ;;  %v1006_v49 = vadd.f32 %v974_v26, %v907_v18  ;;  %v504_v33 = vadd.f32 %v472_v51, %v405_v46  ;;  %v2448_v51 = vld [vmem:[%s1817_s8 + $0x38] sm:$0xff] }
  0x68   : > { %v290_v24 = vmul.f32 %v1786_v0, %v2419_v56  ;;  %v821_v43 = vadd.f32 %v789_v10, %v722_v48  ;;  %v1089_v50 = vmul.f32 %v1832_v8, %v2140_v44  ;;  %v389_v36 = vmul.f32 %v1792_v1, %v2424_v38  ;;  %v2458_v46 = vld [vmem:[%s1817_s8 + $0x3a] sm:$0xff] }
  0x69   : > { %v488_v41 = vmul.f32 %v1797_v2, %v2427_v19  ;;  %v1190_v63 = vmax.f32 %v1158_v13, 0.0  ;;  %v1105_v45 = vadd.f32 %v1073_v29, %v1006_v49  ;;  %v606_v25 = vadd.f32 %v574_v39, %v504_v33 }
  0x6a   : > { %v772_v26 = vmul.f32 %v1812_v5, %v2282_v21  ;;  %v923_v10 = vadd.f32 %v891_v22, %v821_v43  ;;  %v874_v44 = vmul.f32 %v1822_v6, %v2159_v12  ;;  %v421_v62 = vadd.f32 %v389_v36, %v290_v24 }
  0x6b   : > { %v590_v18 = vmul.f32 %v1802_v3, %v2301_v20  ;;  %1656 = vmatpush.xpose.msk.msra.mxu1 %vm1199_vm0, %v1190_v63  ;;  %v1141_v29 = vadd.f32 %v2013_v37, %v1105_v45  ;;  %v705_v39 = vadd.f32 %v673_v15, %v606_v25  ;;  %v973_v48 = vmul.f32 %v1827_v7, %v2166_v60  ;;  %v2480_v25 = vld [vmem:[%s1817_s8 + $0xf9] sm:$0xff] }
  0x6c   : > { %v689_v12 = vmul.f32 %v1807_v4, %v2308_v35  ;;  %v1022_v22 = vadd.f32 %v990_v11, %v923_v10  ;;  %v520_v13 = vadd.f32 %v488_v41, %v421_v62  ;;  %v273_v49 = vmul.f32 %v1786_v0, %v2448_v51  ;;  %v2477_v41 = vld [vmem:[%s1817_s8 + $0xf8] sm:$0xff] }
  0x6d   : > { %v372_v33 = vmul.f32 %v1792_v1, %v2451_v52  ;;  %v1173_v24 = vmax.f32 %v1141_v29, 0.0  ;;  %v804_v43 = vadd.f32 %v772_v26, %v705_v39  ;;  %v788_v15 = vmul.f32 %v1812_v5, %v2311_v32  ;;  %v2483_v10 = vld [vmem:[%s1817_s8 + $0xfa] sm:$0xff] }
  0x6e   : > { %v471_v60 = vmul.f32 %v1797_v2, %v2458_v46  ;;  %v1121_v36 = vadd.f32 %v1089_v50, %v1022_v22  ;;  %v622_v63 = vadd.f32 %v590_v18, %v520_v13  ;;  %v573_v11 = vmul.f32 %v1802_v3, %v2332_v17 }
  0x6f   : > { %v404_v45 = vadd.f32 %v372_v33, %v273_v49  ;;  %1640 = vmatpush.xpose.msk.msra.mxu0 %vm1199_vm0, %v1173_v24  ;;  %v906_v26 = vadd.f32 %v874_v44, %v804_v43  ;;  %v1072_v62 = vmul.f32 %v1832_v8, %v2169_v58  ;;  %v890_v50 = vmul.f32 %v1822_v6, %v2189_v42  ;;  %v2504_v43 = vld [vmem:[%s1817_s8 + $0x30] sm:$0xff] }
  0x70   : > { %v989_v18 = vmul.f32 %v1827_v7, %v2911_v23  ;;  %v1157_v29 = vadd.f32 %v2013_v37, %v1121_v36  ;;  %v721_v39 = vadd.f32 %v689_v12, %v622_v63  ;;  %v672_v13 = vmul.f32 %v1807_v4, %v2335_v9  ;;  %v2514_v36 = vld [vmem:[%s1817_s8 + $0x32] sm:$0xff] }
  0x71   : > { %v503_v22 = vadd.f32 %v471_v60, %v404_v45  ;;  %v1005_v44 = vadd.f32 %v973_v48, %v906_v26  ;;  %v289_v49 = vmul.f32 %v1786_v0, %v2477_v41  ;;  %v388_v58 = vmul.f32 %v1792_v1, %v2480_v25  ;;  %v2511_v1 = vld [vmem:[%s1817_s8 + $0x31] sm:$0xff]  ;;  %v2532_v26 = vld [vmem:[%s2855_s1] ss:$0 sm:$0xff] }
  0x72   : > { %v487_v42 = vmul.f32 %v1797_v2, %v2483_v10  ;;  %v1189_v23 = vmax.f32 %v1157_v29, 0.0  ;;  %v820_v33 = vadd.f32 %v788_v15, %v721_v39  ;;  %v771_v12 = vmul.f32 %v1812_v5, %v2343_v53  ;;  %v2913_v45 = vld [vmem:[#allocation9_spill] sm:$0xff]  ;;  %v2553_v39 = vld [vmem:[%s2855_s1 + $0x8] ss:$0 sm:$0xff] }
  0x73   : > { %v605_v24 = vadd.f32 %v573_v11, %v503_v22  ;;  %v1104_v60 = vadd.f32 %v1072_v62, %v1005_v44  ;;  %v1088_v4 = vmul.f32 %v1832_v8, %v2200_v59  ;;  %v420_v48 = vadd.f32 %v388_v58, %v289_v49  ;;  %v2560_v44 = vld [vmem:[%s2855_s1 + $0x5] ss:$0 sm:$0xff]  ;;  %v2565_v58 = vld [vmem:[%s1817_s8 + $0xf0] sm:$0xff] }
  0x74   : > { %v589_v0 = vmul.f32 %v1802_v3, %v2361_v27  ;;  %1657 = vmatpush.xpose.msk.msra.mxu1 %vm1199_vm0, %v1189_v23  ;;  %v922_v2 = vadd.f32 %v890_v50, %v820_v33  ;;  %v873_v5 = vmul.f32 %v1822_v6, %v2218_v16  ;;  %v972_v63 = vmul.f32 %v1827_v7, %v2221_v28  ;;  %v2525_v3 = vld [vmem:[%s2855_s1 + $0x4] ss:$0 sm:$0xff]  ;;  %v2539_v28 = vld [vmem:[%s2855_s1 + $0x1] ss:$0 sm:$0xff]  ;;  %v2546_v50 = vld [vmem:[%s2855_s1 + $0x2] ss:$0 sm:$0xff] }
  0x75   : > { %v704_v15 = vadd.f32 %v672_v13, %v605_v24  ;;  %v1140_v8 = vadd.f32 %v2013_v37, %v1104_v60  ;;  %v519_v59 = vadd.f32 %v487_v42, %v420_v48  ;;  %v688_v11 = vmul.f32 %v2525_v3, %v2913_v45  ;;  %v2570_v24 = vld [vmem:[%s2855_s1 + $0x3] ss:$0 sm:$0xff]  ;;  %v2578_v60 = vld [vmem:[%s1817_s8 + $0xf2] sm:$0xff] }
  0x76   : > { %v272_v6 = vmul.f32 %v2532_v26, %v2504_v43  ;;  %v1021_v7 = vadd.f32 %v989_v18, %v922_v2  ;;  %v371_v62 = vmul.f32 %v2539_v28, %v2511_v1  ;;  %v470_v29 = vmul.f32 %v2546_v50, %v2514_v36  ;;  %v2591_v2 = vld [vmem:[%s2855_s1 + $0x7] ss:$0 sm:$0xff] }
  0x77   : > { %v803_v16 = vadd.f32 %v771_v12, %v704_v15  ;;  %v1172_v18 = vmax.f32 %v1140_v8, 0.0  ;;  %v1071_v22 = vmul.f32 %v2553_v39, %v2228_v40  ;;  %v621_v13 = vadd.f32 %v589_v0, %v519_v59  ;;  %v2575_v12 = vld [vmem:[%s1817_s8 + $0xf1] sm:$0xff] }
  0x78   : > { %v787_v49 = vmul.f32 %v2560_v44, %v2367_v55  ;;  %v1120_v42 = vadd.f32 %v1088_v4, %v1021_v7  ;;  %v403_v33 = vadd.f32 %v371_v62, %v272_v6  ;;  %v572_v40 = vmul.f32 %v2570_v24, %v2388_v47  ;;  %2914 = vst [vmem:[#allocation7_spill] sm:$0xff] %v2575_v12  ;;  %v2584_v4 = vld [vmem:[%s2855_s1 + $0x6] ss:$0 sm:$0xff] }
  0x79   : > { %v905_v23 = vadd.f32 %v873_v5, %v803_v16  ;;  %1641 = vmatpush.xpose.msk.msra.mxu0 %vm1199_vm0, %v1172_v18  ;;  %v720_v48 = vadd.f32 %v688_v11, %v621_v13  ;;  %v889_v0 = vmul.f32 %v2584_v4, %v2247_v57  ;;  %v988_v15 = vmul.f32 %v2591_v2, %v2250_v61 }
  0x7a   : > { %v671_v5 = vmul.f32 %v2525_v3, %v2395_v30  ;;  %v1156_v8 = vadd.f32 %v2013_v37, %v1120_v42  ;;  %v502_v11 = vadd.f32 %v470_v29, %v403_v33  ;;  %v288_v57 = vmul.f32 %v2532_v26, %v2565_v58  ;;  %v2609_v29 = vld [vmem:[%s1817_s8 + $0x20] sm:$0xff] }
  0x7b   : > { %v1004_v59 = vadd.f32 %v972_v63, %v905_v23  ;;  %v819_v6 = vadd.f32 %v787_v49, %v720_v48  ;;  %v1087_v7 = vmul.f32 %v2553_v39, %v2257_v31  ;;  %v387_v16 = vmul.f32 %v2539_v28, %v2575_v12  ;;  %v2612_v42 = vld [vmem:[%s1817_s8 + $0x21] sm:$0xff] }
  0x7c   : > { %v486_v61 = vmul.f32 %v2546_v50, %v2578_v60  ;;  %v1188_v62 = vmax.f32 %v1156_v8, 0.0  ;;  %v604_v13 = vadd.f32 %v572_v40, %v502_v11  ;;  %v770_v63 = vmul.f32 %v2560_v44, %v2398_v14  ;;  %v2619_v48 = vld [vmem:[%s1817_s8 + $0x22] sm:$0xff] }
  0x7d   : > { %v1103_v18 = vadd.f32 %v1071_v22, %v1004_v59  ;;  %v921_v49 = vadd.f32 %v889_v0, %v819_v6  ;;  %v872_v31 = vmul.f32 %v2584_v4, %v2276_v54  ;;  %v419_v23 = vadd.f32 %v387_v16, %v288_v57 }
  0x7e   : > { %v588_v33 = vmul.f32 %v2570_v24, %v2419_v56  ;;  %1658 = vmatpush.xpose.msk.msra.mxu1 %vm1199_vm0, %v1188_v62  ;;  %v703_v40 = vadd.f32 %v671_v5, %v604_v13  ;;  %v971_v8 = vmul.f32 %v2591_v2, %v2279_v34  ;;  %v687_v54 = vmul.f32 %v2525_v3, %v2424_v38 }
  0x7f   : > { %v1139_v22 = vadd.f32 %v2013_v37, %v1103_v18  ;;  %v1020_v0 = vadd.f32 %v988_v15, %v921_v49  ;;  %v518_v59 = vadd.f32 %v486_v61, %v419_v23  ;;  %v271_v11 = vmul.f32 %v2532_v26, %v2609_v29  ;;  %v2638_v61 = vld [vmem:[%s1817_s8 + $0xe0] sm:$0xff] }
  0x80   : > { %v370_v57 = vmul.f32 %v2539_v28, %v2612_v42  ;;  %v802_v16 = vadd.f32 %v770_v63, %v703_v40  ;;  %v786_v5 = vmul.f32 %v2560_v44, %v2427_v19  ;;  %v469_v34 = vmul.f32 %v2546_v50, %v2619_v48  ;;  %v2641_v49 = vld [vmem:[%s1817_s8 + $0xe1] sm:$0xff] }
  0x81   : > { %v1171_v6 = vmax.f32 %v1139_v22, 0.0  ;;  %v1119_v62 = vadd.f32 %v1087_v7, %v1020_v0  ;;  %v620_v18 = vadd.f32 %v588_v33, %v518_v59  ;;  %v571_v15 = vmul.f32 %v2570_v24, %v2448_v51  ;;  %2915 = vst [vmem:[#allocation8_spill] sm:$0xff] %v2641_v49  ;;  %v2644_v23 = vld [vmem:[%s1817_s8 + $0xe2] sm:$0xff] }
  0x82   : > { %v402_v13 = vadd.f32 %v370_v57, %v271_v11  ;;  %v904_v63 = vadd.f32 %v872_v31, %v802_v16  ;;  %v1070_v22 = vmul.f32 %v2553_v39, %v2282_v21  ;;  %v888_v7 = vmul.f32 %v2584_v4, %v2301_v20 }
  0x83   : > { %1642 = vmatpush.xpose.msk.msra.mxu0 %vm1199_vm0, %v1171_v6  ;;  %v987_v33 = vmul.f32 %v2591_v2, %v2308_v35  ;;  %v1155_v40 = vadd.f32 %v2013_v37, %v1119_v62  ;;  %v719_v0 = vadd.f32 %v687_v54, %v620_v18  ;;  %v670_v11 = vmul.f32 %v2525_v3, %v2451_v52 }
  0x84   : > { %v501_v59 = vadd.f32 %v469_v34, %v402_v13  ;;  %v1003_v31 = vadd.f32 %v971_v8, %v904_v63  ;;  %v287_v57 = vmul.f32 %v2532_v26, %v2638_v61  ;;  %v386_v21 = vmul.f32 %v2539_v28, %v2641_v49  ;;  %v2665_v34 = vld [vmem:[%s1817_s8 + $0x18] sm:$0xff] }
  0x85   : > { %v485_v20 = vmul.f32 %v2546_v50, %v2644_v23  ;;  %v1187_v35 = vmax.f32 %v1155_v40, 0.0  ;;  %v818_v6 = vadd.f32 %v786_v5, %v719_v0  ;;  %v769_v54 = vmul.f32 %v2560_v44, %v2458_v46  ;;  %v2672_v63 = vld [vmem:[%s1817_s8 + $0x19] sm:$0xff] }
  0x86   : > { %v603_v16 = vadd.f32 %v571_v15, %v501_v59  ;;  %v1102_v62 = vadd.f32 %v1070_v22, %v1003_v31  ;;  %v1086_v8 = vmul.f32 %v2553_v39, %v2311_v32  ;;  %v418_v18 = vadd.f32 %v386_v21, %v287_v57  ;;  %v2675_v49 = vld [vmem:[%s1817_s8 + $0x1a] sm:$0xff] }
  0x87   : > { %v587_v13 = vmul.f32 %v2570_v24, %v2477_v41  ;;  %1659 = vmatpush.xpose.msk.msra.mxu1 %vm1199_vm0, %v1187_v35  ;;  %v920_v5 = vadd.f32 %v888_v7, %v818_v6  ;;  %v871_v40 = vmul.f32 %v2584_v4, %v2332_v17  ;;  %v970_v22 = vmul.f32 %v2591_v2, %v2335_v9  ;;  %v2696_v35 = vld [vmem:[%s1817_s8 + $0xd8] sm:$0xff] }
  0x88   : > { %v702_v15 = vadd.f32 %v670_v11, %v603_v16  ;;  %v1138_v32 = vadd.f32 %v2013_v37, %v1102_v62  ;;  %v517_v0 = vadd.f32 %v485_v20, %v418_v18  ;;  %v686_v59 = vmul.f32 %v2525_v3, %v2480_v25  ;;  %v2701_v62 = vld [vmem:[%s1817_s8 + $0xd9] sm:$0xff] }
  0x89   : > { %v270_v31 = vmul.f32 %v2532_v26, %v2665_v34  ;;  %v1019_v7 = vadd.f32 %v987_v33, %v920_v5  ;;  %v369_v11 = vmul.f32 %v2539_v28, %v2672_v63  ;;  %v468_v17 = vmul.f32 %v2546_v50, %v2675_v49  ;;  %v2704_v18 = vld [vmem:[%s1817_s8 + $0xda] sm:$0xff] }
  0x8a   : > { %v801_v57 = vadd.f32 %v769_v54, %v702_v15  ;;  %v1170_v9 = vmax.f32 %v1138_v32, 0.0  ;;  %v1069_v37 = vmul.f32 %v2553_v39, %v2343_v53  ;;  %v619_v21 = vadd.f32 %v587_v13, %v517_v0  ;;  %v2716_v15 = vld [vmem:[%s2856_s2] ss:$0 sm:$0xff] }
  0x8b   : > { %v785_v20 = vmul.f32 %v2560_v44, %v2483_v10  ;;  %v1118_v6 = vadd.f32 %v1086_v8, %v1019_v7  ;;  %v401_v33 = vadd.f32 %v369_v11, %v270_v31  ;;  %v570_v54 = vmul.f32 %v2570_v24, %v2504_v43 }
  0x8c   : > { %v903_v16 = vadd.f32 %v871_v40, %v801_v57  ;;  %1643 = vmatpush.xpose.msk.msra.mxu0 %vm1199_vm0, %v1170_v9  ;;  %v718_v5 = vadd.f32 %v686_v59, %v619_v21  ;;  %v887_v53 = vmul.f32 %v2584_v4, %v2361_v27  ;;  %v986_v13 = vmul.f32 %v2591_v2, %v2913_v45  ;;  %v333_v21 = vld [vmem:[%s1817_s8 + $0x9] sm:$0xff] }
  0x8d   : > { %v669_v8 = vmul.f32 %v2525_v3, %v2511_v1  ;;  %v1154_v40 = vadd.f32 %v2716_v15, %v1118_v6  ;;  %v500_v0 = vadd.f32 %v468_v17, %v401_v33  ;;  %v286_v27 = vmul.f32 %v2532_v26, %v2696_v35  ;;  %v234_v17 = vld [vmem:[%s1817_s8 + $0x8] sm:$0xff] }
  0x8e   : > { %v1002_v32 = vadd.f32 %v970_v22, %v903_v16  ;;  %v817_v59 = vadd.f32 %v785_v20, %v718_v5  ;;  %v1085_v45 = vmul.f32 %v2553_v39, %v2367_v55  ;;  %v385_v31 = vmul.f32 %v2539_v28, %v2701_v62  ;;  %v432_v33 = vld [vmem:[%s1817_s8 + $0xa] sm:$0xff] }
  0x8f   : > { %v484_v7 = vmul.f32 %v2546_v50, %v2704_v18  ;;  %v1186_v57 = vmax.f32 %v1154_v40, 0.0  ;;  %v602_v9 = vadd.f32 %v570_v54, %v500_v0  ;;  %v768_v22 = vmul.f32 %v2560_v44, %v2514_v36 }
  0x90   : > { %v1101_v11 = vadd.f32 %v1069_v37, %v1002_v32  ;;  %v919_v6 = vadd.f32 %v887_v53, %v817_v59  ;;  %v870_v20 = vmul.f32 %v2584_v4, %v2388_v47  ;;  %v417_v16 = vadd.f32 %v385_v31, %v286_v27 }
  0x91   : > { %v586_v55 = vmul.f32 %v2570_v24, %v2565_v58  ;;  %1660 = vmatpush.xpose.msk.msra.mxu1 %vm1199_vm0, %v1186_v57  ;;  %v701_v37 = vadd.f32 %v669_v8, %v602_v9  ;;  %v969_v54 = vmul.f32 %v2591_v2, %v2395_v30  ;;  %v685_v53 = vmul.f32 %v2525_v3, %v2575_v12  ;;  %v250_v12 = vld [vmem:[%s1817_s8 + $0xc8] sm:$0xff] }
  0x92   : > { %v1137_v5 = vadd.f32 %v2716_v15, %v1101_v11  ;;  %v1018_v47 = vadd.f32 %v986_v13, %v919_v6  ;;  %v516_v40 = vadd.f32 %v484_v7, %v417_v16  ;;  %v269_v32 = vmul.f32 %v2532_v26, %v234_v17  ;;  %v349_v13 = vld [vmem:[%s1817_s8 + $0xc9] sm:$0xff] }
  0x93   : > { %v368_v0 = vmul.f32 %v2539_v28, %v333_v21  ;;  %v800_v59 = vadd.f32 %v768_v22, %v701_v37  ;;  %v784_v31 = vmul.f32 %v2560_v44, %v2578_v60  ;;  %v467_v8 = vmul.f32 %v2546_v50, %v432_v33  ;;  %v448_v7 = vld [vmem:[%s1817_s8 + $0xca] sm:$0xff] }
  0x94   : > { %v1169_v27 = vmax.f32 %v1137_v5, 0.0  ;;  %v1117_v57 = vadd.f32 %v1085_v45, %v1018_v47  ;;  %v618_v11 = vadd.f32 %v586_v55, %v516_v40  ;;  %v569_v9 = vmul.f32 %v2570_v24, %v2609_v29 }
  0x95   : > { %v400_v30 = vadd.f32 %v368_v0, %v269_v32  ;;  %v902_v17 = vadd.f32 %v870_v20, %v800_v59  ;;  %v1068_v22 = vmul.f32 %v2553_v39, %v2398_v14  ;;  %v886_v21 = vmul.f32 %v2584_v4, %v2419_v56 }
  0x96   : > { %1644 = vmatpush.xpose.msk.msra.mxu0 %vm1199_vm0, %v1169_v27  ;;  %v985_v45 = vmul.f32 %v2591_v2, %v2424_v38  ;;  %v1153_v6 = vadd.f32 %v2716_v15, %v1117_v57  ;;  %v717_v16 = vadd.f32 %v685_v53, %v618_v11  ;;  %v668_v55 = vmul.f32 %v2525_v3, %v2612_v42  ;;  %v233_v53 = vld [vmem:[%s1817_s8] sm:$0xff]  ;;  %v2916_v57 = vld [vmem:[#allocation8_spill] sm:$0xff] }
  0x97   : > { %v499_v29 = vadd.f32 %v467_v8, %v400_v30  ;;  %v1001_v20 = vadd.f32 %v969_v54, %v902_v17  ;;  %v285_v33 = vmul.f32 %v2532_v26, %v250_v12  ;;  %v384_v14 = vmul.f32 %v2539_v28, %v349_v13  ;;  %v332_v12 = vld [vmem:[%s1817_s8 + $0x1] sm:$0xff] }
  0x98   : > { %v483_v5 = vmul.f32 %v2546_v50, %v448_v7  ;;  %v1185_v56 = vmax.f32 %v1153_v6, 0.0  ;;  %v816_v37 = vadd.f32 %v784_v31, %v717_v16  ;;  %v767_v38 = vmul.f32 %v2560_v44, %v2619_v48  ;;  %v431_v54 = vld [vmem:[%s1817_s8 + $0x2] sm:$0xff] }
  0x99   : > { %v601_v47 = vadd.f32 %v569_v9, %v499_v29  ;;  %v1100_v40 = vadd.f32 %v1068_v22, %v1001_v20  ;;  %v1084_v32 = vmul.f32 %v2553_v39, %v2427_v19  ;;  %v416_v0 = vadd.f32 %v384_v14, %v285_v33  ;;  %v447_v20 = vld [vmem:[%s1817_s8 + $0xc2] sm:$0xff] }
  0x9a   : > { %v585_v42 = vmul.f32 %v2570_v24, %v2638_v61  ;;  %1661 = vmatpush.xpose.msk.msra.mxu1 %vm1199_vm0, %v1185_v56  ;;  %v918_v27 = vadd.f32 %v886_v21, %v816_v37  ;;  %v869_v31 = vmul.f32 %v2584_v4, %v2448_v51  ;;  %v968_v48 = vmul.f32 %v2591_v2, %v2451_v52  ;;  %v249_v21 = vld [vmem:[%s1817_s8 + $0xc0] sm:$0xff] }
  0x9b   : > { %v700_v59 = vadd.f32 %v668_v55, %v601_v47  ;;  %v1136_v8 = vadd.f32 %v2716_v15, %v1100_v40  ;;  %v515_v19 = vadd.f32 %v483_v5, %v416_v0  ;;  %v684_v61 = vmul.f32 %v2525_v3, %v2916_v57  ;;  %v348_v55 = vld [vmem:[%s1817_s8 + $0xc1] sm:$0xff] }
  0x9c   : > { %v268_v11 = vmul.f32 %v2532_v26, %v233_v53  ;;  %v1017_v30 = vadd.f32 %v985_v45, %v918_v27  ;;  %v367_v13 = vmul.f32 %v2539_v28, %v332_v12  ;;  %v466_v7 = vmul.f32 %v2546_v50, %v431_v54 }
  0x9d   : > { %v799_v9 = vadd.f32 %v767_v38, %v700_v59  ;;  %v1168_v51 = vmax.f32 %v1136_v8, 0.0  ;;  %v1067_v52 = vmul.f32 %v2553_v39, %v2458_v46  ;;  %v617_v17 = vadd.f32 %v585_v42, %v515_v19 }
  0x9e   : > { %v783_v22 = vmul.f32 %v2560_v44, %v2644_v23  ;;  %v1116_v6 = vadd.f32 %v1084_v32, %v1017_v30  ;;  %v399_v29 = vadd.f32 %v367_v13, %v268_v11  ;;  %v568_v45 = vmul.f32 %v2570_v24, %v2665_v34  ;;  %v2917_v11 = vld [vmem:[#allocation7_spill] sm:$0xff] }
  0x9f   : > { %v901_v16 = vadd.f32 %v869_v31, %v799_v9  ;;  %1645 = vmatpush.xpose.msk.msra.mxu0 %vm1199_vm0, %v1168_v51  ;;  %v716_v33 = vadd.f32 %v684_v61, %v617_v17  ;;  %v885_v14 = vmul.f32 %v2584_v4, %v2477_v41  ;;  %v667_v46 = vmul.f32 %v2525_v3, %v2672_v63 }
  0xa0   : > { %v1152_v23 = vadd.f32 %v2716_v15, %v1116_v6  ;;  %v498_v56 = vadd.f32 %v466_v7, %v399_v29  ;;  %v284_v37 = vmul.f32 %v2532_v26, %v249_v21  ;;  %v984_v34 = vmul.f32 %v2591_v2, %v2480_v25 }
  0xa1   : > { %v1000_v5 = vadd.f32 %v968_v48, %v901_v16  ;;  %v815_v47 = vadd.f32 %v783_v22, %v716_v33  ;;  %v383_v38 = vmul.f32 %v2539_v28, %v348_v55  ;;  %v482_v53 = vmul.f32 %v2546_v50, %v447_v20 }
  0xa2   : > { %v1184_v40 = vmax.f32 %v1152_v23, 0.0  ;;  %v600_v41 = vadd.f32 %v568_v45, %v498_v56  ;;  %v766_v63 = vmul.f32 %v2560_v44, %v2675_v49  ;;  %v1083_v42 = vmul.f32 %v2553_v39, %v2483_v10 }
  0xa3   : > { %v1099_v32 = vadd.f32 %v1067_v52, %v1000_v5  ;;  %v917_v0 = vadd.f32 %v885_v14, %v815_v47  ;;  %v415_v12 = vadd.f32 %v383_v38, %v284_v37  ;;  %v584_v26 = vmul.f32 %v2570_v24, %v2696_v35 }
  0xa4   : > { %1662 = vmatpush.xpose.msk.msra.mxu1 %vm1199_vm0, %v1184_v40  ;;  %v699_v28 = vadd.f32 %v667_v46, %v600_v41  ;;  %v868_v50 = vmul.f32 %v2584_v4, %v2504_v43  ;;  %v683_v49 = vmul.f32 %v2525_v3, %v2701_v62  ;;  %v967_v10 = vmul.f32 %v2591_v2, %v2511_v1 }
  0xa5   : > { %v1135_v25 = vadd.f32 %v2716_v15, %v1099_v32  ;;  %v1016_v54 = vadd.f32 %v984_v34, %v917_v0  ;;  %v514_v27 = vadd.f32 %v482_v53, %v415_v12  ;;  %v782_v35 = vmul.f32 %v2560_v44, %v2704_v18 }
  0xa6   : > { %v798_v31 = vadd.f32 %v766_v63, %v699_v28  ;;  %v1066_v43 = vmul.f32 %v2553_v39, %v2514_v36  ;;  %v884_v3 = vmul.f32 %v2584_v4, %v2565_v58  ;;  %v983_v30 = vmul.f32 %v2591_v2, %v2917_v11  ;;  %v1198_v58 = vld [vmem:[%s2857_s3] sm:$0xff] }
  0xa7   : > { %v1167_v59 = vmax.f32 %v1135_v25, 0.0  ;;  %v1115_v48 = vadd.f32 %v1083_v42, %v1016_v54  ;;  %v616_v24 = vadd.f32 %v584_v26, %v514_v27  ;;  %v1082_v36 = vmul.f32 %v2553_v39, %v2578_v60 }
  0xa8   : > { %v900_v8 = vadd.f32 %v868_v50, %v798_v31 }
  0xa9   : > { %1646 = vmatpush.xpose.msk.msra.mxu0 %vm1199_vm0, %v1167_v59  ;;  %v1151_v19 = vadd.f32 %v2716_v15, %v1115_v48  ;;  %v715_v57 = vadd.f32 %v683_v49, %v616_v24 }
  0xaa   : > { %v999_v62 = vadd.f32 %v967_v10, %v900_v8 }
  0xab   : > { %v1183_v61 = vmax.f32 %v1151_v19, 0.0  ;;  %v814_v1 = vadd.f32 %v782_v35, %v715_v57 }
  0xac   : > { %v1098_v44 = vadd.f32 %v1066_v43, %v999_v62 }
  0xad   : > { %1663 = vmatpush.xpose.msk.msra.mxu1 %vm1199_vm0, %v1183_v61  ;;  %v916_v18 = vadd.f32 %v884_v3, %v814_v1 }
  0xae   : > { %v1134_v9 = vadd.f32 %v2716_v15, %v1098_v44 }
  0xaf   : > { %v1015_v13 = vadd.f32 %v983_v30, %v916_v18 }
  0xb0   : > { %v1166_v7 = vmax.f32 %v1134_v9, 0.0 }
  0xb1   : > { %v1114_v51 = vadd.f32 %v1082_v36, %v1015_v13 }
  0xb2   : > { %1647 = vmatpush.xpose.msk.msra.mxu0 %vm1199_vm0, %v1166_v7 }
  0xb3   : > { %v1150_v4 = vadd.f32 %v2716_v15, %v1114_v51 }
  0xb5   : > { %v1182_v2 = vmax.f32 %v1150_v4, 0.0  ;;  %1648 = vmatmul.msk.f32.vlgmr.msra.gmra.mxu0 %vm1199_vm0, %v1198_v58 }
  0xb7   : > { %1664 = vmatpush.xpose.msk.msra.mxu1 %vm1199_vm0, %v1182_v2 }
  0xba   : > { %1665 = vmatmul.msk.f32.vlgmr.msra.gmra.mxu1 %vm1199_vm0, %v1198_v58 }
 0x132   : > { %v1316_v39 = vpop.f32.mrf.mxu0 }
 0x133   : > { %1339 = vst [vmem:[%s219_s24] sm:$0xff] %v1316_v39 }
 0x137   : > { %v1336_v60 = vpop.f32.mrf.mxu1 }
 0x138   : > { %1340 = vst [vmem:[%s219_s24 + $0x8] sm:$0xff] %v1336_v60 }
 0x139 PF: > { %s14_s17 = sadd.s32 1, %s1736_s17   ;;  %s2918_s15 = smov %s1732_s16 }
 0x13a   : > { %p11_p5 = scmp.ge.s32.totalorder %s14_s17, 4   ;;  %s2919_s16 = smov %s2921_s18 }
 0x13c   :  { %13 = sbr.rel (!%p11_p5) target bundleno = 2 (0x2), region = 69 }

</bundles_post_ra>
